<compile_context>
chip_gen: v7x
topology: tpu7x:2x2x1
jax: 0.10.0
libtpu: 0.0.40
codegen_flags: <defaults>
</compile_context>

<pallas_src>
import jax
import jax.numpy as jnp
from jax.experimental import pallas as pl
from jax.experimental.pallas import tpu as pltpu

N_NODES = 16
IN_DIM = 8
HIDDEN = 32
OUT_DIM = 4
N_REL = 3
N_LAYERS = 3
LN_EPS = 1e-5
NEG_BIG = -1e30

# ---- packed weight-slab layout ----------------------------------------------
W_LANES = 256                      # lane width of the weight slab
W_ROWS = IN_DIM + 2 * HIDDEN       # 8 (w_in) + 32 (fused W_big) + 32 (w_out) = 72
COL_REL = 0                        # W_big cols [0, 3H)        : w_rel[r]
COL_GATE = 3 * HIDDEN              # W_big cols [3H, 6H)       : w_gate[r]
COL_ASRC = 6 * HIDDEN              # W_big cols [6H, 6H+R)     : w_att_src
COL_ADST = 6 * HIDDEN + N_REL      # W_big cols [6H+R, 6H+2R)  : w_att_dst

# ---- packed bias/LN-slab layout ----------------------------------------------
B_LANES = 128
B_ROWS = 16
ROW_B_IN = 0
ROW_B_GATE = 1                     # rows [1, 1+R)
ROW_B_ATT = 4
ROW_B_OUT = 5
ROW_LN_G = 6                       # rows [6, 6+L)
ROW_LN_B = 9                       # rows [9, 9+L)

# ---- packed per-graph slab layout --------------------------------------------
GRAPH_LANES = 128
COL_ADJ = 0                        # lanes [0, 48): adj, relation r at [16r,16(r+1))
COL_X = N_REL * N_NODES            # lanes [48, 56): node features


def _gnn_kernel(meta_ref, graph_ref, w_ref, b_ref, out_ref, h_ref, msg_ref):
    b = pl.program_id(0)

    # ---- input projection + relu ------------------------------------------
    x = graph_ref[:, COL_X:COL_X + IN_DIM]                       # [N, 8]
    w_in = w_ref[0:IN_DIM, 0:HIDDEN]
    b_in = b_ref[ROW_B_IN:ROW_B_IN + 1, 0:HIDDEN]
    h_ref[...] = jnp.maximum(
        jnp.dot(x, w_in, preferred_element_type=jnp.float32) + b_in, 0.0)

    # ---- per-graph quantities hoisted out of the layer loop ----------------
    adj = [graph_ref[:, COL_ADJ + r * N_NODES:COL_ADJ + (r + 1) * N_NODES]
           for r in range(N_REL)]                                # [dst, src] each
    edge_mask = [a > 0.0 for a in adj]
    b_att = [b_ref[ROW_B_ATT:ROW_B_ATT + 1, r:r + 1] for r in range(N_REL)]
    b_gate = [b_ref[ROW_B_GATE + r:ROW_B_GATE + r + 1, 0:HIDDEN]
              for r in range(N_REL)]
    w_big = w_ref[IN_DIM:IN_DIM + HIDDEN, :]                     # [H, 256]

    count = meta_ref[b, N_REL]                                   # int32 scalar (SMEM)
    any_rel = count > 0
    # exact 1/count (count in {1,2,3}); no approx reciprocal here
    inv_count = 1.0 / jnp.maximum(
        jnp.broadcast_to(count, (1, 1)).astype(jnp.float32), 1.0)

    for layer in range(N_LAYERS):
        ln_g = b_ref[ROW_LN_G + layer:ROW_LN_G + layer + 1, 0:HIDDEN]
        ln_b = b_ref[ROW_LN_B + layer:ROW_LN_B + layer + 1, 0:HIDDEN]

        @pl.when(any_rel)                     # PyTorch: skip update if no messages
        def _layer(ln_g=ln_g, ln_b=ln_b):
            h = h_ref[...]
            # one wide MXU matmul replaces 8 tiny dots per layer
            fused = jnp.dot(h, w_big, preferred_element_type=jnp.float32)  # [N,256]
            a_src_t = fused[:, COL_ASRC:COL_ASRC + N_REL].T                # [R, N]
            msg_ref[...] = jnp.zeros_like(msg_ref)

            for r in range(N_REL):
                @pl.when(meta_ref[b, r] > 0)  # skip absent relations at runtime
                def _rel(r=r):
                    a_dst_r = fused[:, COL_ADST + r:COL_ADST + r + 1]      # [N, 1]
                    # raw[dst, src] = a_dst[dst] + a_src[src] + b
                    raw = a_dst_r + a_src_t[r:r + 1, :] + b_att[r]         # [N, N]
                    lr = jnp.where(raw > 0.0, raw, 0.2 * raw)              # leaky_relu
                    masked = jnp.where(edge_mask[r], lr, NEG_BIG)
                    # two-stage keepdims reductions; result stays a (1,1) vreg value
                    m = jnp.max(jnp.max(masked, axis=-1, keepdims=True),
                                axis=0, keepdims=True)
                    ew = adj[r] * jnp.exp(masked - m)       # 0 at non-edges, <=mult at edges
                    denom = jnp.sum(jnp.sum(ew, axis=-1, keepdims=True),
                                    axis=0, keepdims=True)  # >= 1 when relation present
                    p = ew * pl.reciprocal(denom, approx=True)

                    # msg_agg[dst] = sum_src p[dst,src] * (h[src] @ W_rel[r])
                    transformed = fused[:, COL_REL + r * HIDDEN:
                                        COL_REL + (r + 1) * HIDDEN]
                    msg_agg = jnp.dot(p, transformed,
                                      preferred_element_type=jnp.float32)
                    gate = jax.nn.sigmoid(
                        fused[:, COL_GATE + r * HIDDEN:COL_GATE + (r + 1) * HIDDEN]
                        + b_gate[r])
                    msg_ref[...] += gate * msg_agg

            # TODO(synk): dropout omitted (inference semantics -> identity).
            pre = h + msg_ref[...] * inv_count
            mu = jnp.mean(pre, axis=-1, keepdims=True)
            var = jnp.mean(jnp.square(pre - mu), axis=-1, keepdims=True)
            normed = (pre - mu) * jax.lax.rsqrt(var + LN_EPS)
            h_ref[...] = jnp.maximum(normed * ln_g + ln_b, 0.0)

    # lane-dense [N, 128] output store (w_out / b_out zero-padded past OUT_DIM)
    w_out = w_ref[IN_DIM + HIDDEN:W_ROWS, 0:B_LANES]
    b_out = b_ref[ROW_B_OUT:ROW_B_OUT + 1, 0:B_LANES]
    out_ref[...] = jnp.dot(h_ref[...], w_out,
                           preferred_element_type=jnp.float32) + b_out


def pack_params(params):
    """Pack all parameter arrays into one weight slab + one bias/LN slab (once)."""
    w_slab = jnp.zeros((W_ROWS, W_LANES), jnp.float32)
    w_slab = w_slab.at[0:IN_DIM, 0:HIDDEN].set(params["w_in"])

    w_big = jnp.zeros((HIDDEN, W_LANES), jnp.float32)
    for r in range(N_REL):
        w_big = w_big.at[:, COL_REL + r * HIDDEN:COL_REL + (r + 1) * HIDDEN].set(
            params["w_rel"][r])
        w_big = w_big.at[:, COL_GATE + r * HIDDEN:COL_GATE + (r + 1) * HIDDEN].set(
            params["w_gate"][r])
    w_big = w_big.at[:, COL_ASRC:COL_ASRC + N_REL].set(params["w_att_src"])
    w_big = w_big.at[:, COL_ADST:COL_ADST + N_REL].set(params["w_att_dst"])
    w_slab = w_slab.at[IN_DIM:IN_DIM + HIDDEN, :].set(w_big)
    w_slab = w_slab.at[IN_DIM + HIDDEN:W_ROWS, 0:OUT_DIM].set(params["w_out"])

    b_slab = jnp.zeros((B_ROWS, B_LANES), jnp.float32)
    b_slab = b_slab.at[ROW_B_IN, 0:HIDDEN].set(params["b_in"][0])
    b_slab = b_slab.at[ROW_B_GATE:ROW_B_GATE + N_REL, 0:HIDDEN].set(params["b_gate"])
    b_slab = b_slab.at[ROW_B_ATT, 0:N_REL].set(params["b_att"][0])
    b_slab = b_slab.at[ROW_B_OUT, 0:OUT_DIM].set(params["b_out"][0])
    b_slab = b_slab.at[ROW_LN_G:ROW_LN_G + N_LAYERS, 0:HIDDEN].set(params["ln_g"])
    b_slab = b_slab.at[ROW_LN_B:ROW_LN_B + N_LAYERS, 0:HIDDEN].set(params["ln_b"])
    return w_slab, b_slab


def pack_graphs(x, adj):
    """Pack per-graph data (adjacency lane-dense + node features) + SMEM metadata.

    x:   [B, N, IN_DIM]      node features
    adj: [B, R, N, N]        adj[b, r, dst, src] = edge multiplicity
    Returns (graph_slab [B, N, 128] f32, rel_meta [B, R+1] int32).
    """
    B = x.shape[0]
    g = jnp.zeros((B, N_NODES, GRAPH_LANES), jnp.float32)
    adj_lanes = jnp.transpose(adj, (0, 2, 1, 3)).reshape(B, N_NODES, N_REL * N_NODES)
    g = g.at[:, :, COL_ADJ:COL_ADJ + N_REL * N_NODES].set(adj_lanes)
    g = g.at[:, :, COL_X:COL_X + IN_DIM].set(x)

    present = (jnp.sum(adj, axis=(2, 3)) > 0).astype(jnp.int32)     # [B, R]
    count = jnp.sum(present, axis=1, keepdims=True)                 # [B, 1]
    rel_meta = jnp.concatenate([present, count], axis=1)            # [B, R+1]
    return g, rel_meta


def relation_gated_gnn(graph_slab, rel_meta, w_slab, b_slab):
    """Batched forward over B graphs; all packing happens outside this call."""
    B = graph_slab.shape[0]
    grid_spec = pltpu.PrefetchScalarGridSpec(
        num_scalar_prefetch=1,                # rel_meta -> SMEM scalars
        grid=(B,),
        in_specs=[
            # per-graph slab: one lane-dense DMA per step
            pl.BlockSpec((None, N_NODES, GRAPH_LANES), lambda b, meta: (b, 0, 0)),
            # weight / bias slabs: constant block index -> resident in VMEM
            pl.BlockSpec((W_ROWS, W_LANES), lambda b, meta: (0, 0)),
            pl.BlockSpec((B_ROWS, B_LANES), lambda b, meta: (0, 0)),
        ],
        out_specs=pl.BlockSpec((None, N_NODES, B_LANES), lambda b, meta: (b, 0, 0)),
        scratch_shapes=[
            pltpu.VMEM((N_NODES, HIDDEN), jnp.float32),   # h (node state)
            pltpu.VMEM((N_NODES, HIDDEN), jnp.float32),   # msg_sum accumulator
        ],
    )
    out_padded = pl.pallas_call(
        _gnn_kernel,
        out_shape=jax.ShapeDtypeStruct((B, N_NODES, B_LANES), jnp.float32),
        grid_spec=grid_spec,
        compiler_params=pltpu.CompilerParams(
            dimension_semantics=("parallel",)),
    )(rel_meta, graph_slab, w_slab, b_slab)
    return out_padded[:, :, :OUT_DIM]


def init_params(key):
    ks = jax.random.split(key, 10)
    s = 0.1
    return dict(
        w_in=s * jax.random.normal(ks[0], (IN_DIM, HIDDEN), jnp.float32),
        b_in=s * jax.random.normal(ks[1], (1, HIDDEN), jnp.float32),
        w_rel=s * jax.random.normal(ks[2], (N_REL, HIDDEN, HIDDEN), jnp.float32),
        w_gate=s * jax.random.normal(ks[3], (N_REL, HIDDEN, HIDDEN), jnp.float32),
        b_gate=s * jax.random.normal(ks[4], (N_REL, HIDDEN), jnp.float32),
        w_att_src=s * jax.random.normal(ks[5], (HIDDEN, N_REL), jnp.float32),
        w_att_dst=s * jax.random.normal(ks[6], (HIDDEN, N_REL), jnp.float32),
        b_att=s * jax.random.normal(ks[7], (1, N_REL), jnp.float32),
        w_out=s * jax.random.normal(ks[8], (HIDDEN, OUT_DIM), jnp.float32),
        b_out=s * jax.random.normal(ks[9], (1, OUT_DIM), jnp.float32),
        ln_g=jnp.ones((N_LAYERS, HIDDEN), jnp.float32),
        ln_b=jnp.zeros((N_LAYERS, HIDDEN), jnp.float32),
    )


def reference(x, src, dst, etype, params):
    """Pure-JAX edge-list reference mirroring the PyTorch forward (one graph)."""
    h = jax.nn.relu(x @ params["w_in"] + params["b_in"])
    w_att = jnp.concatenate([params["w_att_src"], params["w_att_dst"]], axis=0)
    for layer in range(N_LAYERS):
        msg_sum = jnp.zeros_like(h)
        count = jnp.zeros((), jnp.float32)
        for r in range(N_REL):
            mask = (etype == r).astype(jnp.float32)
            present = mask.sum() > 0.0
            h_src = h[src]
            h_dst = h[dst]
            att_in = jnp.concatenate([h_src, h_dst], axis=-1)
            scores = att_in @ w_att[:, r:r + 1] + params["b_att"][0, r]
            scores = jnp.where(scores > 0.0, scores, 0.2 * scores)
            scores = jnp.where(mask[:, None] > 0.0, scores, -1e30)
            m = jnp.max(scores)
            e = jnp.exp(scores - m) * mask[:, None]
            att = e / jnp.maximum(e.sum(), 1e-30)
            msg = (h_src @ params["w_rel"][r]) * att * mask[:, None]
            msg_agg = jnp.zeros_like(h).at[dst].add(msg)
            gate = jax.nn.sigmoid(h @ params["w_gate"][r] + params["b_gate"][r])
            msg_sum = msg_sum + jnp.where(present, gate * msg_agg, 0.0)
            count = count + jnp.where(present, 1.0, 0.0)
        h_new = msg_sum / jnp.maximum(count, 1.0)
        pre = h + h_new
        mu = pre.mean(-1, keepdims=True)
        var = ((pre - mu) ** 2).mean(-1, keepdims=True)
        h_ln = (pre - mu) * jax.lax.rsqrt(var + LN_EPS) * params["ln_g"][layer] \
            + params["ln_b"][layer]
        h = jnp.where(count > 0.0, jax.nn.relu(h_ln), h)
    return h @ params["w_out"] + params["b_out"]


if __name__ == "__main__":
    key = jax.random.PRNGKey(0)
    kx, ks, kd, kt, kp = jax.random.split(key, 5)

    B = 4          # batch of graphs over the parallel grid axis
    E = 48         # edges per graph

    x = jax.random.normal(kx, (B, N_NODES, IN_DIM), jnp.float32)
    src = jax.random.randint(ks, (B, E), 0, N_NODES)
    dst = jax.random.randint(kd, (B, E), 0, N_NODES)
    etype = jax.random.randint(kt, (B, E), 0, N_REL)
    # last graph has no relation-2 edges -> exercises the pl.when skip path
    etype = etype.at[B - 1].set(jnp.minimum(etype[B - 1], 1))

    # dense per-relation adjacency: adj[b, r, dst, src] = multiplicity
    bidx = jnp.broadcast_to(jnp.arange(B)[:, None], (B, E))
    adj = jnp.zeros((B, N_REL, N_NODES, N_NODES), jnp.float32)
    adj = adj.at[bidx, etype, dst, src].add(1.0)

    params = init_params(kp)

    # ---- one-time packing, hoisted out of the forward call path -------------
    w_slab, b_slab = pack_params(params)
    graph_slab, rel_meta = pack_graphs(x, adj)

    fwd = jax.jit(relation_gated_gnn)
    out = fwd(graph_slab, rel_meta, w_slab, b_slab)
    out = jax.block_until_ready(out)

    ref = jnp.stack([reference(x[b], src[b], dst[b], etype[b], params)
                     for b in range(B)])

    assert out.shape == (B, N_NODES, OUT_DIM)
    assert bool(jnp.all(jnp.isfinite(out)))
    assert bool(jnp.allclose(out, ref, atol=2e-3, rtol=2e-3)), (
        f"max abs err {float(jnp.max(jnp.abs(out - ref)))}")

    print("KERNEL_OK")
</pallas_src>

<mosaic_0001>
module attributes {stable_mosaic.version = 11 : i64} {
  func.func @_gnn_kernel(%arg0: i32, %arg1: memref<4x4xi32, #tpu.memory_space<smem>>, %arg2: memref<1x16x128xf32, #tpu.memory_space<vmem>>, %arg3: memref<72x256xf32, #tpu.memory_space<vmem>>, %arg4: memref<16x128xf32, #tpu.memory_space<vmem>>, %arg5: memref<1x16x128xf32, #tpu.memory_space<vmem>>, %arg6: memref<16x32xf32, #tpu.memory_space<vmem>>, %arg7: memref<16x32xf32, #tpu.memory_space<vmem>>) attributes {dimension_semantics = [#tpu.dimension_semantics<parallel>], iteration_bounds = array<i64: 4>, scalar_prefetch = 1 : i64, scratch_operands = 2 : i64, tpu.core_type = #tpu.core_type<tc>, window_params = [{transform_indices = @transform_0, window_bounds = array<i64: 1, 16, 128>}, {pipeline_mode = #tpu.pipeline_mode<synchronous>, transform_indices = @transform_1, window_bounds = array<i64: 72, 256>}, {pipeline_mode = #tpu.pipeline_mode<synchronous>, transform_indices = @transform_2, window_bounds = array<i64: 16, 128>}, {transform_indices = @transform_3, window_bounds = array<i64: 1, 16, 128>}]} {
    %c0 = arith.constant 0 : index
    %c0_0 = arith.constant 0 : index
    %c48 = arith.constant 48 : index
    %0 = vector.load %arg2[%c0, %c0_0, %c48] : memref<1x16x128xf32, #tpu.memory_space<vmem>>, vector<1x16x8xf32>
    %1 = vector.shape_cast %0 : vector<1x16x8xf32> to vector<16x8xf32>
    %c0_1 = arith.constant 0 : index
    %c0_2 = arith.constant 0 : index
    %2 = vector.load %arg3[%c0_1, %c0_2] : memref<72x256xf32, #tpu.memory_space<vmem>>, vector<8x32xf32>
    %c0_3 = arith.constant 0 : index
    %c0_4 = arith.constant 0 : index
    %3 = vector.load %arg4[%c0_3, %c0_4] : memref<16x128xf32, #tpu.memory_space<vmem>>, vector<1x32xf32>
    %cst = arith.constant dense<0.000000e+00> : vector<16x32xf32>
    %4 = tpu.matmul %1, %2, %cst {dimension_numbers = #tpu.dot_dimension_numbers<[1], [0], [0], [1], [0, 0, 1, 1], [], []>} : vector<16x8xf32>, vector<8x32xf32>, vector<16x32xf32> -> vector<16x32xf32>
    %5 = vector.broadcast %3 : vector<1x32xf32> to vector<16x32xf32>
    %6 = arith.addf %4, %5 : vector<16x32xf32>
    %cst_5 = arith.constant 0.000000e+00 : f32
    %7 = vector.broadcast %cst_5 : f32 to vector<16x32xf32>
    %8 = arith.maximumf %6, %7 : vector<16x32xf32>
    %c0_6 = arith.constant 0 : index
    %c0_7 = arith.constant 0 : index
    %9 = vector.load %arg6[%c0_6, %c0_7] : memref<16x32xf32, #tpu.memory_space<vmem>>, vector<16x32xf32>
    tpu.vector_store %arg6[%c0_6, %c0_7], %8 {strides = array<i32>} : memref<16x32xf32, #tpu.memory_space<vmem>>, vector<16x32xf32>,
    %c0_8 = arith.constant 0 : index
    %c0_9 = arith.constant 0 : index
    %c0_10 = arith.constant 0 : index
    %10 = vector.load %arg2[%c0_8, %c0_9, %c0_10] : memref<1x16x128xf32, #tpu.memory_space<vmem>>, vector<1x16x16xf32>
    %11 = vector.shape_cast %10 : vector<1x16x16xf32> to vector<16x16xf32>
    %c0_11 = arith.constant 0 : index
    %c0_12 = arith.constant 0 : index
    %c16 = arith.constant 16 : index
    %12 = vector.load %arg2[%c0_11, %c0_12, %c16] : memref<1x16x128xf32, #tpu.memory_space<vmem>>, vector<1x16x16xf32>
    %13 = vector.shape_cast %12 : vector<1x16x16xf32> to vector<16x16xf32>
    %c0_13 = arith.constant 0 : index
    %c0_14 = arith.constant 0 : index
    %c32 = arith.constant 32 : index
    %14 = vector.load %arg2[%c0_13, %c0_14, %c32] : memref<1x16x128xf32, #tpu.memory_space<vmem>>, vector<1x16x16xf32>
    %15 = vector.shape_cast %14 : vector<1x16x16xf32> to vector<16x16xf32>
    %cst_15 = arith.constant 0.000000e+00 : f32
    %16 = vector.broadcast %cst_15 : f32 to vector<16x16xf32>
    %17 = arith.cmpf ogt, %11, %16 : vector<16x16xf32>
    %cst_16 = arith.constant 0.000000e+00 : f32
    %18 = vector.broadcast %cst_16 : f32 to vector<16x16xf32>
    %19 = arith.cmpf ogt, %13, %18 : vector<16x16xf32>
    %cst_17 = arith.constant 0.000000e+00 : f32
    %20 = vector.broadcast %cst_17 : f32 to vector<16x16xf32>
    %21 = arith.cmpf ogt, %15, %20 : vector<16x16xf32>
    %c4 = arith.constant 4 : index
    %c0_18 = arith.constant 0 : index
    %22 = vector.load %arg4[%c4, %c0_18] : memref<16x128xf32, #tpu.memory_space<vmem>>, vector<1x1xf32>
    %c4_19 = arith.constant 4 : index
    %c1 = arith.constant 1 : index
    %23 = vector.load %arg4[%c4_19, %c1] : memref<16x128xf32, #tpu.memory_space<vmem>>, vector<1x1xf32>
    %c4_20 = arith.constant 4 : index
    %c2 = arith.constant 2 : index
    %24 = vector.load %arg4[%c4_20, %c2] : memref<16x128xf32, #tpu.memory_space<vmem>>, vector<1x1xf32>
    %c1_21 = arith.constant 1 : index
    %c0_22 = arith.constant 0 : index
    %25 = vector.load %arg4[%c1_21, %c0_22] : memref<16x128xf32, #tpu.memory_space<vmem>>, vector<1x32xf32>
    %c2_23 = arith.constant 2 : index
    %c0_24 = arith.constant 0 : index
    %26 = vector.load %arg4[%c2_23, %c0_24] : memref<16x128xf32, #tpu.memory_space<vmem>>, vector<1x32xf32>
    %c3 = arith.constant 3 : index
    %c0_25 = arith.constant 0 : index
    %27 = vector.load %arg4[%c3, %c0_25] : memref<16x128xf32, #tpu.memory_space<vmem>>, vector<1x32xf32>
    %c8 = arith.constant 8 : index
    %c0_26 = arith.constant 0 : index
    %28 = vector.load %arg3[%c8, %c0_26] : memref<72x256xf32, #tpu.memory_space<vmem>>, vector<32x256xf32>
    %29 = arith.index_cast %arg0 : i32 to index
    %c3_27 = arith.constant 3 : index
    %30 = memref.load %arg1[%29, %c3_27] : memref<4x4xi32, #tpu.memory_space<smem>>
    %c0_i32 = arith.constant 0 : i32
    %31 = arith.cmpi sgt, %30, %c0_i32 : i32
    %32 = vector.broadcast %30 : i32 to vector<1x1xi32>
    %33 = arith.sitofp %32 : vector<1x1xi32> to vector<1x1xf32>
    %cst_28 = arith.constant 1.000000e+00 : f32
    %34 = vector.broadcast %cst_28 : f32 to vector<1x1xf32>
    %35 = arith.maximumf %33, %34 : vector<1x1xf32>
    %cst_29 = arith.constant 1.000000e+00 : f32
    %36 = vector.broadcast %cst_29 : f32 to vector<1x1xf32>
    %37 = arith.divf %36, %35 : vector<1x1xf32>
    %c6 = arith.constant 6 : index
    %c0_30 = arith.constant 0 : index
    %38 = vector.load %arg4[%c6, %c0_30] : memref<16x128xf32, #tpu.memory_space<vmem>>, vector<1x32xf32>
    %c9 = arith.constant 9 : index
    %c0_31 = arith.constant 0 : index
    %39 = vector.load %arg4[%c9, %c0_31] : memref<16x128xf32, #tpu.memory_space<vmem>>, vector<1x32xf32>
    %40 = arith.extui %31 : i1 to i32
    %c0_i32_32 = arith.constant 0 : i32
    %41 = arith.cmpi ne, %40, %c0_i32_32 : i32
    scf.if %41 {
      %c0_48 = arith.constant 0 : index
      %c0_49 = arith.constant 0 : index
      %59 = vector.load %arg6[%c0_48, %c0_49] : memref<16x32xf32, #tpu.memory_space<vmem>>, vector<16x32xf32>
      %cst_50 = arith.constant dense<0.000000e+00> : vector<16x256xf32>
      %60 = tpu.matmul %59, %28, %cst_50 {dimension_numbers = #tpu.dot_dimension_numbers<[1], [0], [0], [1], [0, 0, 1, 1], [], []>} : vector<16x32xf32>, vector<32x256xf32>, vector<16x256xf32> -> vector<16x256xf32>
      %61 = vector.extract_strided_slice %60 {offsets = [0, 192], sizes = [16, 3], strides = [1, 1]} : vector<16x256xf32> to vector<16x3xf32>
      %62 = tpu.transpose %61, [1, 0] : vector<16x3xf32> -> vector<3x16xf32>
      %cst_51 = arith.constant 0.000000e+00 : f32
      %63 = vector.broadcast %cst_51 : f32 to vector<16x32xf32>
      %c0_52 = arith.constant 0 : index
      %c0_53 = arith.constant 0 : index
      %64 = vector.load %arg7[%c0_52, %c0_53] : memref<16x32xf32, #tpu.memory_space<vmem>>, vector<16x32xf32>
      tpu.vector_store %arg7[%c0_52, %c0_53], %63 {strides = array<i32>} : memref<16x32xf32, #tpu.memory_space<vmem>>, vector<16x32xf32>,
      %65 = arith.index_cast %arg0 : i32 to index
      %c0_54 = arith.constant 0 : index
      %66 = memref.load %arg1[%65, %c0_54] : memref<4x4xi32, #tpu.memory_space<smem>>
      %c0_i32_55 = arith.constant 0 : i32
      %67 = arith.cmpi sgt, %66, %c0_i32_55 : i32
      %68 = arith.extui %67 : i1 to i32
      %c0_i32_56 = arith.constant 0 : i32
      %69 = arith.cmpi ne, %68, %c0_i32_56 : i32
      scf.if %69 {
        %109 = vector.extract_strided_slice %60 {offsets = [0, 195], sizes = [16, 1], strides = [1, 1]} : vector<16x256xf32> to vector<16x1xf32>
        %110 = vector.extract_strided_slice %62 {offsets = [0, 0], sizes = [1, 16], strides = [1, 1]} : vector<3x16xf32> to vector<1x16xf32>
        %111 = vector.broadcast %109 : vector<16x1xf32> to vector<16x16xf32>
        %112 = vector.broadcast %110 : vector<1x16xf32> to vector<16x16xf32>
        %113 = arith.addf %111, %112 : vector<16x16xf32>
        %114 = vector.broadcast %22 : vector<1x1xf32> to vector<16x16xf32>
        %115 = arith.addf %113, %114 : vector<16x16xf32>
        %cst_73 = arith.constant 0.000000e+00 : f32
        %116 = vector.broadcast %cst_73 : f32 to vector<16x16xf32>
        %117 = arith.cmpf ogt, %115, %116 : vector<16x16xf32>
        %cst_74 = arith.constant 2.000000e-01 : f32
        %118 = vector.broadcast %cst_74 : f32 to vector<16x16xf32>
        %119 = arith.mulf %118, %115 : vector<16x16xf32>
        %120 = arith.select %117, %115, %119 : vector<16x16xi1>, vector<16x16xf32>
        %cst_75 = arith.constant -1.000000e+30 : f32
        %121 = vector.broadcast %cst_75 : f32 to vector<16x16xf32>
        %122 = arith.select %17, %120, %121 : vector<16x16xi1>, vector<16x16xf32>
        %cst_76 = arith.constant dense<0xFF800000> : vector<16xf32>
        %123 = vector.multi_reduction <maximumf>, %122, %cst_76 [1] : vector<16x16xf32> to vector<16xf32>
        %124 = vector.shape_cast %123 : vector<16xf32> to vector<16x1xf32>
        %cst_77 = arith.constant dense<0xFF800000> : vector<1xf32>
        %125 = vector.multi_reduction <maximumf>, %124, %cst_77 [0] : vector<16x1xf32> to vector<1xf32>
        %126 = vector.shape_cast %125 : vector<1xf32> to vector<1x1xf32>
        %127 = vector.broadcast %126 : vector<1x1xf32> to vector<16x16xf32>
        %128 = arith.subf %122, %127 : vector<16x16xf32>
        %129 = math.exp %128 : vector<16x16xf32>
        %130 = arith.mulf %11, %129 : vector<16x16xf32>
        %cst_78 = arith.constant dense<0.000000e+00> : vector<16xf32>
        %131 = vector.multi_reduction <add>, %130, %cst_78 [1] : vector<16x16xf32> to vector<16xf32>
        %132 = vector.shape_cast %131 : vector<16xf32> to vector<16x1xf32>
        %cst_79 = arith.constant dense<0.000000e+00> : vector<1xf32>
        %133 = vector.multi_reduction <add>, %132, %cst_79 [0] : vector<16x1xf32> to vector<1xf32>
        %134 = vector.shape_cast %133 : vector<1xf32> to vector<1x1xf32>
        %135 = tpu.reciprocal %134 {approx = true} : vector<1x1xf32> -> vector<1x1xf32>
        %136 = vector.broadcast %135 : vector<1x1xf32> to vector<16x16xf32>
        %137 = arith.mulf %130, %136 : vector<16x16xf32>
        %138 = vector.extract_strided_slice %60 {offsets = [0, 0], sizes = [16, 32], strides = [1, 1]} : vector<16x256xf32> to vector<16x32xf32>
        %cst_80 = arith.constant dense<0.000000e+00> : vector<16x32xf32>
        %139 = tpu.matmul %137, %138, %cst_80 {dimension_numbers = #tpu.dot_dimension_numbers<[1], [0], [0], [1], [0, 0, 1, 1], [], []>} : vector<16x16xf32>, vector<16x32xf32>, vector<16x32xf32> -> vector<16x32xf32>
        %140 = vector.extract_strided_slice %60 {offsets = [0, 96], sizes = [16, 32], strides = [1, 1]} : vector<16x256xf32> to vector<16x32xf32>
        %141 = vector.broadcast %25 : vector<1x32xf32> to vector<16x32xf32>
        %142 = arith.addf %140, %141 : vector<16x32xf32>
        %143 = arith.negf %142 : vector<16x32xf32>
        %144 = math.exp %143 : vector<16x32xf32>
        %cst_81 = arith.constant 1.000000e+00 : f32
        %145 = vector.broadcast %cst_81 : f32 to vector<16x32xf32>
        %146 = arith.addf %145, %144 : vector<16x32xf32>
        %147 = arith.divf %145, %146 : vector<16x32xf32>
        %c0_82 = arith.constant 0 : index
        %c0_83 = arith.constant 0 : index
        %148 = vector.load %arg7[%c0_82, %c0_83] : memref<16x32xf32, #tpu.memory_space<vmem>>, vector<16x32xf32>
        %149 = arith.mulf %147, %139 : vector<16x32xf32>
        %150 = arith.addf %148, %149 : vector<16x32xf32>
        %c0_84 = arith.constant 0 : index
        %c0_85 = arith.constant 0 : index
        %151 = vector.load %arg7[%c0_84, %c0_85] : memref<16x32xf32, #tpu.memory_space<vmem>>, vector<16x32xf32>
        tpu.vector_store %arg7[%c0_84, %c0_85], %150 {strides = array<i32>} : memref<16x32xf32, #tpu.memory_space<vmem>>, vector<16x32xf32>,
      } else {
      }
      %70 = arith.index_cast %arg0 : i32 to index
      %c1_57 = arith.constant 1 : index
      %71 = memref.load %arg1[%70, %c1_57] : memref<4x4xi32, #tpu.memory_space<smem>>
      %c0_i32_58 = arith.constant 0 : i32
      %72 = arith.cmpi sgt, %71, %c0_i32_58 : i32
      %73 = arith.extui %72 : i1 to i32
      %c0_i32_59 = arith.constant 0 : i32
      %74 = arith.cmpi ne, %73, %c0_i32_59 : i32
      scf.if %74 {
        %109 = vector.extract_strided_slice %60 {offsets = [0, 196], sizes = [16, 1], strides = [1, 1]} : vector<16x256xf32> to vector<16x1xf32>
        %110 = vector.extract_strided_slice %62 {offsets = [1, 0], sizes = [1, 16], strides = [1, 1]} : vector<3x16xf32> to vector<1x16xf32>
        %111 = vector.broadcast %109 : vector<16x1xf32> to vector<16x16xf32>
        %112 = vector.broadcast %110 : vector<1x16xf32> to vector<16x16xf32>
        %113 = arith.addf %111, %112 : vector<16x16xf32>
        %114 = vector.broadcast %23 : vector<1x1xf32> to vector<16x16xf32>
        %115 = arith.addf %113, %114 : vector<16x16xf32>
        %cst_73 = arith.constant 0.000000e+00 : f32
        %116 = vector.broadcast %cst_73 : f32 to vector<16x16xf32>
        %117 = arith.cmpf ogt, %115, %116 : vector<16x16xf32>
        %cst_74 = arith.constant 2.000000e-01 : f32
        %118 = vector.broadcast %cst_74 : f32 to vector<16x16xf32>
        %119 = arith.mulf %118, %115 : vector<16x16xf32>
        %120 = arith.select %117, %115, %119 : vector<16x16xi1>, vector<16x16xf32>
        %cst_75 = arith.constant -1.000000e+30 : f32
        %121 = vector.broadcast %cst_75 : f32 to vector<16x16xf32>
        %122 = arith.select %19, %120, %121 : vector<16x16xi1>, vector<16x16xf32>
        %cst_76 = arith.constant dense<0xFF800000> : vector<16xf32>
        %123 = vector.multi_reduction <maximumf>, %122, %cst_76 [1] : vector<16x16xf32> to vector<16xf32>
        %124 = vector.shape_cast %123 : vector<16xf32> to vector<16x1xf32>
        %cst_77 = arith.constant dense<0xFF800000> : vector<1xf32>
        %125 = vector.multi_reduction <maximumf>, %124, %cst_77 [0] : vector<16x1xf32> to vector<1xf32>
        %126 = vector.shape_cast %125 : vector<1xf32> to vector<1x1xf32>
        %127 = vector.broadcast %126 : vector<1x1xf32> to vector<16x16xf32>
        %128 = arith.subf %122, %127 : vector<16x16xf32>
        %129 = math.exp %128 : vector<16x16xf32>
        %130 = arith.mulf %13, %129 : vector<16x16xf32>
        %cst_78 = arith.constant dense<0.000000e+00> : vector<16xf32>
        %131 = vector.multi_reduction <add>, %130, %cst_78 [1] : vector<16x16xf32> to vector<16xf32>
        %132 = vector.shape_cast %131 : vector<16xf32> to vector<16x1xf32>
        %cst_79 = arith.constant dense<0.000000e+00> : vector<1xf32>
        %133 = vector.multi_reduction <add>, %132, %cst_79 [0] : vector<16x1xf32> to vector<1xf32>
        %134 = vector.shape_cast %133 : vector<1xf32> to vector<1x1xf32>
        %135 = tpu.reciprocal %134 {approx = true} : vector<1x1xf32> -> vector<1x1xf32>
        %136 = vector.broadcast %135 : vector<1x1xf32> to vector<16x16xf32>
        %137 = arith.mulf %130, %136 : vector<16x16xf32>
        %138 = vector.extract_strided_slice %60 {offsets = [0, 32], sizes = [16, 32], strides = [1, 1]} : vector<16x256xf32> to vector<16x32xf32>
        %cst_80 = arith.constant dense<0.000000e+00> : vector<16x32xf32>
        %139 = tpu.matmul %137, %138, %cst_80 {dimension_numbers = #tpu.dot_dimension_numbers<[1], [0], [0], [1], [0, 0, 1, 1], [], []>} : vector<16x16xf32>, vector<16x32xf32>, vector<16x32xf32> -> vector<16x32xf32>
        %140 = vector.extract_strided_slice %60 {offsets = [0, 128], sizes = [16, 32], strides = [1, 1]} : vector<16x256xf32> to vector<16x32xf32>
        %141 = vector.broadcast %26 : vector<1x32xf32> to vector<16x32xf32>
        %142 = arith.addf %140, %141 : vector<16x32xf32>
        %143 = arith.negf %142 : vector<16x32xf32>
        %144 = math.exp %143 : vector<16x32xf32>
        %cst_81 = arith.constant 1.000000e+00 : f32
        %145 = vector.broadcast %cst_81 : f32 to vector<16x32xf32>
        %146 = arith.addf %145, %144 : vector<16x32xf32>
        %147 = arith.divf %145, %146 : vector<16x32xf32>
        %c0_82 = arith.constant 0 : index
        %c0_83 = arith.constant 0 : index
        %148 = vector.load %arg7[%c0_82, %c0_83] : memref<16x32xf32, #tpu.memory_space<vmem>>, vector<16x32xf32>
        %149 = arith.mulf %147, %139 : vector<16x32xf32>
        %150 = arith.addf %148, %149 : vector<16x32xf32>
        %c0_84 = arith.constant 0 : index
        %c0_85 = arith.constant 0 : index
        %151 = vector.load %arg7[%c0_84, %c0_85] : memref<16x32xf32, #tpu.memory_space<vmem>>, vector<16x32xf32>
        tpu.vector_store %arg7[%c0_84, %c0_85], %150 {strides = array<i32>} : memref<16x32xf32, #tpu.memory_space<vmem>>, vector<16x32xf32>,
      } else {
      }
      %75 = arith.index_cast %arg0 : i32 to index
      %c2_60 = arith.constant 2 : index
      %76 = memref.load %arg1[%75, %c2_60] : memref<4x4xi32, #tpu.memory_space<smem>>
      %c0_i32_61 = arith.constant 0 : i32
      %77 = arith.cmpi sgt, %76, %c0_i32_61 : i32
      %78 = arith.extui %77 : i1 to i32
      %c0_i32_62 = arith.constant 0 : i32
      %79 = arith.cmpi ne, %78, %c0_i32_62 : i32
      scf.if %79 {
        %109 = vector.extract_strided_slice %60 {offsets = [0, 197], sizes = [16, 1], strides = [1, 1]} : vector<16x256xf32> to vector<16x1xf32>
        %110 = vector.extract_strided_slice %62 {offsets = [2, 0], sizes = [1, 16], strides = [1, 1]} : vector<3x16xf32> to vector<1x16xf32>
        %111 = vector.broadcast %109 : vector<16x1xf32> to vector<16x16xf32>
        %112 = vector.broadcast %110 : vector<1x16xf32> to vector<16x16xf32>
        %113 = arith.addf %111, %112 : vector<16x16xf32>
        %114 = vector.broadcast %24 : vector<1x1xf32> to vector<16x16xf32>
        %115 = arith.addf %113, %114 : vector<16x16xf32>
        %cst_73 = arith.constant 0.000000e+00 : f32
        %116 = vector.broadcast %cst_73 : f32 to vector<16x16xf32>
        %117 = arith.cmpf ogt, %115, %116 : vector<16x16xf32>
        %cst_74 = arith.constant 2.000000e-01 : f32
        %118 = vector.broadcast %cst_74 : f32 to vector<16x16xf32>
        %119 = arith.mulf %118, %115 : vector<16x16xf32>
        %120 = arith.select %117, %115, %119 : vector<16x16xi1>, vector<16x16xf32>
        %cst_75 = arith.constant -1.000000e+30 : f32
        %121 = vector.broadcast %cst_75 : f32 to vector<16x16xf32>
        %122 = arith.select %21, %120, %121 : vector<16x16xi1>, vector<16x16xf32>
        %cst_76 = arith.constant dense<0xFF800000> : vector<16xf32>
        %123 = vector.multi_reduction <maximumf>, %122, %cst_76 [1] : vector<16x16xf32> to vector<16xf32>
        %124 = vector.shape_cast %123 : vector<16xf32> to vector<16x1xf32>
        %cst_77 = arith.constant dense<0xFF800000> : vector<1xf32>
        %125 = vector.multi_reduction <maximumf>, %124, %cst_77 [0] : vector<16x1xf32> to vector<1xf32>
        %126 = vector.shape_cast %125 : vector<1xf32> to vector<1x1xf32>
        %127 = vector.broadcast %126 : vector<1x1xf32> to vector<16x16xf32>
        %128 = arith.subf %122, %127 : vector<16x16xf32>
        %129 = math.exp %128 : vector<16x16xf32>
        %130 = arith.mulf %15, %129 : vector<16x16xf32>
        %cst_78 = arith.constant dense<0.000000e+00> : vector<16xf32>
        %131 = vector.multi_reduction <add>, %130, %cst_78 [1] : vector<16x16xf32> to vector<16xf32>
        %132 = vector.shape_cast %131 : vector<16xf32> to vector<16x1xf32>
        %cst_79 = arith.constant dense<0.000000e+00> : vector<1xf32>
        %133 = vector.multi_reduction <add>, %132, %cst_79 [0] : vector<16x1xf32> to vector<1xf32>
        %134 = vector.shape_cast %133 : vector<1xf32> to vector<1x1xf32>
        %135 = tpu.reciprocal %134 {approx = true} : vector<1x1xf32> -> vector<1x1xf32>
        %136 = vector.broadcast %135 : vector<1x1xf32> to vector<16x16xf32>
        %137 = arith.mulf %130, %136 : vector<16x16xf32>
        %138 = vector.extract_strided_slice %60 {offsets = [0, 64], sizes = [16, 32], strides = [1, 1]} : vector<16x256xf32> to vector<16x32xf32>
        %cst_80 = arith.constant dense<0.000000e+00> : vector<16x32xf32>
        %139 = tpu.matmul %137, %138, %cst_80 {dimension_numbers = #tpu.dot_dimension_numbers<[1], [0], [0], [1], [0, 0, 1, 1], [], []>} : vector<16x16xf32>, vector<16x32xf32>, vector<16x32xf32> -> vector<16x32xf32>
        %140 = vector.extract_strided_slice %60 {offsets = [0, 160], sizes = [16, 32], strides = [1, 1]} : vector<16x256xf32> to vector<16x32xf32>
        %141 = vector.broadcast %27 : vector<1x32xf32> to vector<16x32xf32>
        %142 = arith.addf %140, %141 : vector<16x32xf32>
        %143 = arith.negf %142 : vector<16x32xf32>
        %144 = math.exp %143 : vector<16x32xf32>
        %cst_81 = arith.constant 1.000000e+00 : f32
        %145 = vector.broadcast %cst_81 : f32 to vector<16x32xf32>
        %146 = arith.addf %145, %144 : vector<16x32xf32>
        %147 = arith.divf %145, %146 : vector<16x32xf32>
        %c0_82 = arith.constant 0 : index
        %c0_83 = arith.constant 0 : index
        %148 = vector.load %arg7[%c0_82, %c0_83] : memref<16x32xf32, #tpu.memory_space<vmem>>, vector<16x32xf32>
        %149 = arith.mulf %147, %139 : vector<16x32xf32>
        %150 = arith.addf %148, %149 : vector<16x32xf32>
        %c0_84 = arith.constant 0 : index
        %c0_85 = arith.constant 0 : index
        %151 = vector.load %arg7[%c0_84, %c0_85] : memref<16x32xf32, #tpu.memory_space<vmem>>, vector<16x32xf32>
        tpu.vector_store %arg7[%c0_84, %c0_85], %150 {strides = array<i32>} : memref<16x32xf32, #tpu.memory_space<vmem>>, vector<16x32xf32>,
      } else {
      }
      %c0_63 = arith.constant 0 : index
      %c0_64 = arith.constant 0 : index
      %80 = vector.load %arg7[%c0_63, %c0_64] : memref<16x32xf32, #tpu.memory_space<vmem>>, vector<16x32xf32>
      %81 = vector.broadcast %37 : vector<1x1xf32> to vector<16x32xf32>
      %82 = arith.mulf %80, %81 : vector<16x32xf32>
      %83 = arith.addf %59, %82 : vector<16x32xf32>
      %cst_65 = arith.constant dense<0.000000e+00> : vector<16xf32>
      %84 = vector.multi_reduction <add>, %83, %cst_65 [1] : vector<16x32xf32> to vector<16xf32>
      %85 = vector.shape_cast %84 : vector<16xf32> to vector<16x1xf32>
      %cst_66 = arith.constant 3.200000e+01 : f32
      %86 = vector.broadcast %cst_66 : f32 to vector<16x1xf32>
      %87 = arith.divf %85, %86 : vector<16x1xf32>
      %88 = vector.broadcast %87 : vector<16x1xf32> to vector<16x32xf32>
      %89 = arith.subf %83, %88 : vector<16x32xf32>
      %90 = arith.mulf %89, %89 : vector<16x32xf32>
      %cst_67 = arith.constant dense<0.000000e+00> : vector<16xf32>
      %91 = vector.multi_reduction <add>, %90, %cst_67 [1] : vector<16x32xf32> to vector<16xf32>
      %92 = vector.shape_cast %91 : vector<16xf32> to vector<16x1xf32>
      %cst_68 = arith.constant 3.200000e+01 : f32
      %93 = vector.broadcast %cst_68 : f32 to vector<16x1xf32>
      %94 = arith.divf %92, %93 : vector<16x1xf32>
      %95 = vector.broadcast %87 : vector<16x1xf32> to vector<16x32xf32>
      %96 = arith.subf %83, %95 : vector<16x32xf32>
      %cst_69 = arith.constant 9.99999974E-6 : f32
      %97 = vector.broadcast %cst_69 : f32 to vector<16x1xf32>
      %98 = arith.addf %94, %97 : vector<16x1xf32>
      %99 = math.rsqrt %98 : vector<16x1xf32>
      %100 = vector.broadcast %99 : vector<16x1xf32> to vector<16x32xf32>
      %101 = arith.mulf %96, %100 : vector<16x32xf32>
      %102 = vector.broadcast %38 : vector<1x32xf32> to vector<16x32xf32>
      %103 = arith.mulf %101, %102 : vector<16x32xf32>
      %104 = vector.broadcast %39 : vector<1x32xf32> to vector<16x32xf32>
      %105 = arith.addf %103, %104 : vector<16x32xf32>
      %cst_70 = arith.constant 0.000000e+00 : f32
      %106 = vector.broadcast %cst_70 : f32 to vector<16x32xf32>
      %107 = arith.maximumf %105, %106 : vector<16x32xf32>
      %c0_71 = arith.constant 0 : index
      %c0_72 = arith.constant 0 : index
      %108 = vector.load %arg6[%c0_71, %c0_72] : memref<16x32xf32, #tpu.memory_space<vmem>>, vector<16x32xf32>
      tpu.vector_store %arg6[%c0_71, %c0_72], %107 {strides = array<i32>} : memref<16x32xf32, #tpu.memory_space<vmem>>, vector<16x32xf32>,
    } else {
    }
    %c7 = arith.constant 7 : index
    %c0_33 = arith.constant 0 : index
    %42 = vector.load %arg4[%c7, %c0_33] : memref<16x128xf32, #tpu.memory_space<vmem>>, vector<1x32xf32>
    %c10 = arith.constant 10 : index
    %c0_34 = arith.constant 0 : index
    %43 = vector.load %arg4[%c10, %c0_34] : memref<16x128xf32, #tpu.memory_space<vmem>>, vector<1x32xf32>
    %44 = arith.extui %31 : i1 to i32
    %c0_i32_35 = arith.constant 0 : i32
    %45 = arith.cmpi ne, %44, %c0_i32_35 : i32
    scf.if %45 {
      %c0_48 = arith.constant 0 : index
      %c0_49 = arith.constant 0 : index
      %59 = vector.load %arg6[%c0_48, %c0_49] : memref<16x32xf32, #tpu.memory_space<vmem>>, vector<16x32xf32>
      %cst_50 = arith.constant dense<0.000000e+00> : vector<16x256xf32>
      %60 = tpu.matmul %59, %28, %cst_50 {dimension_numbers = #tpu.dot_dimension_numbers<[1], [0], [0], [1], [0, 0, 1, 1], [], []>} : vector<16x32xf32>, vector<32x256xf32>, vector<16x256xf32> -> vector<16x256xf32>
      %61 = vector.extract_strided_slice %60 {offsets = [0, 192], sizes = [16, 3], strides = [1, 1]} : vector<16x256xf32> to vector<16x3xf32>
      %62 = tpu.transpose %61, [1, 0] : vector<16x3xf32> -> vector<3x16xf32>
      %cst_51 = arith.constant 0.000000e+00 : f32
      %63 = vector.broadcast %cst_51 : f32 to vector<16x32xf32>
      %c0_52 = arith.constant 0 : index
      %c0_53 = arith.constant 0 : index
      %64 = vector.load %arg7[%c0_52, %c0_53] : memref<16x32xf32, #tpu.memory_space<vmem>>, vector<16x32xf32>
      tpu.vector_store %arg7[%c0_52, %c0_53], %63 {strides = array<i32>} : memref<16x32xf32, #tpu.memory_space<vmem>>, vector<16x32xf32>,
      %65 = arith.index_cast %arg0 : i32 to index
      %c0_54 = arith.constant 0 : index
      %66 = memref.load %arg1[%65, %c0_54] : memref<4x4xi32, #tpu.memory_space<smem>>
      %c0_i32_55 = arith.constant 0 : i32
      %67 = arith.cmpi sgt, %66, %c0_i32_55 : i32
      %68 = arith.extui %67 : i1 to i32
      %c0_i32_56 = arith.constant 0 : i32
      %69 = arith.cmpi ne, %68, %c0_i32_56 : i32
      scf.if %69 {
        %109 = vector.extract_strided_slice %60 {offsets = [0, 195], sizes = [16, 1], strides = [1, 1]} : vector<16x256xf32> to vector<16x1xf32>
        %110 = vector.extract_strided_slice %62 {offsets = [0, 0], sizes = [1, 16], strides = [1, 1]} : vector<3x16xf32> to vector<1x16xf32>
        %111 = vector.broadcast %109 : vector<16x1xf32> to vector<16x16xf32>
        %112 = vector.broadcast %110 : vector<1x16xf32> to vector<16x16xf32>
        %113 = arith.addf %111, %112 : vector<16x16xf32>
        %114 = vector.broadcast %22 : vector<1x1xf32> to vector<16x16xf32>
        %115 = arith.addf %113, %114 : vector<16x16xf32>
        %cst_73 = arith.constant 0.000000e+00 : f32
        %116 = vector.broadcast %cst_73 : f32 to vector<16x16xf32>
        %117 = arith.cmpf ogt, %115, %116 : vector<16x16xf32>
        %cst_74 = arith.constant 2.000000e-01 : f32
        %118 = vector.broadcast %cst_74 : f32 to vector<16x16xf32>
        %119 = arith.mulf %118, %115 : vector<16x16xf32>
        %120 = arith.select %117, %115, %119 : vector<16x16xi1>, vector<16x16xf32>
        %cst_75 = arith.constant -1.000000e+30 : f32
        %121 = vector.broadcast %cst_75 : f32 to vector<16x16xf32>
        %122 = arith.select %17, %120, %121 : vector<16x16xi1>, vector<16x16xf32>
        %cst_76 = arith.constant dense<0xFF800000> : vector<16xf32>
        %123 = vector.multi_reduction <maximumf>, %122, %cst_76 [1] : vector<16x16xf32> to vector<16xf32>
        %124 = vector.shape_cast %123 : vector<16xf32> to vector<16x1xf32>
        %cst_77 = arith.constant dense<0xFF800000> : vector<1xf32>
        %125 = vector.multi_reduction <maximumf>, %124, %cst_77 [0] : vector<16x1xf32> to vector<1xf32>
        %126 = vector.shape_cast %125 : vector<1xf32> to vector<1x1xf32>
        %127 = vector.broadcast %126 : vector<1x1xf32> to vector<16x16xf32>
        %128 = arith.subf %122, %127 : vector<16x16xf32>
        %129 = math.exp %128 : vector<16x16xf32>
        %130 = arith.mulf %11, %129 : vector<16x16xf32>
        %cst_78 = arith.constant dense<0.000000e+00> : vector<16xf32>
        %131 = vector.multi_reduction <add>, %130, %cst_78 [1] : vector<16x16xf32> to vector<16xf32>
        %132 = vector.shape_cast %131 : vector<16xf32> to vector<16x1xf32>
        %cst_79 = arith.constant dense<0.000000e+00> : vector<1xf32>
        %133 = vector.multi_reduction <add>, %132, %cst_79 [0] : vector<16x1xf32> to vector<1xf32>
        %134 = vector.shape_cast %133 : vector<1xf32> to vector<1x1xf32>
        %135 = tpu.reciprocal %134 {approx = true} : vector<1x1xf32> -> vector<1x1xf32>
        %136 = vector.broadcast %135 : vector<1x1xf32> to vector<16x16xf32>
        %137 = arith.mulf %130, %136 : vector<16x16xf32>
        %138 = vector.extract_strided_slice %60 {offsets = [0, 0], sizes = [16, 32], strides = [1, 1]} : vector<16x256xf32> to vector<16x32xf32>
        %cst_80 = arith.constant dense<0.000000e+00> : vector<16x32xf32>
        %139 = tpu.matmul %137, %138, %cst_80 {dimension_numbers = #tpu.dot_dimension_numbers<[1], [0], [0], [1], [0, 0, 1, 1], [], []>} : vector<16x16xf32>, vector<16x32xf32>, vector<16x32xf32> -> vector<16x32xf32>
        %140 = vector.extract_strided_slice %60 {offsets = [0, 96], sizes = [16, 32], strides = [1, 1]} : vector<16x256xf32> to vector<16x32xf32>
        %141 = vector.broadcast %25 : vector<1x32xf32> to vector<16x32xf32>
        %142 = arith.addf %140, %141 : vector<16x32xf32>
        %143 = arith.negf %142 : vector<16x32xf32>
        %144 = math.exp %143 : vector<16x32xf32>
        %cst_81 = arith.constant 1.000000e+00 : f32
        %145 = vector.broadcast %cst_81 : f32 to vector<16x32xf32>
        %146 = arith.addf %145, %144 : vector<16x32xf32>
        %147 = arith.divf %145, %146 : vector<16x32xf32>
        %c0_82 = arith.constant 0 : index
        %c0_83 = arith.constant 0 : index
        %148 = vector.load %arg7[%c0_82, %c0_83] : memref<16x32xf32, #tpu.memory_space<vmem>>, vector<16x32xf32>
        %149 = arith.mulf %147, %139 : vector<16x32xf32>
        %150 = arith.addf %148, %149 : vector<16x32xf32>
        %c0_84 = arith.constant 0 : index
        %c0_85 = arith.constant 0 : index
        %151 = vector.load %arg7[%c0_84, %c0_85] : memref<16x32xf32, #tpu.memory_space<vmem>>, vector<16x32xf32>
        tpu.vector_store %arg7[%c0_84, %c0_85], %150 {strides = array<i32>} : memref<16x32xf32, #tpu.memory_space<vmem>>, vector<16x32xf32>,
      } else {
      }
      %70 = arith.index_cast %arg0 : i32 to index
      %c1_57 = arith.constant 1 : index
      %71 = memref.load %arg1[%70, %c1_57] : memref<4x4xi32, #tpu.memory_space<smem>>
      %c0_i32_58 = arith.constant 0 : i32
      %72 = arith.cmpi sgt, %71, %c0_i32_58 : i32
      %73 = arith.extui %72 : i1 to i32
      %c0_i32_59 = arith.constant 0 : i32
      %74 = arith.cmpi ne, %73, %c0_i32_59 : i32
      scf.if %74 {
        %109 = vector.extract_strided_slice %60 {offsets = [0, 196], sizes = [16, 1], strides = [1, 1]} : vector<16x256xf32> to vector<16x1xf32>
        %110 = vector.extract_strided_slice %62 {offsets = [1, 0], sizes = [1, 16], strides = [1, 1]} : vector<3x16xf32> to vector<1x16xf32>
        %111 = vector.broadcast %109 : vector<16x1xf32> to vector<16x16xf32>
        %112 = vector.broadcast %110 : vector<1x16xf32> to vector<16x16xf32>
        %113 = arith.addf %111, %112 : vector<16x16xf32>
        %114 = vector.broadcast %23 : vector<1x1xf32> to vector<16x16xf32>
        %115 = arith.addf %113, %114 : vector<16x16xf32>
        %cst_73 = arith.constant 0.000000e+00 : f32
        %116 = vector.broadcast %cst_73 : f32 to vector<16x16xf32>
        %117 = arith.cmpf ogt, %115, %116 : vector<16x16xf32>
        %cst_74 = arith.constant 2.000000e-01 : f32
        %118 = vector.broadcast %cst_74 : f32 to vector<16x16xf32>
        %119 = arith.mulf %118, %115 : vector<16x16xf32>
        %120 = arith.select %117, %115, %119 : vector<16x16xi1>, vector<16x16xf32>
        %cst_75 = arith.constant -1.000000e+30 : f32
        %121 = vector.broadcast %cst_75 : f32 to vector<16x16xf32>
        %122 = arith.select %19, %120, %121 : vector<16x16xi1>, vector<16x16xf32>
        %cst_76 = arith.constant dense<0xFF800000> : vector<16xf32>
        %123 = vector.multi_reduction <maximumf>, %122, %cst_76 [1] : vector<16x16xf32> to vector<16xf32>
        %124 = vector.shape_cast %123 : vector<16xf32> to vector<16x1xf32>
        %cst_77 = arith.constant dense<0xFF800000> : vector<1xf32>
        %125 = vector.multi_reduction <maximumf>, %124, %cst_77 [0] : vector<16x1xf32> to vector<1xf32>
        %126 = vector.shape_cast %125 : vector<1xf32> to vector<1x1xf32>
        %127 = vector.broadcast %126 : vector<1x1xf32> to vector<16x16xf32>
        %128 = arith.subf %122, %127 : vector<16x16xf32>
        %129 = math.exp %128 : vector<16x16xf32>
        %130 = arith.mulf %13, %129 : vector<16x16xf32>
        %cst_78 = arith.constant dense<0.000000e+00> : vector<16xf32>
        %131 = vector.multi_reduction <add>, %130, %cst_78 [1] : vector<16x16xf32> to vector<16xf32>
        %132 = vector.shape_cast %131 : vector<16xf32> to vector<16x1xf32>
        %cst_79 = arith.constant dense<0.000000e+00> : vector<1xf32>
        %133 = vector.multi_reduction <add>, %132, %cst_79 [0] : vector<16x1xf32> to vector<1xf32>
        %134 = vector.shape_cast %133 : vector<1xf32> to vector<1x1xf32>
        %135 = tpu.reciprocal %134 {approx = true} : vector<1x1xf32> -> vector<1x1xf32>
        %136 = vector.broadcast %135 : vector<1x1xf32> to vector<16x16xf32>
        %137 = arith.mulf %130, %136 : vector<16x16xf32>
        %138 = vector.extract_strided_slice %60 {offsets = [0, 32], sizes = [16, 32], strides = [1, 1]} : vector<16x256xf32> to vector<16x32xf32>
        %cst_80 = arith.constant dense<0.000000e+00> : vector<16x32xf32>
        %139 = tpu.matmul %137, %138, %cst_80 {dimension_numbers = #tpu.dot_dimension_numbers<[1], [0], [0], [1], [0, 0, 1, 1], [], []>} : vector<16x16xf32>, vector<16x32xf32>, vector<16x32xf32> -> vector<16x32xf32>
        %140 = vector.extract_strided_slice %60 {offsets = [0, 128], sizes = [16, 32], strides = [1, 1]} : vector<16x256xf32> to vector<16x32xf32>
        %141 = vector.broadcast %26 : vector<1x32xf32> to vector<16x32xf32>
        %142 = arith.addf %140, %141 : vector<16x32xf32>
        %143 = arith.negf %142 : vector<16x32xf32>
        %144 = math.exp %143 : vector<16x32xf32>
        %cst_81 = arith.constant 1.000000e+00 : f32
        %145 = vector.broadcast %cst_81 : f32 to vector<16x32xf32>
        %146 = arith.addf %145, %144 : vector<16x32xf32>
        %147 = arith.divf %145, %146 : vector<16x32xf32>
        %c0_82 = arith.constant 0 : index
        %c0_83 = arith.constant 0 : index
        %148 = vector.load %arg7[%c0_82, %c0_83] : memref<16x32xf32, #tpu.memory_space<vmem>>, vector<16x32xf32>
        %149 = arith.mulf %147, %139 : vector<16x32xf32>
        %150 = arith.addf %148, %149 : vector<16x32xf32>
        %c0_84 = arith.constant 0 : index
        %c0_85 = arith.constant 0 : index
        %151 = vector.load %arg7[%c0_84, %c0_85] : memref<16x32xf32, #tpu.memory_space<vmem>>, vector<16x32xf32>
        tpu.vector_store %arg7[%c0_84, %c0_85], %150 {strides = array<i32>} : memref<16x32xf32, #tpu.memory_space<vmem>>, vector<16x32xf32>,
      } else {
      }
      %75 = arith.index_cast %arg0 : i32 to index
      %c2_60 = arith.constant 2 : index
      %76 = memref.load %arg1[%75, %c2_60] : memref<4x4xi32, #tpu.memory_space<smem>>
      %c0_i32_61 = arith.constant 0 : i32
      %77 = arith.cmpi sgt, %76, %c0_i32_61 : i32
      %78 = arith.extui %77 : i1 to i32
      %c0_i32_62 = arith.constant 0 : i32
      %79 = arith.cmpi ne, %78, %c0_i32_62 : i32
      scf.if %79 {
        %109 = vector.extract_strided_slice %60 {offsets = [0, 197], sizes = [16, 1], strides = [1, 1]} : vector<16x256xf32> to vector<16x1xf32>
        %110 = vector.extract_strided_slice %62 {offsets = [2, 0], sizes = [1, 16], strides = [1, 1]} : vector<3x16xf32> to vector<1x16xf32>
        %111 = vector.broadcast %109 : vector<16x1xf32> to vector<16x16xf32>
        %112 = vector.broadcast %110 : vector<1x16xf32> to vector<16x16xf32>
        %113 = arith.addf %111, %112 : vector<16x16xf32>
        %114 = vector.broadcast %24 : vector<1x1xf32> to vector<16x16xf32>
        %115 = arith.addf %113, %114 : vector<16x16xf32>
        %cst_73 = arith.constant 0.000000e+00 : f32
        %116 = vector.broadcast %cst_73 : f32 to vector<16x16xf32>
        %117 = arith.cmpf ogt, %115, %116 : vector<16x16xf32>
        %cst_74 = arith.constant 2.000000e-01 : f32
        %118 = vector.broadcast %cst_74 : f32 to vector<16x16xf32>
        %119 = arith.mulf %118, %115 : vector<16x16xf32>
        %120 = arith.select %117, %115, %119 : vector<16x16xi1>, vector<16x16xf32>
        %cst_75 = arith.constant -1.000000e+30 : f32
        %121 = vector.broadcast %cst_75 : f32 to vector<16x16xf32>
        %122 = arith.select %21, %120, %121 : vector<16x16xi1>, vector<16x16xf32>
        %cst_76 = arith.constant dense<0xFF800000> : vector<16xf32>
        %123 = vector.multi_reduction <maximumf>, %122, %cst_76 [1] : vector<16x16xf32> to vector<16xf32>
        %124 = vector.shape_cast %123 : vector<16xf32> to vector<16x1xf32>
        %cst_77 = arith.constant dense<0xFF800000> : vector<1xf32>
        %125 = vector.multi_reduction <maximumf>, %124, %cst_77 [0] : vector<16x1xf32> to vector<1xf32>
        %126 = vector.shape_cast %125 : vector<1xf32> to vector<1x1xf32>
        %127 = vector.broadcast %126 : vector<1x1xf32> to vector<16x16xf32>
        %128 = arith.subf %122, %127 : vector<16x16xf32>
        %129 = math.exp %128 : vector<16x16xf32>
        %130 = arith.mulf %15, %129 : vector<16x16xf32>
        %cst_78 = arith.constant dense<0.000000e+00> : vector<16xf32>
        %131 = vector.multi_reduction <add>, %130, %cst_78 [1] : vector<16x16xf32> to vector<16xf32>
        %132 = vector.shape_cast %131 : vector<16xf32> to vector<16x1xf32>
        %cst_79 = arith.constant dense<0.000000e+00> : vector<1xf32>
        %133 = vector.multi_reduction <add>, %132, %cst_79 [0] : vector<16x1xf32> to vector<1xf32>
        %134 = vector.shape_cast %133 : vector<1xf32> to vector<1x1xf32>
        %135 = tpu.reciprocal %134 {approx = true} : vector<1x1xf32> -> vector<1x1xf32>
        %136 = vector.broadcast %135 : vector<1x1xf32> to vector<16x16xf32>
        %137 = arith.mulf %130, %136 : vector<16x16xf32>
        %138 = vector.extract_strided_slice %60 {offsets = [0, 64], sizes = [16, 32], strides = [1, 1]} : vector<16x256xf32> to vector<16x32xf32>
        %cst_80 = arith.constant dense<0.000000e+00> : vector<16x32xf32>
        %139 = tpu.matmul %137, %138, %cst_80 {dimension_numbers = #tpu.dot_dimension_numbers<[1], [0], [0], [1], [0, 0, 1, 1], [], []>} : vector<16x16xf32>, vector<16x32xf32>, vector<16x32xf32> -> vector<16x32xf32>
        %140 = vector.extract_strided_slice %60 {offsets = [0, 160], sizes = [16, 32], strides = [1, 1]} : vector<16x256xf32> to vector<16x32xf32>
        %141 = vector.broadcast %27 : vector<1x32xf32> to vector<16x32xf32>
        %142 = arith.addf %140, %141 : vector<16x32xf32>
        %143 = arith.negf %142 : vector<16x32xf32>
        %144 = math.exp %143 : vector<16x32xf32>
        %cst_81 = arith.constant 1.000000e+00 : f32
        %145 = vector.broadcast %cst_81 : f32 to vector<16x32xf32>
        %146 = arith.addf %145, %144 : vector<16x32xf32>
        %147 = arith.divf %145, %146 : vector<16x32xf32>
        %c0_82 = arith.constant 0 : index
        %c0_83 = arith.constant 0 : index
        %148 = vector.load %arg7[%c0_82, %c0_83] : memref<16x32xf32, #tpu.memory_space<vmem>>, vector<16x32xf32>
        %149 = arith.mulf %147, %139 : vector<16x32xf32>
        %150 = arith.addf %148, %149 : vector<16x32xf32>
        %c0_84 = arith.constant 0 : index
        %c0_85 = arith.constant 0 : index
        %151 = vector.load %arg7[%c0_84, %c0_85] : memref<16x32xf32, #tpu.memory_space<vmem>>, vector<16x32xf32>
        tpu.vector_store %arg7[%c0_84, %c0_85], %150 {strides = array<i32>} : memref<16x32xf32, #tpu.memory_space<vmem>>, vector<16x32xf32>,
      } else {
      }
      %c0_63 = arith.constant 0 : index
      %c0_64 = arith.constant 0 : index
      %80 = vector.load %arg7[%c0_63, %c0_64] : memref<16x32xf32, #tpu.memory_space<vmem>>, vector<16x32xf32>
      %81 = vector.broadcast %37 : vector<1x1xf32> to vector<16x32xf32>
      %82 = arith.mulf %80, %81 : vector<16x32xf32>
      %83 = arith.addf %59, %82 : vector<16x32xf32>
      %cst_65 = arith.constant dense<0.000000e+00> : vector<16xf32>
      %84 = vector.multi_reduction <add>, %83, %cst_65 [1] : vector<16x32xf32> to vector<16xf32>
      %85 = vector.shape_cast %84 : vector<16xf32> to vector<16x1xf32>
      %cst_66 = arith.constant 3.200000e+01 : f32
      %86 = vector.broadcast %cst_66 : f32 to vector<16x1xf32>
      %87 = arith.divf %85, %86 : vector<16x1xf32>
      %88 = vector.broadcast %87 : vector<16x1xf32> to vector<16x32xf32>
      %89 = arith.subf %83, %88 : vector<16x32xf32>
      %90 = arith.mulf %89, %89 : vector<16x32xf32>
      %cst_67 = arith.constant dense<0.000000e+00> : vector<16xf32>
      %91 = vector.multi_reduction <add>, %90, %cst_67 [1] : vector<16x32xf32> to vector<16xf32>
      %92 = vector.shape_cast %91 : vector<16xf32> to vector<16x1xf32>
      %cst_68 = arith.constant 3.200000e+01 : f32
      %93 = vector.broadcast %cst_68 : f32 to vector<16x1xf32>
      %94 = arith.divf %92, %93 : vector<16x1xf32>
      %95 = vector.broadcast %87 : vector<16x1xf32> to vector<16x32xf32>
      %96 = arith.subf %83, %95 : vector<16x32xf32>
      %cst_69 = arith.constant 9.99999974E-6 : f32
      %97 = vector.broadcast %cst_69 : f32 to vector<16x1xf32>
      %98 = arith.addf %94, %97 : vector<16x1xf32>
      %99 = math.rsqrt %98 : vector<16x1xf32>
      %100 = vector.broadcast %99 : vector<16x1xf32> to vector<16x32xf32>
      %101 = arith.mulf %96, %100 : vector<16x32xf32>
      %102 = vector.broadcast %42 : vector<1x32xf32> to vector<16x32xf32>
      %103 = arith.mulf %101, %102 : vector<16x32xf32>
      %104 = vector.broadcast %43 : vector<1x32xf32> to vector<16x32xf32>
      %105 = arith.addf %103, %104 : vector<16x32xf32>
      %cst_70 = arith.constant 0.000000e+00 : f32
      %106 = vector.broadcast %cst_70 : f32 to vector<16x32xf32>
      %107 = arith.maximumf %105, %106 : vector<16x32xf32>
      %c0_71 = arith.constant 0 : index
      %c0_72 = arith.constant 0 : index
      %108 = vector.load %arg6[%c0_71, %c0_72] : memref<16x32xf32, #tpu.memory_space<vmem>>, vector<16x32xf32>
      tpu.vector_store %arg6[%c0_71, %c0_72], %107 {strides = array<i32>} : memref<16x32xf32, #tpu.memory_space<vmem>>, vector<16x32xf32>,
    } else {
    }
    %c8_36 = arith.constant 8 : index
    %c0_37 = arith.constant 0 : index
    %46 = vector.load %arg4[%c8_36, %c0_37] : memref<16x128xf32, #tpu.memory_space<vmem>>, vector<1x32xf32>
    %c11 = arith.constant 11 : index
    %c0_38 = arith.constant 0 : index
    %47 = vector.load %arg4[%c11, %c0_38] : memref<16x128xf32, #tpu.memory_space<vmem>>, vector<1x32xf32>
    %48 = arith.extui %31 : i1 to i32
    %c0_i32_39 = arith.constant 0 : i32
    %49 = arith.cmpi ne, %48, %c0_i32_39 : i32
    scf.if %49 {
      %c0_48 = arith.constant 0 : index
      %c0_49 = arith.constant 0 : index
      %59 = vector.load %arg6[%c0_48, %c0_49] : memref<16x32xf32, #tpu.memory_space<vmem>>, vector<16x32xf32>
      %cst_50 = arith.constant dense<0.000000e+00> : vector<16x256xf32>
      %60 = tpu.matmul %59, %28, %cst_50 {dimension_numbers = #tpu.dot_dimension_numbers<[1], [0], [0], [1], [0, 0, 1, 1], [], []>} : vector<16x32xf32>, vector<32x256xf32>, vector<16x256xf32> -> vector<16x256xf32>
      %61 = vector.extract_strided_slice %60 {offsets = [0, 192], sizes = [16, 3], strides = [1, 1]} : vector<16x256xf32> to vector<16x3xf32>
      %62 = tpu.transpose %61, [1, 0] : vector<16x3xf32> -> vector<3x16xf32>
      %cst_51 = arith.constant 0.000000e+00 : f32
      %63 = vector.broadcast %cst_51 : f32 to vector<16x32xf32>
      %c0_52 = arith.constant 0 : index
      %c0_53 = arith.constant 0 : index
      %64 = vector.load %arg7[%c0_52, %c0_53] : memref<16x32xf32, #tpu.memory_space<vmem>>, vector<16x32xf32>
      tpu.vector_store %arg7[%c0_52, %c0_53], %63 {strides = array<i32>} : memref<16x32xf32, #tpu.memory_space<vmem>>, vector<16x32xf32>,
      %65 = arith.index_cast %arg0 : i32 to index
      %c0_54 = arith.constant 0 : index
      %66 = memref.load %arg1[%65, %c0_54] : memref<4x4xi32, #tpu.memory_space<smem>>
      %c0_i32_55 = arith.constant 0 : i32
      %67 = arith.cmpi sgt, %66, %c0_i32_55 : i32
      %68 = arith.extui %67 : i1 to i32
      %c0_i32_56 = arith.constant 0 : i32
      %69 = arith.cmpi ne, %68, %c0_i32_56 : i32
      scf.if %69 {
        %109 = vector.extract_strided_slice %60 {offsets = [0, 195], sizes = [16, 1], strides = [1, 1]} : vector<16x256xf32> to vector<16x1xf32>
        %110 = vector.extract_strided_slice %62 {offsets = [0, 0], sizes = [1, 16], strides = [1, 1]} : vector<3x16xf32> to vector<1x16xf32>
        %111 = vector.broadcast %109 : vector<16x1xf32> to vector<16x16xf32>
        %112 = vector.broadcast %110 : vector<1x16xf32> to vector<16x16xf32>
        %113 = arith.addf %111, %112 : vector<16x16xf32>
        %114 = vector.broadcast %22 : vector<1x1xf32> to vector<16x16xf32>
        %115 = arith.addf %113, %114 : vector<16x16xf32>
        %cst_73 = arith.constant 0.000000e+00 : f32
        %116 = vector.broadcast %cst_73 : f32 to vector<16x16xf32>
        %117 = arith.cmpf ogt, %115, %116 : vector<16x16xf32>
        %cst_74 = arith.constant 2.000000e-01 : f32
        %118 = vector.broadcast %cst_74 : f32 to vector<16x16xf32>
        %119 = arith.mulf %118, %115 : vector<16x16xf32>
        %120 = arith.select %117, %115, %119 : vector<16x16xi1>, vector<16x16xf32>
        %cst_75 = arith.constant -1.000000e+30 : f32
        %121 = vector.broadcast %cst_75 : f32 to vector<16x16xf32>
        %122 = arith.select %17, %120, %121 : vector<16x16xi1>, vector<16x16xf32>
        %cst_76 = arith.constant dense<0xFF800000> : vector<16xf32>
        %123 = vector.multi_reduction <maximumf>, %122, %cst_76 [1] : vector<16x16xf32> to vector<16xf32>
        %124 = vector.shape_cast %123 : vector<16xf32> to vector<16x1xf32>
        %cst_77 = arith.constant dense<0xFF800000> : vector<1xf32>
        %125 = vector.multi_reduction <maximumf>, %124, %cst_77 [0] : vector<16x1xf32> to vector<1xf32>
        %126 = vector.shape_cast %125 : vector<1xf32> to vector<1x1xf32>
        %127 = vector.broadcast %126 : vector<1x1xf32> to vector<16x16xf32>
        %128 = arith.subf %122, %127 : vector<16x16xf32>
        %129 = math.exp %128 : vector<16x16xf32>
        %130 = arith.mulf %11, %129 : vector<16x16xf32>
        %cst_78 = arith.constant dense<0.000000e+00> : vector<16xf32>
        %131 = vector.multi_reduction <add>, %130, %cst_78 [1] : vector<16x16xf32> to vector<16xf32>
        %132 = vector.shape_cast %131 : vector<16xf32> to vector<16x1xf32>
        %cst_79 = arith.constant dense<0.000000e+00> : vector<1xf32>
        %133 = vector.multi_reduction <add>, %132, %cst_79 [0] : vector<16x1xf32> to vector<1xf32>
        %134 = vector.shape_cast %133 : vector<1xf32> to vector<1x1xf32>
        %135 = tpu.reciprocal %134 {approx = true} : vector<1x1xf32> -> vector<1x1xf32>
        %136 = vector.broadcast %135 : vector<1x1xf32> to vector<16x16xf32>
        %137 = arith.mulf %130, %136 : vector<16x16xf32>
        %138 = vector.extract_strided_slice %60 {offsets = [0, 0], sizes = [16, 32], strides = [1, 1]} : vector<16x256xf32> to vector<16x32xf32>
        %cst_80 = arith.constant dense<0.000000e+00> : vector<16x32xf32>
        %139 = tpu.matmul %137, %138, %cst_80 {dimension_numbers = #tpu.dot_dimension_numbers<[1], [0], [0], [1], [0, 0, 1, 1], [], []>} : vector<16x16xf32>, vector<16x32xf32>, vector<16x32xf32> -> vector<16x32xf32>
        %140 = vector.extract_strided_slice %60 {offsets = [0, 96], sizes = [16, 32], strides = [1, 1]} : vector<16x256xf32> to vector<16x32xf32>
        %141 = vector.broadcast %25 : vector<1x32xf32> to vector<16x32xf32>
        %142 = arith.addf %140, %141 : vector<16x32xf32>
        %143 = arith.negf %142 : vector<16x32xf32>
        %144 = math.exp %143 : vector<16x32xf32>
        %cst_81 = arith.constant 1.000000e+00 : f32
        %145 = vector.broadcast %cst_81 : f32 to vector<16x32xf32>
        %146 = arith.addf %145, %144 : vector<16x32xf32>
        %147 = arith.divf %145, %146 : vector<16x32xf32>
        %c0_82 = arith.constant 0 : index
        %c0_83 = arith.constant 0 : index
        %148 = vector.load %arg7[%c0_82, %c0_83] : memref<16x32xf32, #tpu.memory_space<vmem>>, vector<16x32xf32>
        %149 = arith.mulf %147, %139 : vector<16x32xf32>
        %150 = arith.addf %148, %149 : vector<16x32xf32>
        %c0_84 = arith.constant 0 : index
        %c0_85 = arith.constant 0 : index
        %151 = vector.load %arg7[%c0_84, %c0_85] : memref<16x32xf32, #tpu.memory_space<vmem>>, vector<16x32xf32>
        tpu.vector_store %arg7[%c0_84, %c0_85], %150 {strides = array<i32>} : memref<16x32xf32, #tpu.memory_space<vmem>>, vector<16x32xf32>,
      } else {
      }
      %70 = arith.index_cast %arg0 : i32 to index
      %c1_57 = arith.constant 1 : index
      %71 = memref.load %arg1[%70, %c1_57] : memref<4x4xi32, #tpu.memory_space<smem>>
      %c0_i32_58 = arith.constant 0 : i32
      %72 = arith.cmpi sgt, %71, %c0_i32_58 : i32
      %73 = arith.extui %72 : i1 to i32
      %c0_i32_59 = arith.constant 0 : i32
      %74 = arith.cmpi ne, %73, %c0_i32_59 : i32
      scf.if %74 {
        %109 = vector.extract_strided_slice %60 {offsets = [0, 196], sizes = [16, 1], strides = [1, 1]} : vector<16x256xf32> to vector<16x1xf32>
        %110 = vector.extract_strided_slice %62 {offsets = [1, 0], sizes = [1, 16], strides = [1, 1]} : vector<3x16xf32> to vector<1x16xf32>
        %111 = vector.broadcast %109 : vector<16x1xf32> to vector<16x16xf32>
        %112 = vector.broadcast %110 : vector<1x16xf32> to vector<16x16xf32>
        %113 = arith.addf %111, %112 : vector<16x16xf32>
        %114 = vector.broadcast %23 : vector<1x1xf32> to vector<16x16xf32>
        %115 = arith.addf %113, %114 : vector<16x16xf32>
        %cst_73 = arith.constant 0.000000e+00 : f32
        %116 = vector.broadcast %cst_73 : f32 to vector<16x16xf32>
        %117 = arith.cmpf ogt, %115, %116 : vector<16x16xf32>
        %cst_74 = arith.constant 2.000000e-01 : f32
        %118 = vector.broadcast %cst_74 : f32 to vector<16x16xf32>
        %119 = arith.mulf %118, %115 : vector<16x16xf32>
        %120 = arith.select %117, %115, %119 : vector<16x16xi1>, vector<16x16xf32>
        %cst_75 = arith.constant -1.000000e+30 : f32
        %121 = vector.broadcast %cst_75 : f32 to vector<16x16xf32>
        %122 = arith.select %19, %120, %121 : vector<16x16xi1>, vector<16x16xf32>
        %cst_76 = arith.constant dense<0xFF800000> : vector<16xf32>
        %123 = vector.multi_reduction <maximumf>, %122, %cst_76 [1] : vector<16x16xf32> to vector<16xf32>
        %124 = vector.shape_cast %123 : vector<16xf32> to vector<16x1xf32>
        %cst_77 = arith.constant dense<0xFF800000> : vector<1xf32>
        %125 = vector.multi_reduction <maximumf>, %124, %cst_77 [0] : vector<16x1xf32> to vector<1xf32>
        %126 = vector.shape_cast %125 : vector<1xf32> to vector<1x1xf32>
        %127 = vector.broadcast %126 : vector<1x1xf32> to vector<16x16xf32>
        %128 = arith.subf %122, %127 : vector<16x16xf32>
        %129 = math.exp %128 : vector<16x16xf32>
        %130 = arith.mulf %13, %129 : vector<16x16xf32>
        %cst_78 = arith.constant dense<0.000000e+00> : vector<16xf32>
        %131 = vector.multi_reduction <add>, %130, %cst_78 [1] : vector<16x16xf32> to vector<16xf32>
        %132 = vector.shape_cast %131 : vector<16xf32> to vector<16x1xf32>
        %cst_79 = arith.constant dense<0.000000e+00> : vector<1xf32>
        %133 = vector.multi_reduction <add>, %132, %cst_79 [0] : vector<16x1xf32> to vector<1xf32>
        %134 = vector.shape_cast %133 : vector<1xf32> to vector<1x1xf32>
        %135 = tpu.reciprocal %134 {approx = true} : vector<1x1xf32> -> vector<1x1xf32>
        %136 = vector.broadcast %135 : vector<1x1xf32> to vector<16x16xf32>
        %137 = arith.mulf %130, %136 : vector<16x16xf32>
        %138 = vector.extract_strided_slice %60 {offsets = [0, 32], sizes = [16, 32], strides = [1, 1]} : vector<16x256xf32> to vector<16x32xf32>
        %cst_80 = arith.constant dense<0.000000e+00> : vector<16x32xf32>
        %139 = tpu.matmul %137, %138, %cst_80 {dimension_numbers = #tpu.dot_dimension_numbers<[1], [0], [0], [1], [0, 0, 1, 1], [], []>} : vector<16x16xf32>, vector<16x32xf32>, vector<16x32xf32> -> vector<16x32xf32>
        %140 = vector.extract_strided_slice %60 {offsets = [0, 128], sizes = [16, 32], strides = [1, 1]} : vector<16x256xf32> to vector<16x32xf32>
        %141 = vector.broadcast %26 : vector<1x32xf32> to vector<16x32xf32>
        %142 = arith.addf %140, %141 : vector<16x32xf32>
        %143 = arith.negf %142 : vector<16x32xf32>
        %144 = math.exp %143 : vector<16x32xf32>
        %cst_81 = arith.constant 1.000000e+00 : f32
        %145 = vector.broadcast %cst_81 : f32 to vector<16x32xf32>
        %146 = arith.addf %145, %144 : vector<16x32xf32>
        %147 = arith.divf %145, %146 : vector<16x32xf32>
        %c0_82 = arith.constant 0 : index
        %c0_83 = arith.constant 0 : index
        %148 = vector.load %arg7[%c0_82, %c0_83] : memref<16x32xf32, #tpu.memory_space<vmem>>, vector<16x32xf32>
        %149 = arith.mulf %147, %139 : vector<16x32xf32>
        %150 = arith.addf %148, %149 : vector<16x32xf32>
        %c0_84 = arith.constant 0 : index
        %c0_85 = arith.constant 0 : index
        %151 = vector.load %arg7[%c0_84, %c0_85] : memref<16x32xf32, #tpu.memory_space<vmem>>, vector<16x32xf32>
        tpu.vector_store %arg7[%c0_84, %c0_85], %150 {strides = array<i32>} : memref<16x32xf32, #tpu.memory_space<vmem>>, vector<16x32xf32>,
      } else {
      }
      %75 = arith.index_cast %arg0 : i32 to index
      %c2_60 = arith.constant 2 : index
      %76 = memref.load %arg1[%75, %c2_60] : memref<4x4xi32, #tpu.memory_space<smem>>
      %c0_i32_61 = arith.constant 0 : i32
      %77 = arith.cmpi sgt, %76, %c0_i32_61 : i32
      %78 = arith.extui %77 : i1 to i32
      %c0_i32_62 = arith.constant 0 : i32
      %79 = arith.cmpi ne, %78, %c0_i32_62 : i32
      scf.if %79 {
        %109 = vector.extract_strided_slice %60 {offsets = [0, 197], sizes = [16, 1], strides = [1, 1]} : vector<16x256xf32> to vector<16x1xf32>
        %110 = vector.extract_strided_slice %62 {offsets = [2, 0], sizes = [1, 16], strides = [1, 1]} : vector<3x16xf32> to vector<1x16xf32>
        %111 = vector.broadcast %109 : vector<16x1xf32> to vector<16x16xf32>
        %112 = vector.broadcast %110 : vector<1x16xf32> to vector<16x16xf32>
        %113 = arith.addf %111, %112 : vector<16x16xf32>
        %114 = vector.broadcast %24 : vector<1x1xf32> to vector<16x16xf32>
        %115 = arith.addf %113, %114 : vector<16x16xf32>
        %cst_73 = arith.constant 0.000000e+00 : f32
        %116 = vector.broadcast %cst_73 : f32 to vector<16x16xf32>
        %117 = arith.cmpf ogt, %115, %116 : vector<16x16xf32>
        %cst_74 = arith.constant 2.000000e-01 : f32
        %118 = vector.broadcast %cst_74 : f32 to vector<16x16xf32>
        %119 = arith.mulf %118, %115 : vector<16x16xf32>
        %120 = arith.select %117, %115, %119 : vector<16x16xi1>, vector<16x16xf32>
        %cst_75 = arith.constant -1.000000e+30 : f32
        %121 = vector.broadcast %cst_75 : f32 to vector<16x16xf32>
        %122 = arith.select %21, %120, %121 : vector<16x16xi1>, vector<16x16xf32>
        %cst_76 = arith.constant dense<0xFF800000> : vector<16xf32>
        %123 = vector.multi_reduction <maximumf>, %122, %cst_76 [1] : vector<16x16xf32> to vector<16xf32>
        %124 = vector.shape_cast %123 : vector<16xf32> to vector<16x1xf32>
        %cst_77 = arith.constant dense<0xFF800000> : vector<1xf32>
        %125 = vector.multi_reduction <maximumf>, %124, %cst_77 [0] : vector<16x1xf32> to vector<1xf32>
        %126 = vector.shape_cast %125 : vector<1xf32> to vector<1x1xf32>
        %127 = vector.broadcast %126 : vector<1x1xf32> to vector<16x16xf32>
        %128 = arith.subf %122, %127 : vector<16x16xf32>
        %129 = math.exp %128 : vector<16x16xf32>
        %130 = arith.mulf %15, %129 : vector<16x16xf32>
        %cst_78 = arith.constant dense<0.000000e+00> : vector<16xf32>
        %131 = vector.multi_reduction <add>, %130, %cst_78 [1] : vector<16x16xf32> to vector<16xf32>
        %132 = vector.shape_cast %131 : vector<16xf32> to vector<16x1xf32>
        %cst_79 = arith.constant dense<0.000000e+00> : vector<1xf32>
        %133 = vector.multi_reduction <add>, %132, %cst_79 [0] : vector<16x1xf32> to vector<1xf32>
        %134 = vector.shape_cast %133 : vector<1xf32> to vector<1x1xf32>
        %135 = tpu.reciprocal %134 {approx = true} : vector<1x1xf32> -> vector<1x1xf32>
        %136 = vector.broadcast %135 : vector<1x1xf32> to vector<16x16xf32>
        %137 = arith.mulf %130, %136 : vector<16x16xf32>
        %138 = vector.extract_strided_slice %60 {offsets = [0, 64], sizes = [16, 32], strides = [1, 1]} : vector<16x256xf32> to vector<16x32xf32>
        %cst_80 = arith.constant dense<0.000000e+00> : vector<16x32xf32>
        %139 = tpu.matmul %137, %138, %cst_80 {dimension_numbers = #tpu.dot_dimension_numbers<[1], [0], [0], [1], [0, 0, 1, 1], [], []>} : vector<16x16xf32>, vector<16x32xf32>, vector<16x32xf32> -> vector<16x32xf32>
        %140 = vector.extract_strided_slice %60 {offsets = [0, 160], sizes = [16, 32], strides = [1, 1]} : vector<16x256xf32> to vector<16x32xf32>
        %141 = vector.broadcast %27 : vector<1x32xf32> to vector<16x32xf32>
        %142 = arith.addf %140, %141 : vector<16x32xf32>
        %143 = arith.negf %142 : vector<16x32xf32>
        %144 = math.exp %143 : vector<16x32xf32>
        %cst_81 = arith.constant 1.000000e+00 : f32
        %145 = vector.broadcast %cst_81 : f32 to vector<16x32xf32>
        %146 = arith.addf %145, %144 : vector<16x32xf32>
        %147 = arith.divf %145, %146 : vector<16x32xf32>
        %c0_82 = arith.constant 0 : index
        %c0_83 = arith.constant 0 : index
        %148 = vector.load %arg7[%c0_82, %c0_83] : memref<16x32xf32, #tpu.memory_space<vmem>>, vector<16x32xf32>
        %149 = arith.mulf %147, %139 : vector<16x32xf32>
        %150 = arith.addf %148, %149 : vector<16x32xf32>
        %c0_84 = arith.constant 0 : index
        %c0_85 = arith.constant 0 : index
        %151 = vector.load %arg7[%c0_84, %c0_85] : memref<16x32xf32, #tpu.memory_space<vmem>>, vector<16x32xf32>
        tpu.vector_store %arg7[%c0_84, %c0_85], %150 {strides = array<i32>} : memref<16x32xf32, #tpu.memory_space<vmem>>, vector<16x32xf32>,
      } else {
      }
      %c0_63 = arith.constant 0 : index
      %c0_64 = arith.constant 0 : index
      %80 = vector.load %arg7[%c0_63, %c0_64] : memref<16x32xf32, #tpu.memory_space<vmem>>, vector<16x32xf32>
      %81 = vector.broadcast %37 : vector<1x1xf32> to vector<16x32xf32>
      %82 = arith.mulf %80, %81 : vector<16x32xf32>
      %83 = arith.addf %59, %82 : vector<16x32xf32>
      %cst_65 = arith.constant dense<0.000000e+00> : vector<16xf32>
      %84 = vector.multi_reduction <add>, %83, %cst_65 [1] : vector<16x32xf32> to vector<16xf32>
      %85 = vector.shape_cast %84 : vector<16xf32> to vector<16x1xf32>
      %cst_66 = arith.constant 3.200000e+01 : f32
      %86 = vector.broadcast %cst_66 : f32 to vector<16x1xf32>
      %87 = arith.divf %85, %86 : vector<16x1xf32>
      %88 = vector.broadcast %87 : vector<16x1xf32> to vector<16x32xf32>
      %89 = arith.subf %83, %88 : vector<16x32xf32>
      %90 = arith.mulf %89, %89 : vector<16x32xf32>
      %cst_67 = arith.constant dense<0.000000e+00> : vector<16xf32>
      %91 = vector.multi_reduction <add>, %90, %cst_67 [1] : vector<16x32xf32> to vector<16xf32>
      %92 = vector.shape_cast %91 : vector<16xf32> to vector<16x1xf32>
      %cst_68 = arith.constant 3.200000e+01 : f32
      %93 = vector.broadcast %cst_68 : f32 to vector<16x1xf32>
      %94 = arith.divf %92, %93 : vector<16x1xf32>
      %95 = vector.broadcast %87 : vector<16x1xf32> to vector<16x32xf32>
      %96 = arith.subf %83, %95 : vector<16x32xf32>
      %cst_69 = arith.constant 9.99999974E-6 : f32
      %97 = vector.broadcast %cst_69 : f32 to vector<16x1xf32>
      %98 = arith.addf %94, %97 : vector<16x1xf32>
      %99 = math.rsqrt %98 : vector<16x1xf32>
      %100 = vector.broadcast %99 : vector<16x1xf32> to vector<16x32xf32>
      %101 = arith.mulf %96, %100 : vector<16x32xf32>
      %102 = vector.broadcast %46 : vector<1x32xf32> to vector<16x32xf32>
      %103 = arith.mulf %101, %102 : vector<16x32xf32>
      %104 = vector.broadcast %47 : vector<1x32xf32> to vector<16x32xf32>
      %105 = arith.addf %103, %104 : vector<16x32xf32>
      %cst_70 = arith.constant 0.000000e+00 : f32
      %106 = vector.broadcast %cst_70 : f32 to vector<16x32xf32>
      %107 = arith.maximumf %105, %106 : vector<16x32xf32>
      %c0_71 = arith.constant 0 : index
      %c0_72 = arith.constant 0 : index
      %108 = vector.load %arg6[%c0_71, %c0_72] : memref<16x32xf32, #tpu.memory_space<vmem>>, vector<16x32xf32>
      tpu.vector_store %arg6[%c0_71, %c0_72], %107 {strides = array<i32>} : memref<16x32xf32, #tpu.memory_space<vmem>>, vector<16x32xf32>,
    } else {
    }
    %c40 = arith.constant 40 : index
    %c0_40 = arith.constant 0 : index
    %50 = vector.load %arg3[%c40, %c0_40] : memref<72x256xf32, #tpu.memory_space<vmem>>, vector<32x128xf32>
    %c5 = arith.constant 5 : index
    %c0_41 = arith.constant 0 : index
    %51 = vector.load %arg4[%c5, %c0_41] : memref<16x128xf32, #tpu.memory_space<vmem>>, vector<1x128xf32>
    %c0_42 = arith.constant 0 : index
    %c0_43 = arith.constant 0 : index
    %52 = vector.load %arg6[%c0_42, %c0_43] : memref<16x32xf32, #tpu.memory_space<vmem>>, vector<16x32xf32>
    %cst_44 = arith.constant dense<0.000000e+00> : vector<16x128xf32>
    %53 = tpu.matmul %52, %50, %cst_44 {dimension_numbers = #tpu.dot_dimension_numbers<[1], [0], [0], [1], [0, 0, 1, 1], [], []>} : vector<16x32xf32>, vector<32x128xf32>, vector<16x128xf32> -> vector<16x128xf32>
    %54 = vector.broadcast %51 : vector<1x128xf32> to vector<16x128xf32>
    %55 = arith.addf %53, %54 : vector<16x128xf32>
    %c0_45 = arith.constant 0 : index
    %c0_46 = arith.constant 0 : index
    %c0_47 = arith.constant 0 : index
    %56 = vector.load %arg5[%c0_45, %c0_46, %c0_47] : memref<1x16x128xf32, #tpu.memory_space<vmem>>, vector<1x16x128xf32>
    %57 = vector.shape_cast %56 : vector<1x16x128xf32> to vector<16x128xf32>
    %58 = vector.shape_cast %55 : vector<16x128xf32> to vector<1x16x128xf32>
    tpu.vector_store %arg5[%c0_45, %c0_46, %c0_47], %58 {strides = array<i32>} : memref<1x16x128xf32, #tpu.memory_space<vmem>>, vector<1x16x128xf32>,
    return
  }
  func.func @transform_0(%arg0: i32, %arg1: memref<4x4xi32, #tpu.memory_space<smem>>) -> (i32, i32, i32) {
    %c0_i32 = arith.constant 0 : i32
    %c0_i32_0 = arith.constant 0 : i32
    %c0_i32_1 = arith.constant 0 : i32
    return %arg0, %c0_i32, %c0_i32_0 : i32, i32, i32
  }
  func.func @transform_1(%arg0: i32, %arg1: memref<4x4xi32, #tpu.memory_space<smem>>) -> (i32, i32) {
    %c0_i32 = arith.constant 0 : i32
    %c0_i32_0 = arith.constant 0 : i32
    %c0_i32_1 = arith.constant 0 : i32
    return %c0_i32, %c0_i32_0 : i32, i32
  }
  func.func @transform_2(%arg0: i32, %arg1: memref<4x4xi32, #tpu.memory_space<smem>>) -> (i32, i32) {
    %c0_i32 = arith.constant 0 : i32
    %c0_i32_0 = arith.constant 0 : i32
    %c0_i32_1 = arith.constant 0 : i32
    return %c0_i32, %c0_i32_0 : i32, i32
  }
  func.func @transform_3(%arg0: i32, %arg1: memref<4x4xi32, #tpu.memory_space<smem>>) -> (i32, i32, i32) {
    %c0_i32 = arith.constant 0 : i32
    %c0_i32_0 = arith.constant 0 : i32
    %c0_i32_1 = arith.constant 0 : i32
    return %arg0, %c0_i32, %c0_i32_0 : i32, i32, i32
  }
}

</mosaic_0001>

<bundles_post_ra>
// kernel: relation_gated_gnn.1
= control target key start
LH: loop header
LB: loop body
LE: loop exit
PB: predicated region body
PF: predicated region fallthrough
CT: control target
= control target key end

     0   :  { %s4472_s0 = inlined_call_operand.hbm [shape: s32[4,4], index: 0, kind: input, shape index: {}]   ;;  %s4473_s1 = inlined_call_operand.hbm [shape: f32[4,16,128], index: 1, kind: input, shape index: {}]   ;;  %s4474_s2 = inlined_call_operand.hbm [shape: f32[72,256], index: 2, kind: input, shape index: {}]   ;;  %s4475_s3 = inlined_call_operand.hbm [shape: f32[16,128], index: 3, kind: input, shape index: {}]   ;;  %s4476_s4 = inlined_call_operand.vmem [shape: f32[4,16,128], index: 4, kind: output, shape index: {}]  }
   0x1   :  { %s3589_s17 = scalar_lea.hbm %s4472_s0, 64 }
   0x2   :  { %p3590_p0 = scmp.ne.s32.totalorder %s4472_s0, %s3589_s17  ;;  %p3593_p1 = scmp.lt.u32.totalorder %s3589_s17, %s4472_s0 }
   0x4   :  { %p3595_p2 = pnand %p3593_p1, %p3590_p0 }
   0x6   :  { %3598 = shalt.err (!%p3595_p2)  }
   0x7   :  { %s3727_s22 = smov [#allocation5]  }
   0x8   :  { %10 = dma.hbm_to_smem %s4472_s0, 64, %s3727_s22, [#allocation4] }
   0x9   :  { %3701 = dma.done.wait [#allocation4], 64 }
   0xa   :  { %3702 = vsyncadd [#allocation4], 4294967232 }
   0xb   :  { %12 = sfence }
   0xc   :  { %13 = vsyncpa [#allocation7], 0 }
   0xd   :  { %15 = vsyncpa [#allocation7 + $0x1], 0 }
   0xe   :  { %16 = vsyncpa [#allocation9], 0  ;;  %s3818_s25 = smov 0   ;;  %s3820_s26 = smov 0  }
   0xf   :  { %s3822_s27 = smov 0   ;;  %s3824_s28 = smov 0  }
  0x10 LB: > { %s3837_s0 = sadd.s32 4294967295, %s3725_s28   ;;  %p42_p3 = scmp.ne.s32.totalorder %s3717_s26, %s3713_s25  ;;  %s3725_s28 = sphi %s3824_s28, %s4491_s28   ;;  %s3721_s27 = sphi %s3822_s27, %s4490_s27   ;;  %s3717_s26 = sphi %s3820_s26, %s4489_s26   ;;  %s3713_s25 = sphi %s3818_s25, %s4488_s25  }
  0x11   : > { %p4477_p4 = scmp.eq.s32.totalorder %s3837_s0, 0  ;;  %p2987_p5 = scmp.ge.s32.totalorder %s3725_s28, 1 }
  0x12   : > { %p121_p6 = scmp.lt.s32.totalorder %s3725_s28, 5  ;;  %s3728_s5 = smov [#allocation8]  }
  0x13   : > { %p3845_p7 = por %p4477_p4, %p42_p3  ;;  %s133_s6 = sshll.u32 %s3728_s5, 4  ;;  %s134_s6 = int_to_ptr.vmem [resolvable:$true] %s133_s6 }
  0x14   : > { %p3849_p8 = pnand %p2987_p5, %p121_p6  ;;  %s3729_s8 = smov [#allocation10]  }
  0x15   : > { %s4480_s29 = scalar_select %p3845_p7, 1, 0 }
  0x16   : > { %s4481_s30 = scalar_select %p3849_p8, 1, 0 }
  0x17   : > { %p3303_p9 = pneg %p3849_p8  ;;  %s146_s9 = sshll.u32 %s3729_s8, 4  ;;  %s3861_s9 = int_to_ptr.vmem [resolvable:$true] %s146_s9 }
  0x18   : > { %s3599_s12 = scalar_lea.hbm %s4474_s2, 2304 }
  0x19   : > { %p3857_p10 = pnand %p3303_p9, %p4477_p4  ;;  %p3600_p11 = scmp.ne.s32.totalorder %s4474_s2, %s3599_s12 }
  0x1a   : > { %p3606_p1 = scmp.lt.u32.totalorder %s3599_s12, %s4474_s2 }
  0x1b   : > { %p3601_p12 = pneg %p3857_p10 }
  0x1d   : > { %p3602_p13 = pnand %p3601_p12, %p3600_p11 }
  0x1f   : > { %p3603_p0 = pneg %p3602_p13 }
  0x21   : > { %p3608_p2 = pnand %p3606_p1, %p3603_p0 }
  0x23   : > { %3611 = shalt.err (!%p3608_p2)
}
  0x24   : > { %s3612_s17 = scalar_lea.vmem %s134_s6, 2304  ;;  %p3620_p9 = scmp.lt.s32.totalorder %s134_s6, %s134_s6 }
  0x25   : > { %p3613_p3 = scmp.ne.s32.totalorder %s134_s6, %s3612_s17  ;;  %p3621_p4 = scmp.lt.s32.totalorder %s3612_s17, %s3612_s17 }
  0x27   : > { %p3615_p5 = pnand %p3613_p3, %p3601_p12  ;;  %p3622_p7 = por %p3621_p4, %p3620_p9 }
  0x29   : > { %p3616_p6 = pneg %p3615_p5 }
  0x2b   : > { %p3623_p8 = pnand %p3622_p7, %p3616_p6 }
  0x2d   : > { %3626 = shalt.err (!%p3623_p8)
}
  0x2e   : > { %s3730_s18 = smov 256   ;;  %s3731_s19 = smov 16  }
  0x2f   : > { %3306 = dma.hbm_to_vmem [thread:$0]  (!%p3857_p10), %s4474_s2, 2304, %s134_s6, [#allocation9], %s3730_s18, %s3730_s18, %s3731_s19  }
  0x30   : > { %s3627_s24 = scalar_lea.hbm %s4475_s3, 256 }
  0x31   : > { %p3628_p11 = scmp.ne.s32.totalorder %s4475_s3, %s3627_s24  ;;  %p3634_p8 = scmp.lt.u32.totalorder %s3627_s24, %s4475_s3 }
  0x33   : > { %p3630_p4 = pnand %p3628_p11, %p3601_p12 }
  0x35   : > { %p3631_p7 = pneg %p3630_p4 }
  0x37   : > { %p3636_p13 = pnand %p3634_p8, %p3631_p7 }
  0x39   : > { %3639 = shalt.err (!%p3636_p13)
}
  0x3a   : > { %s3640_s6 = scalar_lea.vmem %s3861_s9, 256  ;;  %p3648_p3 = scmp.lt.s32.totalorder %s3861_s9, %s3861_s9 }
  0x3b   : > { %p3641_p0 = scmp.ne.s32.totalorder %s3861_s9, %s3640_s6  ;;  %p3649_p5 = scmp.lt.s32.totalorder %s3640_s6, %s3640_s6 }
  0x3d   : > { %p3643_p1 = pnand %p3641_p0, %p3601_p12  ;;  %p3650_p6 = por %p3649_p5, %p3648_p3 }
  0x3f   : > { %p3644_p2 = pneg %p3643_p1 }
  0x41   : > { %p3651_p9 = pnand %p3650_p6, %p3644_p2 }
  0x43   : > { %3654 = shalt.err (!%p3651_p9)
}
  0x44   : > { %s3732_s11 = smov 128   ;;  %s3733_s12 = smov 8  }
  0x45   : > { %3309 = dma.hbm_to_vmem [thread:$0]  (!%p3857_p10), %s4475_s3, 256, %s3861_s9, [#allocation9], %s3732_s11, %s3732_s11, %s3733_s12  }
  0x46   : > { %s3914_s15 = sadd.s32 1, %s3725_s28   ;;  %s29_s17 = sadd.s32 1, %s3721_s27 }
  0x47   : > { %s26_s16 = ssub.s32 %s3725_s28, %s3914_s15  ;;  %p36_p11 = scmp.ne.s32.totalorder %s3721_s27, %s3717_s26 }
  0x48   : > { %p27_p12 = scmp.eq.s32.totalorder %s26_s16, 0  ;;  %p37_p4 = scmp.eq.s32.totalorder %s3725_s28, 0 }
  0x49   : > { %p3316_p8 = scmp.lt.s32.totalorder %s3725_s28, 4  ;;  %s160_s7 = sand.u32 1, %s3721_s27  }
  0x4a   : > { %s3923_s18 = scalar_select %p27_p12, %s3721_s27, %s29_s17  }
  0x4b   : > { %p38_p7 = por %p37_p4, %p36_p11  ;;  %s3069_s19 = sshll.u32 %s3725_s28, 8 }
  0x4c   : > { %s2991_s20 = sshll.u32 %s160_s7, 4  ;;  %s3931_s23 = scalar_lea.hbm %s4473_s1, %s3069_s19 }
  0x4d   : > { %s164_s9 = scalar_lea.vmem [#allocation6], %s2991_s20  ;;  %p3933_p10 = pnand %p3316_p8, %p38_p7 }
  0x4e   : > { %s171_s24 = sshll.u32 %s164_s9, 4  ;;  %s3939_s28 = scalar_lea.sflag [#allocation7], %s160_s7  ;;  %s3937_s24 = int_to_ptr.vmem [resolvable:$true] %s171_s24 }
  0x4f   : > { %s3655_s5 = scalar_lea.hbm %s3931_s23, 256  ;;  %p3657_p0 = pneg %p3933_p10 }
  0x50   : > { %p3656_p13 = scmp.ne.s32.totalorder %s3931_s23, %s3655_s5  ;;  %s3660_s6 = scalar_lea.hbm %s4473_s1, 1024 }
  0x51   : > { %p3661_p3 = scmp.lt.u32.totalorder %s3931_s23, %s4473_s1  ;;  %p3662_p5 = scmp.lt.u32.totalorder %s3660_s6, %s3655_s5 }
  0x52   : > { %p3658_p1 = pnand %p3657_p0, %p3656_p13  ;;  %p3664_p9 = scmp.lt.u32.totalorder %s3655_s5, %s3931_s23 }
  0x53   : > { %p3663_p6 = por %p3662_p5, %p3661_p3 }
  0x54   : > { %p3659_p2 = pneg %p3658_p1 }
  0x55   : > { %p3665_p12 = por %p3664_p9, %p3663_p6 }
  0x57   : > { %p3666_p11 = pnand %p3665_p12, %p3659_p2 }
  0x59   : > { %3669 = shalt.err (!%p3666_p11)
}
  0x5a   : > { %s3670_s16 = scalar_lea.vmem %s3937_s24, 256  ;;  %s3734_s17 = smov [#allocation6]  }
  0x5b   : > { %p3671_p4 = scmp.ne.s32.totalorder %s3937_s24, %s3670_s16  ;;  %s3675_s7 = sshll.u32 %s3734_s17, 4  ;;  %s3676_s7 = int_to_ptr.vmem [resolvable:$false] %s3675_s7 }
  0x5c   : > { %s3677_s19 = scalar_lea.vmem %s3676_s7, 512  ;;  %p3678_p13 = scmp.lt.s32.totalorder %s3937_s24, %s3676_s7 }
  0x5d   : > { %p3673_p7 = pnand %p3671_p4, %p3657_p0  ;;  %p3679_p1 = scmp.lt.s32.totalorder %s3677_s19, %s3670_s16 }
  0x5f   : > { %p3674_p8 = pneg %p3673_p7  ;;  %p3680_p3 = por %p3679_p1, %p3678_p13 }
  0x61   : > { %p3681_p5 = pnand %p3680_p3, %p3674_p8 }
  0x63   : > { %3684 = shalt.err (!%p3681_p5)
}
  0x64   : > { %3313 = dma.hbm_to_vmem [thread:$0]  (!%p3933_p10), %s3931_s23, 256, %s3937_s24, %s3939_s28, %s3732_s11, %s3732_s11, %s3733_s12  }
  0x65   : > { %p4484_p0 = scmp.ne.s32.totalorder %s4481_s30, 0 }
  0x66   : > { %s185_s20 = sand.u32 (!%p4484_p0), 1, %s3717_s26   ;;  %p4485_p2 = scmp.ne.s32.totalorder (!%p4484_p0), %s4480_s29, 0 }
  0x67   : > { %183 = sbr.rel (%p4484_p0) target bundleno = 12763 (0x31db), region = 32  ;;  %s2995_s21 = sshll.u32 (!%p4484_p0), %s185_s20, 4 }
  0x68   : > { %s186_s22 = scalar_lea.sflag (!%p4484_p0), [#allocation7], %s185_s20  ;;  %s189_s9 = scalar_lea.vmem (!%p4484_p0), [#allocation6], %s2995_s21 }
  0x6e   : > { %3704 = dma.done.wait (%p4485_p2), %s186_s22, 256  }
  0x6f   : > { %3706 = vsyncadd (%p4485_p2), %s186_s22, 4294967040  ;;  %p4486_p6 = scmp.eq.s32.totalorder %s3837_s0, 0 }
  0x71   : > { %3708 = dma.done.wait (%p4486_p6), [#allocation9], 2560   ;;  %p4487_p9 = pmov %p4486_p6 }
  0x72   : > { %s3982_s30 = sshll.u32 %s3837_s0, 7  ;;  %p220_p10 = scmp.lt.s32.totalorder %s3837_s0, 3  ;;  %v3994_v0 = vld [vmem:[%s189_s9] sm:$0xff]  ;;  %v3996_v1 = vld [vmem:[%s189_s9 + $0x8] sm:$0xff]  ;;  %vm239_vm2 = vcmask 64512   ;;  %vm321_vm3 = vcmask 261120  }
  0x73   : > { %3710 = vsyncadd (%p4487_p9), [#allocation9], 4294964736  ;;  %s341_s11 = sadd.s32 3, %s3982_s30  ;;  %v3998_v2 = vld [vmem:[#allocation10 + $0x4] sm:$0x1]  ;;  %vm326_vm0 = vcmp.gt.f32.partialorder %v3994_v0, 0.0 }
  0x74   : > { %s3986_s12 = sld [smem:[#allocation5 + %s341_s11]]  ;;  %s4493_s0 = smov (!%p220_p10, %s3837_s0), 3  ;;  %vm327_vm1 = vcmp.gt.f32.partialorder %v3996_v1, 0.0  ;;  %v4002_v3 = vld [vmem:[#allocation10 + $0x1] sm:$0x1]  ;;  %v4012_v8 = vld [vmem:[#allocation8 + $0x18] sm:$0xff] }
  0x75   : > { %s3070_s29 = sshll.u32 %s4493_s0, 4  ;;  %v4004_v4 = vld [vmem:[#allocation10 + $0x2] sm:$0x1]  ;;  %s3735_s0 = smov 80   ;;  %v4008_v6 = vld [vmem:[#allocation10 + $0x3] sm:$0x1] }
  0x76   : > { %s3992_s25 = scalar_lea.vmem %s4476_s4, %s3070_s29  ;;  %235 = vrot.lane.b32.xlu0 %v3994_v0, %s3735_s0  ;;  %v4010_v7 = vld [vmem:[#allocation8 + $0x10] sm:$0xff]  ;;  %v4014_v10 = vld [vmem:[#allocation8 + $0x20] sm:$0xff]  ;;  %v4016_v11 = vld [vmem:[#allocation8 + $0x28] sm:$0xff] }
  0x77   : > { %v4018_v12 = vld [vmem:[#allocation8 + $0x30] sm:$0xff]  ;;  %v4020_v13 = vld [vmem:[#allocation8 + $0x38] sm:$0xff]  ;;  %v4022_v14 = vld [vmem:[#allocation8 + $0x40] sm:$0xff] }
  0x78   : > { %v4024_v15 = vld [vmem:[#allocation8 + $0x48] sm:$0xff]  ;;  %v4026_v17 = vld [vmem:[#allocation10 + $0x6] ss:$0 sm:$0xff]  ;;  %v4028_v18 = vld [vmem:[#allocation10 + $0x9] ss:$0 sm:$0xff] }
  0x79   : > { %v227_v19 = vld [vmem:[#allocation8] sm:$0xff]  ;;  %v3000_v23 = vld [vmem:[#allocation10] ss:$0 sm:$0xff] }
  0x7a   : > { %v344_v5 = vstv %s3986_s12  ;;  %237 = vrot.lane.b32.xlu0 %v3996_v1, %s3735_s0  ;;  %3116 = vmatprep.subr.mxu0 %v227_v19  ;;  %p3004_p12 = scmp.le.s32.totalorder %s3986_s12, 0 }
  0x7b   : > { %v345_v9 = vcvt.s32.f32 %v344_v5  ;;  %3117 = vmatpush3.msra.mxu0 %v227_v19  ;;  %v3195_v30 = vpack.c.bf16 (!%p3004_p12), %v4016_v11, %v4012_v8  ;;  %v3197_v31 = vpack.c.bf16 (!%p3004_p12), %v4014_v10, %v4010_v7  ;;  %v3199_v32 = vpack.c.bf16 (!%p3004_p12), %v4024_v15, %v4020_v13  ;;  %s3737_s28 = smov (!%p3004_p12), 64   ;;  %s481_s5 = sld [smem:[#allocation5 + %s3982_s30]] (!%p3004_p12) }
  0x7c   : > { %v3736_v33 = vmov (!%p3004_p12), 0.0   ;;  %v3201_v34 = vpack.c.bf16 (!%p3004_p12), %v4022_v14, %v4018_v12 }
  0x7d   : > { %v346_v16 = vmax.f32 %v345_v9, 1.0  ;;  %3196 = vmatprep.subr.bf16.mxu0 (!%p3004_p12), %v3195_v30  ;;  %3263 = vmatprep.subr.bf16.mxu1 (!%p3004_p12), %v3195_v30  ;;  %479 = vst.msk [vmem:[#allocation3] sm:$0xff] (!%p3004_p12), %vm321_vm3, %v3736_v33  ;;  %480 = vst.msk [vmem:[#allocation3 + $0x8] sm:$0xff] (!%p3004_p12), %vm321_vm3, %v3736_v33 }
  0x7e   : > { %3265 = vmatpush1.bf16.msra.mxu1 (!%p3004_p12), %v3197_v31  ;;  %432 = vmatprep.mubr.f32.mxu1 (!%p3004_p12), %v3736_v33 }
  0x7f   : > { %3404 = vrcp.f32 %v346_v16  ;;  %3264 = vmatprep.subr.bf16.mxu1 (!%p3004_p12), %v3199_v32 }
  0x81   : > { %p3007_p11 = scmp.le.s32.totalorder (!%p3004_p12), %s481_s5, 0 }
  0x82   : > { %3266 = vmatpush1.bf16.msra.mxu1 (!%p3004_p12), %v3201_v34 }
  0x89   : > { %v4031_v20 = vpop.eup %3404 }
  0xe8   : > { %v236_v21 = vpop.permute.xlu0 %235 }
  0xe9   : > { %3118 = vmatprep.mubr.msk.f32.mxu0 %vm239_vm2, %v236_v21 }
  0xec   : > { %v238_v22 = vpop.permute.xlu0 %237 }
  0xed   : > { %3119 = vmatmul.mubr.msk.f32.vlgmr.msra.gmra.mrb[0].mxu0 %vm239_vm2, %v238_v22 }
  0xee   : > { %3198 = vmatpush1.bf16.msra.mxu0 (!%p3004_p12), %v3197_v31  ;;  %426 = vmatprep.mubr.f32.mxu0 (!%p3004_p12), %v3736_v33 }
  0xef   : > { %3200 = vmatprep.subr.bf16.mxu0 (!%p3004_p12), %v3199_v32 }
  0xf2   : > { %3202 = vmatpush1.bf16.msra.mxu0 (!%p3004_p12), %v3201_v34 }
 0x1c0   : > { %v3120_v24 = vpop.f32.mrb[0].mxu0  ;;  %353 = sbr.rel (%p3004_p12) target bundleno = 4480 (0x1180), region = 48 }
 0x1c1   : > { %v316_v25 = vadd.f32 %v3120_v24, %v3000_v23  ;;  %v310_v26 = vpop.f32.mrb[1].mxu0 }
 0x1c2   : > { %v311_v27 = vadd.f32 %v3000_v23, %v310_v26 }
 0x1c3   : > { %v320_v28 = vmax.f32 %v316_v25, 0.0 }
 0x1c4   : > { %v319_v29 = vmax.f32 %v311_v27, 0.0 }
 0x1c5   : > { %323 = vst.msk [vmem:[#allocation2 + $0x8] sm:$0xff] %vm321_vm3, %v320_v28 }
 0x1c6   : > { %322 = vst.msk [vmem:[#allocation2] sm:$0xff] %vm321_vm3, %v319_v29 }
 0x1c7   : > { %3275 = vpush (!%p3007_p11), %v3998_v2  ;;  %v3738_v44 = vmov (!%p3007_p11), 67   ;;  %v494_v45 = vlaneseq (!%p3007_p11)  ;;  %vm514_vm5 = vcmask (!%p3007_p11), 130048   ;;  %s3739_s10 = smov (!%p3007_p11), 96   ;;  %s3740_s6 = smov (!%p3007_p11), 32  }
 0x1c8   : > { %3406 = vset.pattern.permute.xlu0 (!%p3007_p11), %v3738_v44 }
 0x1c9   : > { %v495_v46 = vshrl.u32 (!%p3007_p11), %v494_v45, 7 }
 0x1cb   : > { %v496_v47 = vsub.s32 (!%p3007_p11), 0, %v495_v46 }
 0x1cc   : > { %v4050_v36 = vld [vmem:[#allocation2 + $0x8] sm:$0xff] }
 0x1cd   : > { %v4048_v35 = vld [vmem:[#allocation2] sm:$0xff]  ;;  %3006 = vmatmul.mubr.msk.f32.vlgmr.msra.gmra.mrb[0].mxu1 %vm321_vm3, %v4050_v36  ;;  %v636_v44 = vrot.slane (!%p3007_p11), %v4002_v3, %v496_v47 }
 0x1ce   : > { %3005 = vmatmul.mubr.msk.f32.vlgmr.msra.gmra.mrb[0].mxu0 %vm321_vm3, %v4048_v35 }
 0x1f8   : > { %s3276_s8 = spop (!%p3007_p11), %3275 }
 0x1f9   : > { %v502_v50 = vstv (!%p3007_p11), %s3276_s8 }
 0x2a0   : > { %v4058_v38 = vpop.f32.mrb[0].mxu1 }
 0x2a1   : > { %v4056_v37 = vpop.f32.mrb[0].mxu0  ;;  %v4062_v40 = vpop.f32.mrb[1].mxu1 }
 0x2a2   : > { %v4060_v39 = vpop.f32.mrb[1].mxu0 }
 0x2a3   : > { %441 = vrot.lane.b32.xlu0 %v4060_v39, %s3737_s28 }
 0x2a7   : > { %443 = vrot.lane.b32.xlu0 %v4062_v40, %s3737_s28 }
 0x2ab   : > { %487 = vperm.xlu0 (!%p3007_p11), %3406, %v4060_v39  }
 0x2af   : > { %491 = vperm.xlu0 (!%p3007_p11), %3406, %v4062_v40  }
 0x315   : > { %v442_v41 = vpop.permute.xlu0 %441 }
 0x316   : > { %447 = vxpose.xlu1.b32.start [1/2] (short) (narrow) %v442_v41, 8 }
 0x319   : > { %v444_v42 = vpop.permute.xlu0 %443 }
 0x31a   : > { %448 = vxpose.xlu1.b32.end [2/2] (short) (narrow) %v444_v42, 8  ;;  %v3203_v42 = vpack.c.bf16 (!%p3007_p11), %v4058_v38, %v4056_v37 }
 0x31c   : > { %3204 = vmatprep.subr.bf16.mxu0 (!%p3007_p11), %v3203_v42 }
 0x31d   : > { %3206 = vmatpush3.bf16.msra.mxu0 (!%p3007_p11), %v3203_v42 }
 0x32a   : > { %v488_v49 = vpop.permute.xlu0 (!%p3007_p11), %487 }
 0x32e   : > { %v492_v53 = vpop.permute.xlu0 (!%p3007_p11), %491 }
 0x390   : > { %485 = sbr.rel (%p3007_p11) target bundleno = 1731 (0x6c3), region = 52 }
 0x396   : > { %v4067_v43 = vpop.trf.xlu1 }
 0x397   : > { %v497_v48 = vrot.slane %v4067_v43, %v496_v47 }
 0x399   : > { %v498_v51 = vadd.f32 %v497_v48, %v488_v49  ;;  %v499_v55 = vadd.f32 %v497_v48, %v492_v53 }
 0x39b   : > { %v504_v52 = vadd.f32 %v502_v50, %v498_v51  ;;  %v505_v56 = vadd.f32 %v502_v50, %v499_v55 }
 0x39d   : > { %v508_v54 = vmul.f32 0.2, %v504_v52  ;;  %vm506_vm4 = vcmp.gt.f32.partialorder %v504_v52, 0.0  ;;  %vm507_vm6 = vcmp.gt.f32.partialorder %v505_v56, 0.0  ;;  %v509_v60 = vmul.f32 0.2, %v505_v56 }
 0x39f   : > { %v510_v57 = vsel %vm506_vm4, %v504_v52, %v508_v54  ;;  %v511_v61 = vsel %vm507_vm6, %v505_v56, %v509_v60 }
 0x3a0   : > { %v512_v58 = vsel %vm326_vm0, %v510_v57, -1e+30  ;;  %v513_v62 = vsel %vm327_vm1, %v511_v61, -1e+30 }
 0x3a1   : > { %v515_v59 = vsel %vm514_vm5, %v512_v58, -inf  ;;  %v518_v63 = vsel %vm514_vm5, %v513_v62, -inf }
 0x3a2   : > { %516 = vmax.xlane.f32.xlu1 %v515_v59 }
 0x3a6   : > { %519 = vmax.xlane.f32.xlu1 %v518_v63 }
 0x42f   : > { %v517_v5 = vpop.xlane.xlu1 %516 }
 0x433   : > { %v520_v9 = vpop.xlane.xlu1 %519 }
 0x434   : > { %v521_v16 = vmax.f32 %v517_v5, %v520_v9 }
 0x436   : > { %v522_v19 = vrot.slane %v521_v16, 4 }
 0x438   : > { %v523_v21 = vmax.f32 %v521_v16, %v522_v19 }
 0x43a   : > { %v524_v22 = vrot.slane %v523_v21, 2 }
 0x43c   : > { %v525_v23 = vmax.f32 %v523_v21, %v524_v22 }
 0x43e   : > { %v526_v24 = vrot.slane %v525_v23, 1 }
 0x440   : > { %v527_v25 = vmax.f32 %v525_v23, %v526_v24 }
 0x442   : > { %v529_v26 = vsub.f32 %v513_v62, %v527_v25  ;;  %v528_v27 = vsub.f32 %v512_v58, %v527_v25 }
 0x444   : > { %v532_v28 = vmul.f32 1.442695, %v529_v26  ;;  %v530_v29 = vmul.f32 1.442695, %v528_v27  ;;  %v655_v27 = vld [vmem:[#allocation3] sm:$0xff] }
 0x446   : > { %3407 = vpow2.f32 %v532_v28 }
 0x447   : > { %3409 = vpow2.f32 %v530_v29 }
 0x450   : > { %v3408_v30 = vpop.eup %3407 }
 0x451   : > { %v3410_v31 = vpop.eup %3409  ;;  %v535_v32 = vmul.f32 %v3408_v30, %v3996_v1  ;;  %v656_v30 = vld [vmem:[#allocation3 + $0x8] sm:$0xff] }
 0x452   : > { %v534_v33 = vmul.f32 %v3410_v31, %v3994_v0 }
 0x453   : > { %v539_v34 = vsel %vm514_vm5, %v535_v32, 0.0 }
 0x454   : > { %540 = vadd.xlane.f32.xlu1 %v539_v34  ;;  %v536_v41 = vsel %vm514_vm5, %v534_v33, 0.0 }
 0x455   : > { %537 = vadd.xlane.f32.xlu0 %v536_v41 }
 0x465   : > { %638 = vrot.lane.b32.xlu1 %v636_v44, %s3739_s10 }
 0x4e1   : > { %v541_v45 = vpop.xlane.xlu1 %540 }
 0x4e2   : > { %v538_v46 = vpop.xlane.xlu0 %537 }
 0x4e3   : > { %v542_v48 = vadd.f32 %v541_v45, %v538_v46 }
 0x4e5   : > { %v543_v49 = vrot.slane %v542_v48, 4  ;;  %v639_v59 = vpop.permute.xlu1 %638 }
 0x4e6   : > { %v641_v60 = vadd.f32 %v639_v59, %v4056_v37  ;;  %v642_v61 = vadd.f32 %v639_v59, %v4058_v38 }
 0x4e7   : > { %v544_v50 = vadd.f32 %v543_v49, %v542_v48 }
 0x4e8   : > { %v3010_v62 = vmul.f32 -1.442695, %v641_v60  ;;  %v3011_v63 = vmul.f32 -1.442695, %v642_v61 }
 0x4e9   : > { %v545_v51 = vrot.slane %v544_v50, 2 }
 0x4eb   : > { %v546_v52 = vadd.f32 %v545_v51, %v544_v50 }
 0x4ed   : > { %v547_v53 = vrot.slane %v546_v52, 1 }
 0x4ef   : > { %v548_v54 = vadd.f32 %v547_v53, %v546_v52 }
 0x4f1   : > { %3411 = vrcp.f32 %v548_v54 }
 0x4f2   : > { %3413 = vpow2.f32 %v3010_v62 }
 0x4f3   : > { %3415 = vpow2.f32 %v3011_v63 }
 0x4fb   : > { %v3412_v55 = vpop.eup %3411 }
 0x4fc   : > { %v550_v56 = vmul.f32 %v3412_v55, %v534_v33  ;;  %v551_v57 = vmul.f32 %v3412_v55, %v535_v32  ;;  %v3414_v5 = vpop.eup %3413 }
 0x4fd   : > { %v649_v9 = vadd.f32 1.0, %v3414_v5  ;;  %v3416_v16 = vpop.eup %3415 }
 0x4fe   : > { %3125 = vmatprep.mubr.msk.f32.mxu0 %vm514_vm5, %v550_v56  ;;  %v650_v19 = vadd.f32 1.0, %v3416_v16 }
 0x4ff   : > { %3126 = vmatmul.mubr.msk.f32.vlgmr.msra.gmra.mrb[0].mxu0 %vm514_vm5, %v551_v57  ;;  %3417 = vrcp.f32 %v649_v9 }
 0x500   : > { %3419 = vrcp.f32 %v650_v19 }
 0x509   : > { %v3418_v21 = vpop.eup %3417 }
 0x50a   : > { %v3420_v24 = vpop.eup %3419 }
 0x5d2   : > { %v3127_v47 = vpop.f32.mrb[0].mxu0 }
 0x5d3   : > { %v624_v58 = vpop.f32.mrb[1].mxu0 }
 0x5d4   : > { %659 = vrot.lane.b32.xlu1 %v624_v58, %s3739_s10 }
 0x5d8   : > { %661 = vrot.lane.b32.xlu1 %v3127_v47, %s3739_s10 }
 0x646   : > { %v660_v22 = vpop.permute.xlu1 %659 }
 0x647   : > { %v665_v23 = vmul.f32 %v3418_v21, %v660_v22 }
 0x649   : > { %669 = vrot.lane.b32.xlu1 %v665_v23, %s3740_s6 }
 0x64a   : > { %v662_v25 = vpop.permute.xlu1 %661 }
 0x64b   : > { %v666_v26 = vmul.f32 %v3420_v24, %v662_v25 }
 0x64d   : > { %671 = vrot.lane.b32.xlu0 %v666_v26, %s3740_s6 }
 0x6bb   : > { %v670_v28 = vpop.permute.xlu1 %669 }
 0x6bc   : > { %v675_v29 = vadd.f32 %v670_v28, %v655_v27 }
 0x6be   : > { %677 = vst.msk [vmem:[#allocation3] sm:$0xff] %vm321_vm3, %v675_v29 }
 0x6bf   : > { %v672_v31 = vpop.permute.xlu0 %671 }
 0x6c0   : > { %v676_v32 = vadd.f32 %v672_v31, %v656_v30 }
 0x6c2   : > { %678 = vst.msk [vmem:[#allocation3 + $0x8] sm:$0xff] %vm321_vm3, %v676_v32 }
 0x6c3 PF: > { %s679_s13 = sadd.s32 1, %s3982_s30 }
 0x6c4   : > { %s680_s14 = sld [smem:[#allocation5 + %s679_s13]] }
 0x6ca   : > { %p3012_p4 = scmp.le.s32.totalorder %s680_s14, 0 }
 0x6cb   : > { %s3741_s16 = smov (!%p3012_p4), 127   ;;  %v3742_v33 = vmov (!%p3012_p4), 68   ;;  %v693_v41 = vlaneseq (!%p3012_p4)  ;;  %s3743_s7 = smov (!%p3012_p4), 16   ;;  %vm723_vm9 = vcmask (!%p3012_p4), 261248   ;;  %vm753_vm10 = vcmask (!%p3012_p4), 130048  }
 0x6cc   : > { %684 = sbr.rel (%p3012_p4) target bundleno = 2825 (0xb09), region = 56  ;;  %700 = vrot.lane.b32.xlu0 (!%p3012_p4), %v3998_v2, %s3741_s16  ;;  %3422 = vset.pattern.permute.xlu1 (!%p3012_p4), %v3742_v33  ;;  %s3744_s19 = smov (!%p3012_p4), 112  }
 0x6cd   : > { %3421 = vset.pattern.permute.xlu0 (!%p3012_p4), %v3742_v33  ;;  %690 = vperm.xlu1 (!%p3012_p4), %3422, %v4062_v40   ;;  %v4096_v42 = vshrl.u32 (!%p3012_p4), %v693_v41, 7  ;;  %s3745_s20 = smov (!%p3012_p4), 96  }
 0x6cf   : > { %v695_v44 = vsub.s32 (!%p3012_p4), 1, %v4096_v42 }
 0x6d0   : > { %686 = vperm.xlu0 (!%p3012_p4), %3421, %v4060_v39  }
 0x6d1   : > { %v696_v45 = vrot.slane (!%p3012_p4), %v4067_v43, %v695_v44 }
 0x73e   : > { %v701_v34 = vpop.permute.xlu0 %700 }
 0x73f   : > { %3277 = vpush %v701_v34 }
 0x74c   : > { %v691_v46 = vpop.permute.xlu1 %690 }
 0x74d   : > { %v698_v49 = vadd.f32 %v696_v45, %v691_v46 }
 0x74f   : > { %v687_v48 = vpop.permute.xlu0 %686 }
 0x750   : > { %v697_v50 = vadd.f32 %v696_v45, %v687_v48  ;;  %v3423_v45 = vpack.i.bf16 %v4058_v38, %v4056_v37 }
 0x770   : > { %s3278_s17 = spop %3277 }
 0x771   : > { %v703_v51 = vstv %s3278_s17 }
 0x772   : > { %v705_v52 = vadd.f32 %v703_v51, %v697_v50  ;;  %v706_v53 = vadd.f32 %v703_v51, %v698_v49 }
 0x774   : > { %v709_v54 = vmul.f32 0.2, %v705_v52  ;;  %vm707_vm7 = vcmp.gt.f32.partialorder %v705_v52, 0.0  ;;  %v710_v55 = vmul.f32 0.2, %v706_v53  ;;  %vm708_vm8 = vcmp.gt.f32.partialorder %v706_v53, 0.0 }
 0x776   : > { %v711_v56 = vsel %vm707_vm7, %v705_v52, %v709_v54  ;;  %v712_v57 = vsel %vm708_vm8, %v706_v53, %v710_v55 }
 0x777   : > { %715 = vrot.lane.b32.xlu1 %v711_v56, %s3743_s7 }
 0x77b   : > { %717 = vrot.lane.b32.xlu1 %v712_v57, %s3743_s7 }
 0x7e9   : > { %v716_v47 = vpop.permute.xlu1 %715 }
 0x7ea   : > { %v721_v58 = vsel %vm326_vm0, %v716_v47, -1e+30 }
 0x7eb   : > { %v724_v59 = vsel %vm723_vm9, %v721_v58, -inf }
 0x7ec   : > { %725 = vmax.xlane.f32.xlu0 %v724_v59 }
 0x7ed   : > { %v718_v60 = vpop.permute.xlu1 %717 }
 0x7ee   : > { %v722_v61 = vsel %vm327_vm1, %v718_v60, -1e+30 }
 0x7ef   : > { %v727_v62 = vsel %vm723_vm9, %v722_v61, -inf }
 0x7f0   : > { %728 = vmax.xlane.f32.xlu1 %v727_v62 }
 0x879   : > { %v726_v63 = vpop.xlane.xlu0 %725 }
 0x87d   : > { %v729_v5 = vpop.xlane.xlu1 %728 }
 0x87e   : > { %v730_v9 = vmax.f32 %v726_v63, %v729_v5  ;;  %v865_v5 = vsub.s32 0, %v4096_v42  ;;  %v882_v42 = vld [vmem:[#allocation3 + $0x8] sm:$0xff] }
 0x880   : > { %v731_v16 = vrot.slane %v730_v9, 4 }
 0x882   : > { %v732_v19 = vmax.f32 %v730_v9, %v731_v16  ;;  %v866_v9 = vrot.slane %v4004_v4, %v865_v5 }
 0x884   : > { %v733_v21 = vrot.slane %v732_v19, 2  ;;  %v868_v16 = vadd.f32 %v866_v9, %v4062_v40 }
 0x886   : > { %v734_v22 = vmax.f32 %v732_v19, %v733_v21  ;;  %v867_v19 = vadd.f32 %v866_v9, %v4060_v39  ;;  %v3016_v21 = vmul.f32 -1.442695, %v868_v16 }
 0x888   : > { %v735_v23 = vrot.slane %v734_v22, 1 }
 0x88a   : > { %v736_v24 = vmax.f32 %v734_v22, %v735_v23  ;;  %v3015_v22 = vmul.f32 -1.442695, %v867_v19 }
 0x88c   : > { %v738_v25 = vsub.f32 %v722_v61, %v736_v24  ;;  %v737_v26 = vsub.f32 %v721_v58, %v736_v24 }
 0x88e   : > { %v741_v27 = vmul.f32 1.442695, %v738_v25  ;;  %v739_v28 = vmul.f32 1.442695, %v737_v26 }
 0x890   : > { %3428 = vpow2.f32 %v741_v27 }
 0x891   : > { %3430 = vpow2.f32 %v739_v28 }
 0x89a   : > { %v3429_v29 = vpop.eup %3428 }
 0x89b   : > { %v3431_v30 = vpop.eup %3430  ;;  %v744_v31 = vmul.f32 %v3429_v29, %v3996_v1 }
 0x89c   : > { %v743_v32 = vmul.f32 %v3431_v30, %v3994_v0 }
 0x89d   : > { %749 = vrot.lane.b32.xlu1 %v744_v31, %s3744_s19 }
 0x89e   : > { %747 = vrot.lane.b32.xlu0 %v743_v32, %s3744_s19 }
 0x90f   : > { %v750_v33 = vpop.permute.xlu1 %749 }
 0x910   : > { %v748_v34 = vpop.permute.xlu0 %747  ;;  %v757_v41 = vsel %vm753_vm10, %v750_v33, 0.0 }
 0x911   : > { %758 = vadd.xlane.f32.xlu1 %v757_v41  ;;  %v754_v44 = vsel %vm753_vm10, %v748_v34, 0.0 }
 0x912   : > { %755 = vadd.xlane.f32.xlu0 %v754_v44 }
 0x928   : > { %3424 = vrot.lane.b32.xlu0 %v3423_v45, %s3745_s20 }
 0x99e   : > { %v759_v46 = vpop.xlane.xlu1 %758 }
 0x99f   : > { %v756_v48 = vpop.xlane.xlu0 %755 }
 0x9a0   : > { %v760_v49 = vadd.f32 %v759_v46, %v756_v48 }
 0x9a2   : > { %v761_v50 = vrot.slane %v760_v49, 4 }
 0x9a3   : > { %v3425_v51 = vpop.permute.xlu0 %3424 }
 0x9a4   : > { %v762_v52 = vadd.f32 %v761_v50, %v760_v49  ;;  %v3427_v53 = vunpack.i.h.bf16 %v3425_v51  ;;  %v3426_v54 = vunpack.i.l.bf16 %v3425_v51 }
 0x9a6   : > { %v763_v55 = vrot.slane %v762_v52, 2  ;;  %v3207_v56 = vpack.c.bf16 %v3427_v53, %v3426_v54 }
 0x9a8   : > { %v764_v57 = vadd.f32 %v763_v55, %v762_v52  ;;  %3208 = vmatprep.subr.bf16.mxu0 %v3207_v56 }
 0x9a9   : > { %3210 = vmatpush3.bf16.msra.mxu0 %v3207_v56 }
 0x9aa   : > { %v765_v47 = vrot.slane %v764_v57, 1 }
 0x9ac   : > { %v766_v58 = vadd.f32 %v765_v47, %v764_v57 }
 0x9ae   : > { %3432 = vrcp.f32 %v766_v58 }
 0x9af   : > { %3434 = vpow2.f32 %v3016_v21 }
 0x9b0   : > { %3436 = vpow2.f32 %v3015_v22 }
 0x9b8   : > { %v3433_v59 = vpop.eup %3432 }
 0x9b9   : > { %v769_v60 = vmul.f32 %v3433_v59, %v744_v31  ;;  %v768_v61 = vmul.f32 %v3433_v59, %v743_v32  ;;  %v3435_v23 = vpop.eup %3434  ;;  %v881_v32 = vld [vmem:[#allocation3] sm:$0xff] }
 0x9ba   : > { %v3437_v24 = vpop.eup %3436  ;;  %v876_v25 = vadd.f32 1.0, %v3435_v23 }
 0x9bb   : > { %774 = vrot.lane.b32.xlu0 %v769_v60, %s3744_s19  ;;  %772 = vrot.lane.b32.xlu1 %v768_v61, %s3744_s19  ;;  %v875_v26 = vadd.f32 1.0, %v3437_v24 }
 0x9bc   : > { %3438 = vrcp.f32 %v876_v25 }
 0x9bd   : > { %3440 = vrcp.f32 %v875_v26 }
 0x9c6   : > { %v3439_v27 = vpop.eup %3438 }
 0x9c7   : > { %v3441_v28 = vpop.eup %3440 }
 0xa2d   : > { %v773_v62 = vpop.permute.xlu1 %772  ;;  %v775_v63 = vpop.permute.xlu0 %774 }
 0xa2e   : > { %3132 = vmatprep.mubr.msk.f32.mxu0 %vm753_vm10, %v773_v62 }
 0xa2f   : > { %3133 = vmatmul.mubr.msk.f32.vlgmr.msra.gmra.mrb[0].mxu0 %vm753_vm10, %v775_v63 }
 0xb02   : > { %v3134_v29 = vpop.f32.mrb[0].mxu0 }
 0xb03   : > { %v884_v30 = vmul.f32 %v3439_v27, %v3134_v29  ;;  %v854_v31 = vpop.f32.mrb[1].mxu0 }
 0xb04   : > { %v883_v33 = vmul.f32 %v3441_v28, %v854_v31 }
 0xb05   : > { %v886_v34 = vadd.f32 %v884_v30, %v882_v42 }
 0xb06   : > { %v885_v41 = vadd.f32 %v883_v33, %v881_v32 }
 0xb07   : > { %888 = vst.msk [vmem:[#allocation3 + $0x8] sm:$0xff] %vm321_vm3, %v886_v34 }
 0xb08   : > { %887 = vst.msk [vmem:[#allocation3] sm:$0xff] %vm321_vm3, %v885_v41 }
 0xb09 PF: > { %s889_s21 = sadd.s32 2, %s3982_s30 }
 0xb0a   : > { %s890_s22 = sld [smem:[#allocation5 + %s889_s21]] }
 0xb10   : > { %p3017_p7 = scmp.le.s32.totalorder %s890_s22, 0 }
 0xb11   : > { %s3746_s9 = smov (!%p3017_p7), 126   ;;  %v3747_v44 = vmov (!%p3017_p7), 69   ;;  %v903_v46 = vlaneseq (!%p3017_p7)  ;;  %s3748_s29 = smov (!%p3017_p7), 32   ;;  %vm933_vm13 = vcmask (!%p3017_p7), 392448   ;;  %vm963_vm14 = vcmask (!%p3017_p7), 130048  }
 0xb12   : > { %894 = sbr.rel (%p3017_p7) target bundleno = 4149 (0x1035), region = 60  ;;  %910 = vrot.lane.b32.xlu0 (!%p3017_p7), %v3998_v2, %s3746_s9  ;;  %3443 = vset.pattern.permute.xlu1 (!%p3017_p7), %v3747_v44  ;;  %s3749_s23 = smov (!%p3017_p7), 96  }
 0xb13   : > { %3442 = vset.pattern.permute.xlu0 (!%p3017_p7), %v3747_v44  ;;  %900 = vperm.xlu1 (!%p3017_p7), %3443, %v4062_v40   ;;  %v4126_v48 = vshrl.u32 (!%p3017_p7), %v903_v46, 7  ;;  %s3750_s24 = smov (!%p3017_p7), 64  }
 0xb15   : > { %v905_v49 = vsub.s32 (!%p3017_p7), 2, %v4126_v48 }
 0xb16   : > { %896 = vperm.xlu0 (!%p3017_p7), %3442, %v4060_v39  }
 0xb17   : > { %v906_v50 = vrot.slane (!%p3017_p7), %v4067_v43, %v905_v49  ;;  %v3444_v49 = vpack.i.bf16 (!%p3017_p7), %v4058_v38, %v4056_v37  ;;  %v1075_v37 = vsub.s32 (!%p3017_p7), 0, %v4126_v48 }
 0xb84   : > { %v911_v45 = vpop.permute.xlu0 %910 }
 0xb85   : > { %3279 = vpush %v911_v45 }
 0xb92   : > { %v901_v51 = vpop.permute.xlu1 %900 }
 0xb93   : > { %v908_v53 = vadd.f32 %v906_v50, %v901_v51 }
 0xb95   : > { %v897_v52 = vpop.permute.xlu0 %896 }
 0xb96   : > { %v907_v54 = vadd.f32 %v906_v50, %v897_v52 }
 0xbb6   : > { %s3280_s11 = spop %3279 }
 0xbb7   : > { %v913_v55 = vstv %s3280_s11 }
 0xbb8   : > { %v915_v56 = vadd.f32 %v913_v55, %v907_v54  ;;  %v916_v57 = vadd.f32 %v913_v55, %v908_v53 }
 0xbba   : > { %v919_v47 = vmul.f32 0.2, %v915_v56  ;;  %vm917_vm11 = vcmp.gt.f32.partialorder %v915_v56, 0.0  ;;  %v920_v58 = vmul.f32 0.2, %v916_v57  ;;  %vm918_vm12 = vcmp.gt.f32.partialorder %v916_v57, 0.0 }
 0xbbc   : > { %v921_v59 = vsel %vm917_vm11, %v915_v56, %v919_v47  ;;  %v922_v60 = vsel %vm918_vm12, %v916_v57, %v920_v58 }
 0xbbd   : > { %925 = vrot.lane.b32.xlu1 %v921_v59, %s3748_s29 }
 0xbc1   : > { %927 = vrot.lane.b32.xlu1 %v922_v60, %s3748_s29 }
 0xc2f   : > { %v926_v43 = vpop.permute.xlu1 %925 }
 0xc30   : > { %v931_v61 = vsel %vm326_vm0, %v926_v43, -1e+30 }
 0xc31   : > { %v934_v62 = vsel %vm933_vm13, %v931_v61, -inf }
 0xc32   : > { %935 = vmax.xlane.f32.xlu0 %v934_v62 }
 0xc33   : > { %v928_v63 = vpop.permute.xlu1 %927 }
 0xc34   : > { %v932_v5 = vsel %vm327_vm1, %v928_v63, -1e+30  ;;  %v1076_v63 = vrot.slane %v4008_v6, %v1075_v37 }
 0xc35   : > { %v937_v9 = vsel %vm933_vm13, %v932_v5, -inf }
 0xc36   : > { %938 = vmax.xlane.f32.xlu1 %v937_v9 }
 0xcbf   : > { %v936_v16 = vpop.xlane.xlu0 %935 }
 0xcc3   : > { %v939_v19 = vpop.xlane.xlu1 %938 }
 0xcc4   : > { %v940_v21 = vmax.f32 %v936_v16, %v939_v19 }
 0xcc6   : > { %v941_v22 = vrot.slane %v940_v21, 4 }
 0xcc8   : > { %v942_v23 = vmax.f32 %v940_v21, %v941_v22 }
 0xcca   : > { %v943_v24 = vrot.slane %v942_v23, 2 }
 0xccc   : > { %v944_v25 = vmax.f32 %v942_v23, %v943_v24 }
 0xcce   : > { %v945_v26 = vrot.slane %v944_v25, 1 }
 0xcd0   : > { %v946_v27 = vmax.f32 %v944_v25, %v945_v26 }
 0xcd2   : > { %v948_v28 = vsub.f32 %v932_v5, %v946_v27  ;;  %v947_v29 = vsub.f32 %v931_v61, %v946_v27 }
 0xcd4   : > { %v951_v42 = vmul.f32 1.442695, %v948_v28  ;;  %v949_v30 = vmul.f32 1.442695, %v947_v29 }
 0xcd6   : > { %3449 = vpow2.f32 %v951_v42 }
 0xcd7   : > { %3451 = vpow2.f32 %v949_v30 }
 0xce0   : > { %v3450_v31 = vpop.eup %3449 }
 0xce1   : > { %v3452_v32 = vpop.eup %3451  ;;  %v954_v33 = vmul.f32 %v3450_v31, %v3996_v1 }
 0xce2   : > { %v953_v34 = vmul.f32 %v3452_v32, %v3994_v0 }
 0xce3   : > { %959 = vrot.lane.b32.xlu1 %v954_v33, %s3749_s23 }
 0xce4   : > { %957 = vrot.lane.b32.xlu0 %v953_v34, %s3749_s23 }
 0xd55   : > { %v960_v41 = vpop.permute.xlu1 %959 }
 0xd56   : > { %v958_v44 = vpop.permute.xlu0 %957  ;;  %v967_v45 = vsel %vm963_vm14, %v960_v41, 0.0 }
 0xd57   : > { %968 = vadd.xlane.f32.xlu1 %v967_v45  ;;  %v964_v46 = vsel %vm963_vm14, %v958_v44, 0.0 }
 0xd58   : > { %965 = vadd.xlane.f32.xlu0 %v964_v46 }
 0xd6e   : > { %3445 = vrot.lane.b32.xlu0 %v3444_v49, %s3750_s24 }
 0xde4   : > { %v969_v50 = vpop.xlane.xlu1 %968 }
 0xde5   : > { %v966_v51 = vpop.xlane.xlu0 %965 }
 0xde6   : > { %v970_v52 = vadd.f32 %v969_v50, %v966_v51 }
 0xde8   : > { %v971_v53 = vrot.slane %v970_v52, 4 }
 0xde9   : > { %v3446_v54 = vpop.permute.xlu0 %3445 }
 0xdea   : > { %v972_v55 = vadd.f32 %v971_v53, %v970_v52  ;;  %v3448_v56 = vunpack.i.h.bf16 %v3446_v54  ;;  %v3447_v57 = vunpack.i.l.bf16 %v3446_v54 }
 0xdec   : > { %v973_v47 = vrot.slane %v972_v55, 2  ;;  %v3211_v58 = vpack.c.bf16 %v3448_v56, %v3447_v57 }
 0xdee   : > { %v974_v59 = vadd.f32 %v973_v47, %v972_v55  ;;  %3212 = vmatprep.subr.bf16.mxu0 %v3211_v58 }
 0xdef   : > { %3214 = vmatpush3.bf16.msra.mxu0 %v3211_v58 }
 0xdf0   : > { %v975_v60 = vrot.slane %v974_v59, 1 }
 0xdf2   : > { %v976_v43 = vadd.f32 %v975_v60, %v974_v59 }
 0xdf4   : > { %3453 = vrcp.f32 %v976_v43 }
 0xdfe   : > { %v3454_v38 = vpop.eup %3453 }
 0xdff   : > { %v979_v61 = vmul.f32 %v3454_v38, %v954_v33  ;;  %v978_v62 = vmul.f32 %v3454_v38, %v953_v34 }
 0xe01   : > { %984 = vrot.lane.b32.xlu0 %v979_v61, %s3749_s23  ;;  %982 = vrot.lane.b32.xlu1 %v978_v62, %s3749_s23 }
 0xe05   : > { %1078 = vrot.lane.b32.xlu1 %v1076_v63, %s3748_s29 }
 0xe73   : > { %v983_v5 = vpop.permute.xlu1 %982  ;;  %v985_v9 = vpop.permute.xlu0 %984 }
 0xe74   : > { %3139 = vmatprep.mubr.msk.f32.mxu0 %vm963_vm14, %v983_v5 }
 0xe75   : > { %3140 = vmatmul.mubr.msk.f32.vlgmr.msra.gmra.mrb[0].mxu0 %vm963_vm14, %v985_v9 }
 0xe77   : > { %v1079_v19 = vpop.permute.xlu1 %1078 }
 0xe78   : > { %v1082_v21 = vadd.f32 %v1079_v19, %v4062_v40  ;;  %v1081_v22 = vadd.f32 %v1079_v19, %v4060_v39  ;;  %v1096_v39 = vld [vmem:[#allocation3 + $0x8] sm:$0xff]  ;;  %v1095_v40 = vld [vmem:[#allocation3] sm:$0xff] }
 0xe7a   : > { %v3021_v23 = vmul.f32 -1.442695, %v1082_v21  ;;  %v3020_v24 = vmul.f32 -1.442695, %v1081_v22 }
 0xe7c   : > { %3455 = vpow2.f32 %v3021_v23 }
 0xe7d   : > { %3457 = vpow2.f32 %v3020_v24 }
 0xe86   : > { %v3456_v25 = vpop.eup %3455 }
 0xe87   : > { %v3458_v26 = vpop.eup %3457  ;;  %v1090_v27 = vadd.f32 1.0, %v3456_v25 }
 0xe88   : > { %v1089_v28 = vadd.f32 1.0, %v3458_v26 }
 0xe89   : > { %3459 = vrcp.f32 %v1090_v27 }
 0xe8a   : > { %3461 = vrcp.f32 %v1089_v28 }
 0xe93   : > { %v3460_v29 = vpop.eup %3459 }
 0xe94   : > { %v3462_v42 = vpop.eup %3461 }
 0xf48   : > { %v3141_v16 = vpop.f32.mrb[0].mxu0 }
 0xf49   : > { %1101 = vrot.lane.b32.xlu1 %v3141_v16, %s3748_s29  ;;  %v1064_v48 = vpop.f32.mrb[1].mxu0 }
 0xf4a   : > { %1099 = vrot.lane.b32.xlu0 %v1064_v48, %s3748_s29 }
 0xfbb   : > { %v1102_v30 = vpop.permute.xlu1 %1101 }
 0xfbc   : > { %v1106_v31 = vmul.f32 %v3460_v29, %v1102_v30  ;;  %v1100_v32 = vpop.permute.xlu0 %1099 }
 0xfbd   : > { %v1105_v33 = vmul.f32 %v3462_v42, %v1100_v32 }
 0xfbe   : > { %1111 = vrot.lane.b32.xlu1 %v1106_v31, %s3749_s23 }
 0xfbf   : > { %1109 = vrot.lane.b32.xlu0 %v1105_v33, %s3749_s23 }
0x1030   : > { %v1112_v34 = vpop.permute.xlu1 %1111 }
0x1031   : > { %v1116_v41 = vadd.f32 %v1112_v34, %v1096_v39  ;;  %v1110_v44 = vpop.permute.xlu0 %1109 }
0x1032   : > { %v1115_v45 = vadd.f32 %v1110_v44, %v1095_v40 }
0x1033   : > { %1118 = vst.msk [vmem:[#allocation3 + $0x8] sm:$0xff] %vm321_vm3, %v1116_v41 }
0x1034   : > { %1117 = vst.msk [vmem:[#allocation3] sm:$0xff] %vm321_vm3, %v1115_v45 }
0x1035 PF:  {}
0x103a   : > { %v1120_v49 = vld [vmem:[#allocation3 + $0x8] sm:$0xff] }
0x103b   : > { %v1119_v46 = vld [vmem:[#allocation3] sm:$0xff]  ;;  %v1122_v51 = vmul.f32 %v4031_v20, %v1120_v49 }
0x103c   : > { %v1121_v50 = vmul.f32 %v4031_v20, %v1119_v46 }
0x103d   : > { %v1124_v53 = vadd.f32 %v1122_v51, %v4050_v36 }
0x103e   : > { %v1123_v52 = vadd.f32 %v1121_v50, %v4048_v35 }
0x103f   : > { %v1128_v55 = vsel %vm321_vm3, %v1124_v53, 0.0 }
0x1040   : > { %v1125_v54 = vsel %vm321_vm3, %v1123_v52, 0.0 }
0x1041   : > { %1126 = vadd.xlane.f32.xlu0 %v1125_v54 }
0x1045   : > { %1129 = vadd.xlane.f32.xlu0 %v1128_v55 }
0x10ce   : > { %v1127_v56 = vpop.xlane.xlu0 %1126 }
0x10cf   : > { %v1132_v57 = vmul.f32 0.03125, %v1127_v56 }
0x10d1   : > { %v1134_v47 = vsub.f32 %v1123_v52, %v1132_v57 }
0x10d2   : > { %v1130_v58 = vpop.xlane.xlu0 %1129 }
0x10d3   : > { %v1133_v59 = vmul.f32 0.03125, %v1130_v58  ;;  %v1136_v60 = vmul.f32 %v1134_v47, %v1134_v47 }
0x10d5   : > { %v1135_v43 = vsub.f32 %v1124_v53, %v1133_v59  ;;  %v1138_v37 = vsel %vm321_vm3, %v1136_v60, 0.0 }
0x10d6   : > { %1139 = vadd.xlane.f32.xlu1 %v1138_v37 }
0x10d7   : > { %v1137_v38 = vmul.f32 %v1135_v43, %v1135_v43 }
0x10d9   : > { %v1141_v35 = vsel %vm321_vm3, %v1137_v38, 0.0 }
0x10da   : > { %1142 = vadd.xlane.f32.xlu1 %v1141_v35 }
0x1163   : > { %v1140_v36 = vpop.xlane.xlu1 %1139 }
0x1164   : > { %v1144_v61 = vmul.f32 0.03125, %v1140_v36 }
0x1166   : > { %v1146_v62 = vadd.f32 1e-05, %v1144_v61 }
0x1167   : > { %v1143_v63 = vpop.xlane.xlu1 %1142 }
0x1168   : > { %3463 = vrsqrt.f32 %v1146_v62  ;;  %v1145_v5 = vmul.f32 0.03125, %v1143_v63 }
0x116a   : > { %v1147_v9 = vadd.f32 1e-05, %v1145_v5 }
0x116c   : > { %3465 = vrsqrt.f32 %v1147_v9 }
0x1172   : > { %v3464_v16 = vpop.eup %3463 }
0x1173   : > { %v1150_v48 = vmul.f32 %v3464_v16, %v1134_v47 }
0x1175   : > { %v1156_v19 = vmul.f32 %v4026_v17, %v1150_v48 }
0x1176   : > { %v3466_v21 = vpop.eup %3465 }
0x1177   : > { %v1162_v22 = vadd.f32 %v4028_v18, %v1156_v19  ;;  %v1151_v23 = vmul.f32 %v3466_v21, %v1135_v43 }
0x1179   : > { %v1164_v24 = vmax.f32 %v1162_v22, 0.0  ;;  %v1157_v25 = vmul.f32 %v4026_v17, %v1151_v23 }
0x117b   : > { %1166 = vst.msk [vmem:[#allocation2] sm:$0xff] %vm321_vm3, %v1164_v24  ;;  %v1163_v26 = vadd.f32 %v4028_v18, %v1157_v25 }
0x117d   : > { %v1165_v27 = vmax.f32 %v1163_v26, 0.0 }
0x117f   : > { %1167 = vst.msk [vmem:[#allocation2 + $0x8] sm:$0xff] %vm321_vm3, %v1165_v27 }
0x1180 PF: > { %v4173_v28 = vld [vmem:[#allocation10 + $0x7] ss:$0 sm:$0xff]  ;;  %v4175_v29 = vld [vmem:[#allocation10 + $0xa] ss:$0 sm:$0xff]  ;;  %1172 = sbr.rel (%p3004_p12) target bundleno = 8508 (0x213c), region = 64  ;;  %v3215_v42 = vpack.c.bf16 (!%p3004_p12), %v4016_v11, %v4012_v8  ;;  %v3217_v17 = vpack.c.bf16 (!%p3004_p12), %v4014_v10, %v4010_v7  ;;  %v3219_v18 = vpack.c.bf16 (!%p3004_p12), %v4024_v15, %v4020_v13  ;;  %v3751_v30 = vmov (!%p3004_p12), 0.0  }
0x1181   : > { %1298 = vst.msk [vmem:[#allocation3] sm:$0xff] (!%p3004_p12), %vm321_vm3, %v3751_v30  ;;  %1299 = vst.msk [vmem:[#allocation3 + $0x8] sm:$0xff] (!%p3004_p12), %vm321_vm3, %v3751_v30  ;;  %v3221_v31 = vpack.c.bf16 (!%p3004_p12), %v4022_v14, %v4018_v12  ;;  %1245 = vmatprep.mubr.f32.mxu0 (!%p3004_p12), %v3751_v30  ;;  %1251 = vmatprep.mubr.f32.mxu1 (!%p3004_p12), %v3751_v30  ;;  %s3752_s0 = smov (!%p3004_p12), 64   ;;  %s1300_s28 = sld [smem:[#allocation5 + %s3982_s30]] (!%p3004_p12) }
0x1182   : > { %3216 = vmatprep.subr.bf16.mxu0 (!%p3004_p12), %v3215_v42  ;;  %3267 = vmatprep.subr.bf16.mxu1 (!%p3004_p12), %v3215_v42 }
0x1183   : > { %3218 = vmatpush1.bf16.msra.mxu0 (!%p3004_p12), %v3217_v17  ;;  %3269 = vmatpush1.bf16.msra.mxu1 (!%p3004_p12), %v3217_v17 }
0x1184   : > { %3220 = vmatprep.subr.bf16.mxu0 (!%p3004_p12), %v3219_v18  ;;  %3268 = vmatprep.subr.bf16.mxu1 (!%p3004_p12), %v3219_v18 }
0x1186   : > { %v4189_v32 = vld [vmem:[#allocation2] sm:$0xff] (!%p3004_p12)  ;;  %v4191_v33 = vld [vmem:[#allocation2 + $0x8] sm:$0xff] (!%p3004_p12) }
0x1187   : > { %3222 = vmatpush1.bf16.msra.mxu0 %v3221_v31  ;;  %3270 = vmatpush1.bf16.msra.mxu1 %v3221_v31  ;;  %p3027_p8 = scmp.le.s32.totalorder %s1300_s28, 0 }
0x1188   : > { %3281 = vpush (!%p3027_p8), %v3998_v2  ;;  %v3753_v49 = vmov (!%p3027_p8), 67   ;;  %v1313_v50 = vlaneseq (!%p3027_p8)  ;;  %vm1333_vm2 = vcmask (!%p3027_p8), 130048   ;;  %s3754_s8 = smov (!%p3027_p8), 96   ;;  %s3755_s10 = smov (!%p3027_p8), 32  }
0x1189   : > { %3467 = vset.pattern.permute.xlu0 (!%p3027_p8), %v3753_v49 }
0x118a   : > { %3025 = vmatmul.mubr.msk.f32.vlgmr.msra.gmra.mrb[0].mxu0 %vm321_vm3, %v4189_v32  ;;  %3026 = vmatmul.mubr.msk.f32.vlgmr.msra.gmra.mrb[0].mxu1 %vm321_vm3, %v4191_v33  ;;  %v1314_v51 = vshrl.u32 (!%p3027_p8), %v1313_v50, 7 }
0x118c   : > { %v1315_v52 = vsub.s32 (!%p3027_p8), 0, %v1314_v51 }
0x118e   : > { %v1455_v49 = vrot.slane (!%p3027_p8), %v4002_v3, %v1315_v52 }
0x11b9   : > { %s3282_s5 = spop (!%p3027_p8), %3281 }
0x11ba   : > { %v1321_v55 = vstv (!%p3027_p8), %s3282_s5 }
0x125d   : > { %v4197_v39 = vpop.f32.mrb[0].mxu0  ;;  %v4199_v40 = vpop.f32.mrb[0].mxu1 }
0x125e   : > { %v4201_v34 = vpop.f32.mrb[1].mxu0  ;;  %v4203_v41 = vpop.f32.mrb[1].mxu1 }
0x125f   : > { %1260 = vrot.lane.b32.xlu0 %v4201_v34, %s3752_s0 }
0x1263   : > { %1262 = vrot.lane.b32.xlu0 %v4203_v41, %s3752_s0 }
0x1267   : > { %1306 = vperm.xlu0 (!%p3027_p8), %3467, %v4201_v34  }
0x126b   : > { %1310 = vperm.xlu0 (!%p3027_p8), %3467, %v4203_v41  }
0x12d1   : > { %v1261_v44 = vpop.permute.xlu0 %1260 }
0x12d2   : > { %1266 = vxpose.xlu1.b32.start [1/2] (short) (narrow) %v1261_v44, 8 }
0x12d5   : > { %v1263_v45 = vpop.permute.xlu0 %1262 }
0x12d6   : > { %1267 = vxpose.xlu1.b32.end [2/2] (short) (narrow) %v1263_v45, 8  ;;  %v3223_v45 = vpack.c.bf16 (!%p3027_p8), %v4199_v40, %v4197_v39 }
0x12d8   : > { %3224 = vmatprep.subr.bf16.mxu0 (!%p3027_p8), %v3223_v45 }
0x12d9   : > { %3226 = vmatpush3.bf16.msra.mxu0 (!%p3027_p8), %v3223_v45 }
0x12e6   : > { %v1307_v54 = vpop.permute.xlu0 (!%p3027_p8), %1306 }
0x12ea   : > { %v1311_v47 = vpop.permute.xlu0 (!%p3027_p8), %1310 }
0x134c   : > { %1304 = sbr.rel (%p3027_p8) target bundleno = 5759 (0x167f), region = 68 }
0x1352   : > { %v4208_v46 = vpop.trf.xlu1 }
0x1353   : > { %v1316_v53 = vrot.slane %v4208_v46, %v1315_v52 }
0x1355   : > { %v1317_v56 = vadd.f32 %v1316_v53, %v1307_v54  ;;  %v1318_v59 = vadd.f32 %v1316_v53, %v1311_v47 }
0x1357   : > { %v1323_v57 = vadd.f32 %v1321_v55, %v1317_v56  ;;  %v1324_v60 = vadd.f32 %v1321_v55, %v1318_v59 }
0x1359   : > { %v1327_v58 = vmul.f32 0.2, %v1323_v57  ;;  %vm1325_vm15 = vcmp.gt.f32.partialorder %v1323_v57, 0.0  ;;  %vm1326_vm4 = vcmp.gt.f32.partialorder %v1324_v60, 0.0  ;;  %v1328_v35 = vmul.f32 0.2, %v1324_v60 }
0x135b   : > { %v1329_v43 = vsel %vm1325_vm15, %v1323_v57, %v1327_v58  ;;  %v1330_v36 = vsel %vm1326_vm4, %v1324_v60, %v1328_v35 }
0x135c   : > { %v1331_v37 = vsel %vm326_vm0, %v1329_v43, -1e+30  ;;  %v1332_v61 = vsel %vm327_vm1, %v1330_v36, -1e+30 }
0x135d   : > { %v1334_v38 = vsel %vm1333_vm2, %v1331_v37, -inf  ;;  %v1337_v62 = vsel %vm1333_vm2, %v1332_v61, -inf }
0x135e   : > { %1335 = vmax.xlane.f32.xlu1 %v1334_v38 }
0x1362   : > { %1338 = vmax.xlane.f32.xlu1 %v1337_v62 }
0x13eb   : > { %v1336_v63 = vpop.xlane.xlu1 %1335 }
0x13ef   : > { %v1339_v5 = vpop.xlane.xlu1 %1338 }
0x13f0   : > { %v1340_v9 = vmax.f32 %v1336_v63, %v1339_v5 }
0x13f2   : > { %v1341_v16 = vrot.slane %v1340_v9, 4 }
0x13f4   : > { %v1342_v48 = vmax.f32 %v1340_v9, %v1341_v16 }
0x13f6   : > { %v1343_v19 = vrot.slane %v1342_v48, 2 }
0x13f8   : > { %v1344_v21 = vmax.f32 %v1342_v48, %v1343_v19 }
0x13fa   : > { %v1345_v22 = vrot.slane %v1344_v21, 1 }
0x13fc   : > { %v1346_v23 = vmax.f32 %v1344_v21, %v1345_v22 }
0x13fe   : > { %v1348_v24 = vsub.f32 %v1332_v61, %v1346_v23  ;;  %v1347_v25 = vsub.f32 %v1331_v37, %v1346_v23 }
0x1400   : > { %v1351_v26 = vmul.f32 1.442695, %v1348_v24  ;;  %v1349_v27 = vmul.f32 1.442695, %v1347_v25  ;;  %v1474_v25 = vld [vmem:[#allocation3] sm:$0xff] }
0x1402   : > { %3468 = vpow2.f32 %v1351_v26 }
0x1403   : > { %3470 = vpow2.f32 %v1349_v27 }
0x140c   : > { %v3469_v42 = vpop.eup %3468 }
0x140d   : > { %v3471_v17 = vpop.eup %3470  ;;  %v1354_v18 = vmul.f32 %v3469_v42, %v3996_v1  ;;  %v1475_v42 = vld [vmem:[#allocation3 + $0x8] sm:$0xff] }
0x140e   : > { %v1353_v30 = vmul.f32 %v3471_v17, %v3994_v0 }
0x140f   : > { %v1358_v31 = vsel %vm1333_vm2, %v1354_v18, 0.0 }
0x1410   : > { %1359 = vadd.xlane.f32.xlu1 %v1358_v31  ;;  %v1355_v44 = vsel %vm1333_vm2, %v1353_v30, 0.0 }
0x1411   : > { %1356 = vadd.xlane.f32.xlu0 %v1355_v44 }
0x1421   : > { %1457 = vrot.lane.b32.xlu1 %v1455_v49, %s3754_s8 }
0x149d   : > { %v1360_v50 = vpop.xlane.xlu1 %1359 }
0x149e   : > { %v1357_v51 = vpop.xlane.xlu0 %1356 }
0x149f   : > { %v1361_v53 = vadd.f32 %v1360_v50, %v1357_v51 }
0x14a1   : > { %v1362_v54 = vrot.slane %v1361_v53, 4  ;;  %v1458_v38 = vpop.permute.xlu1 %1457 }
0x14a2   : > { %v1460_v35 = vadd.f32 %v1458_v38, %v4197_v39  ;;  %v1461_v36 = vadd.f32 %v1458_v38, %v4199_v40 }
0x14a3   : > { %v1363_v55 = vadd.f32 %v1362_v54, %v1361_v53 }
0x14a4   : > { %v3030_v61 = vmul.f32 -1.442695, %v1460_v35  ;;  %v3031_v62 = vmul.f32 -1.442695, %v1461_v36 }
0x14a5   : > { %v1364_v56 = vrot.slane %v1363_v55, 2 }
0x14a7   : > { %v1365_v57 = vadd.f32 %v1364_v56, %v1363_v55 }
0x14a9   : > { %v1366_v47 = vrot.slane %v1365_v57, 1 }
0x14ab   : > { %v1367_v58 = vadd.f32 %v1366_v47, %v1365_v57 }
0x14ad   : > { %3472 = vrcp.f32 %v1367_v58 }
0x14ae   : > { %3474 = vpow2.f32 %v3030_v61 }
0x14af   : > { %3476 = vpow2.f32 %v3031_v62 }
0x14b7   : > { %v3473_v59 = vpop.eup %3472 }
0x14b8   : > { %v1369_v60 = vmul.f32 %v3473_v59, %v1353_v30  ;;  %v1370_v43 = vmul.f32 %v3473_v59, %v1354_v18  ;;  %v3475_v63 = vpop.eup %3474 }
0x14b9   : > { %v1468_v5 = vadd.f32 1.0, %v3475_v63  ;;  %v3477_v9 = vpop.eup %3476 }
0x14ba   : > { %3146 = vmatprep.mubr.msk.f32.mxu0 %vm1333_vm2, %v1369_v60  ;;  %v1469_v16 = vadd.f32 1.0, %v3477_v9 }
0x14bb   : > { %3147 = vmatmul.mubr.msk.f32.vlgmr.msra.gmra.mrb[0].mxu0 %vm1333_vm2, %v1370_v43  ;;  %3478 = vrcp.f32 %v1468_v5 }
0x14bc   : > { %3480 = vrcp.f32 %v1469_v16 }
0x14c5   : > { %v3479_v48 = vpop.eup %3478 }
0x14c6   : > { %v3481_v22 = vpop.eup %3480 }
0x158e   : > { %v3148_v52 = vpop.f32.mrb[0].mxu0 }
0x158f   : > { %v1443_v37 = vpop.f32.mrb[1].mxu0 }
0x1590   : > { %1478 = vrot.lane.b32.xlu1 %v1443_v37, %s3754_s8 }
0x1594   : > { %1480 = vrot.lane.b32.xlu1 %v3148_v52, %s3754_s8 }
0x1602   : > { %v1479_v19 = vpop.permute.xlu1 %1478 }
0x1603   : > { %v1484_v21 = vmul.f32 %v3479_v48, %v1479_v19 }
0x1605   : > { %1488 = vrot.lane.b32.xlu1 %v1484_v21, %s3755_s10 }
0x1606   : > { %v1481_v23 = vpop.permute.xlu1 %1480 }
0x1607   : > { %v1485_v24 = vmul.f32 %v3481_v22, %v1481_v23 }
0x1609   : > { %1490 = vrot.lane.b32.xlu0 %v1485_v24, %s3755_s10 }
0x1677   : > { %v1489_v26 = vpop.permute.xlu1 %1488 }
0x1678   : > { %v1494_v27 = vadd.f32 %v1489_v26, %v1474_v25 }
0x167a   : > { %1496 = vst.msk [vmem:[#allocation3] sm:$0xff] %vm321_vm3, %v1494_v27 }
0x167b   : > { %v1491_v17 = vpop.permute.xlu0 %1490 }
0x167c   : > { %v1495_v18 = vadd.f32 %v1491_v17, %v1475_v42 }
0x167e   : > { %1497 = vst.msk [vmem:[#allocation3 + $0x8] sm:$0xff] %vm321_vm3, %v1495_v18 }
0x167f PF: > { %s1498_s6 = sadd.s32 1, %s3982_s30 }
0x1680   : > { %s1499_s13 = sld [smem:[#allocation5 + %s1498_s6]] }
0x1686   : > { %p3032_p13 = scmp.le.s32.totalorder %s1499_s13, 0 }
0x1687   : > { %s3756_s14 = smov (!%p3032_p13), 127   ;;  %v3757_v30 = vmov (!%p3032_p13), 68   ;;  %v1512_v44 = vlaneseq (!%p3032_p13)  ;;  %s3758_s17 = smov (!%p3032_p13), 16   ;;  %vm1542_vm7 = vcmask (!%p3032_p13), 261248   ;;  %vm1572_vm8 = vcmask (!%p3032_p13), 130048  }
0x1688   : > { %1503 = sbr.rel (%p3032_p13) target bundleno = 6853 (0x1ac5), region = 72  ;;  %1519 = vrot.lane.b32.xlu0 (!%p3032_p13), %v3998_v2, %s3756_s14  ;;  %3483 = vset.pattern.permute.xlu1 (!%p3032_p13), %v3757_v30  ;;  %s3759_s7 = smov (!%p3032_p13), 112  }
0x1689   : > { %3482 = vset.pattern.permute.xlu0 (!%p3032_p13), %v3757_v30  ;;  %1509 = vperm.xlu1 (!%p3032_p13), %3483, %v4203_v41   ;;  %v4237_v45 = vshrl.u32 (!%p3032_p13), %v1512_v44, 7  ;;  %s3760_s19 = smov (!%p3032_p13), 96  }
0x168b   : > { %v1514_v49 = vsub.s32 (!%p3032_p13), 1, %v4237_v45 }
0x168c   : > { %1505 = vperm.xlu0 (!%p3032_p13), %3482, %v4201_v34  }
0x168d   : > { %v1515_v50 = vrot.slane (!%p3032_p13), %v4208_v46, %v1514_v49 }
0x16fa   : > { %v1520_v31 = vpop.permute.xlu0 %1519 }
0x16fb   : > { %3283 = vpush %v1520_v31 }
0x1708   : > { %v1510_v51 = vpop.permute.xlu1 %1509 }
0x1709   : > { %v1517_v54 = vadd.f32 %v1515_v50, %v1510_v51 }
0x170b   : > { %v1506_v53 = vpop.permute.xlu0 %1505 }
0x170c   : > { %v1516_v55 = vadd.f32 %v1515_v50, %v1506_v53  ;;  %v3484_v50 = vpack.i.bf16 %v4199_v40, %v4197_v39 }
0x172c   : > { %s3284_s16 = spop %3283 }
0x172d   : > { %v1522_v56 = vstv %s3284_s16 }
0x172e   : > { %v1524_v57 = vadd.f32 %v1522_v56, %v1516_v55  ;;  %v1525_v47 = vadd.f32 %v1522_v56, %v1517_v54 }
0x1730   : > { %v1528_v58 = vmul.f32 0.2, %v1524_v57  ;;  %vm1526_vm5 = vcmp.gt.f32.partialorder %v1524_v57, 0.0  ;;  %v1529_v59 = vmul.f32 0.2, %v1525_v47  ;;  %vm1527_vm6 = vcmp.gt.f32.partialorder %v1525_v47, 0.0 }
0x1732   : > { %v1530_v60 = vsel %vm1526_vm5, %v1524_v57, %v1528_v58  ;;  %v1531_v43 = vsel %vm1527_vm6, %v1525_v47, %v1529_v59 }
0x1733   : > { %1534 = vrot.lane.b32.xlu1 %v1530_v60, %s3758_s17 }
0x1737   : > { %1536 = vrot.lane.b32.xlu1 %v1531_v43, %s3758_s17 }
0x17a5   : > { %v1535_v52 = vpop.permute.xlu1 %1534 }
0x17a6   : > { %v1540_v37 = vsel %vm326_vm0, %v1535_v52, -1e+30 }
0x17a7   : > { %v1543_v38 = vsel %vm1542_vm7, %v1540_v37, -inf }
0x17a8   : > { %1544 = vmax.xlane.f32.xlu0 %v1543_v38 }
0x17a9   : > { %v1537_v35 = vpop.permute.xlu1 %1536 }
0x17aa   : > { %v1541_v36 = vsel %vm327_vm1, %v1537_v35, -1e+30 }
0x17ab   : > { %v1546_v61 = vsel %vm1542_vm7, %v1541_v36, -inf }
0x17ac   : > { %1547 = vmax.xlane.f32.xlu1 %v1546_v61 }
0x1835   : > { %v1545_v62 = vpop.xlane.xlu0 %1544 }
0x1839   : > { %v1548_v63 = vpop.xlane.xlu1 %1547 }
0x183a   : > { %v1549_v5 = vmax.f32 %v1545_v62, %v1548_v63  ;;  %v1684_v63 = vsub.s32 0, %v4237_v45  ;;  %v1701_v45 = vld [vmem:[#allocation3 + $0x8] sm:$0xff] }
0x183c   : > { %v1550_v9 = vrot.slane %v1549_v5, 4 }
0x183e   : > { %v1551_v16 = vmax.f32 %v1549_v5, %v1550_v9  ;;  %v1685_v5 = vrot.slane %v4004_v4, %v1684_v63 }
0x1840   : > { %v1552_v48 = vrot.slane %v1551_v16, 2  ;;  %v1687_v9 = vadd.f32 %v1685_v5, %v4203_v41 }
0x1842   : > { %v1553_v19 = vmax.f32 %v1551_v16, %v1552_v48  ;;  %v1686_v16 = vadd.f32 %v1685_v5, %v4201_v34  ;;  %v3036_v48 = vmul.f32 -1.442695, %v1687_v9 }
0x1844   : > { %v1554_v21 = vrot.slane %v1553_v19, 1 }
0x1846   : > { %v1555_v22 = vmax.f32 %v1553_v19, %v1554_v21  ;;  %v3035_v19 = vmul.f32 -1.442695, %v1686_v16 }
0x1848   : > { %v1557_v23 = vsub.f32 %v1541_v36, %v1555_v22  ;;  %v1556_v24 = vsub.f32 %v1540_v37, %v1555_v22 }
0x184a   : > { %v1560_v25 = vmul.f32 1.442695, %v1557_v23  ;;  %v1558_v26 = vmul.f32 1.442695, %v1556_v24 }
0x184c   : > { %3489 = vpow2.f32 %v1560_v25 }
0x184d   : > { %3491 = vpow2.f32 %v1558_v26 }
0x1856   : > { %v3490_v27 = vpop.eup %3489 }
0x1857   : > { %v3492_v42 = vpop.eup %3491  ;;  %v1563_v17 = vmul.f32 %v3490_v27, %v3996_v1 }
0x1858   : > { %v1562_v18 = vmul.f32 %v3492_v42, %v3994_v0 }
0x1859   : > { %1568 = vrot.lane.b32.xlu1 %v1563_v17, %s3759_s7 }
0x185a   : > { %1566 = vrot.lane.b32.xlu0 %v1562_v18, %s3759_s7 }
0x18cb   : > { %v1569_v30 = vpop.permute.xlu1 %1568 }
0x18cc   : > { %v1567_v31 = vpop.permute.xlu0 %1566  ;;  %v1576_v44 = vsel %vm1572_vm8, %v1569_v30, 0.0 }
0x18cd   : > { %1577 = vadd.xlane.f32.xlu1 %v1576_v44  ;;  %v1573_v49 = vsel %vm1572_vm8, %v1567_v31, 0.0 }
0x18ce   : > { %1574 = vadd.xlane.f32.xlu0 %v1573_v49 }
0x18e4   : > { %3485 = vrot.lane.b32.xlu0 %v3484_v50, %s3760_s19 }
0x195a   : > { %v1578_v51 = vpop.xlane.xlu1 %1577 }
0x195b   : > { %v1575_v53 = vpop.xlane.xlu0 %1574 }
0x195c   : > { %v1579_v54 = vadd.f32 %v1578_v51, %v1575_v53 }
0x195e   : > { %v1580_v55 = vrot.slane %v1579_v54, 4 }
0x195f   : > { %v3486_v56 = vpop.permute.xlu0 %3485 }
0x1960   : > { %v1581_v57 = vadd.f32 %v1580_v55, %v1579_v54  ;;  %v3488_v47 = vunpack.i.h.bf16 %v3486_v56  ;;  %v3487_v58 = vunpack.i.l.bf16 %v3486_v56 }
0x1962   : > { %v1582_v59 = vrot.slane %v1581_v57, 2  ;;  %v3227_v60 = vpack.c.bf16 %v3488_v47, %v3487_v58 }
0x1964   : > { %v1583_v43 = vadd.f32 %v1582_v59, %v1581_v57  ;;  %3228 = vmatprep.subr.bf16.mxu0 %v3227_v60 }
0x1965   : > { %3230 = vmatpush3.bf16.msra.mxu0 %v3227_v60 }
0x1966   : > { %v1584_v52 = vrot.slane %v1583_v43, 1 }
0x1968   : > { %v1585_v37 = vadd.f32 %v1584_v52, %v1583_v43 }
0x196a   : > { %3493 = vrcp.f32 %v1585_v37 }
0x196b   : > { %3495 = vpow2.f32 %v3036_v48 }
0x196c   : > { %3497 = vpow2.f32 %v3035_v19 }
0x1974   : > { %v3494_v38 = vpop.eup %3493 }
0x1975   : > { %v1588_v35 = vmul.f32 %v3494_v38, %v1563_v17  ;;  %v1587_v36 = vmul.f32 %v3494_v38, %v1562_v18  ;;  %v3496_v21 = vpop.eup %3495  ;;  %v1700_v18 = vld [vmem:[#allocation3] sm:$0xff] }
0x1976   : > { %v3498_v22 = vpop.eup %3497  ;;  %v1695_v23 = vadd.f32 1.0, %v3496_v21 }
0x1977   : > { %1593 = vrot.lane.b32.xlu0 %v1588_v35, %s3759_s7  ;;  %1591 = vrot.lane.b32.xlu1 %v1587_v36, %s3759_s7  ;;  %v1694_v24 = vadd.f32 1.0, %v3498_v22 }
0x1978   : > { %3499 = vrcp.f32 %v1695_v23 }
0x1979   : > { %3501 = vrcp.f32 %v1694_v24 }
0x1982   : > { %v3500_v25 = vpop.eup %3499 }
0x1983   : > { %v3502_v26 = vpop.eup %3501 }
0x19e9   : > { %v1592_v61 = vpop.permute.xlu1 %1591  ;;  %v1594_v62 = vpop.permute.xlu0 %1593 }
0x19ea   : > { %3153 = vmatprep.mubr.msk.f32.mxu0 %vm1572_vm8, %v1592_v61 }
0x19eb   : > { %3154 = vmatmul.mubr.msk.f32.vlgmr.msra.gmra.mrb[0].mxu0 %vm1572_vm8, %v1594_v62 }
0x1abe   : > { %v3155_v27 = vpop.f32.mrb[0].mxu0 }
0x1abf   : > { %v1703_v42 = vmul.f32 %v3500_v25, %v3155_v27  ;;  %v1673_v17 = vpop.f32.mrb[1].mxu0 }
0x1ac0   : > { %v1702_v30 = vmul.f32 %v3502_v26, %v1673_v17 }
0x1ac1   : > { %v1705_v31 = vadd.f32 %v1703_v42, %v1701_v45 }
0x1ac2   : > { %v1704_v44 = vadd.f32 %v1702_v30, %v1700_v18 }
0x1ac3   : > { %1707 = vst.msk [vmem:[#allocation3 + $0x8] sm:$0xff] %vm321_vm3, %v1705_v31 }
0x1ac4   : > { %1706 = vst.msk [vmem:[#allocation3] sm:$0xff] %vm321_vm3, %v1704_v44 }
0x1ac5 PF: > { %s1708_s20 = sadd.s32 2, %s3982_s30 }
0x1ac6   : > { %s1709_s21 = sld [smem:[#allocation5 + %s1708_s20]] }
0x1acc   : > { %p3037_p1 = scmp.le.s32.totalorder %s1709_s21, 0 }
0x1acd   : > { %s3761_s22 = smov (!%p3037_p1), 126   ;;  %v3762_v49 = vmov (!%p3037_p1), 69   ;;  %v1722_v51 = vlaneseq (!%p3037_p1)  ;;  %s3763_s11 = smov (!%p3037_p1), 32   ;;  %vm1752_vm11 = vcmask (!%p3037_p1), 392448   ;;  %vm1782_vm12 = vcmask (!%p3037_p1), 130048  }
0x1ace   : > { %1713 = sbr.rel (%p3037_p1) target bundleno = 8177 (0x1ff1), region = 76  ;;  %1729 = vrot.lane.b32.xlu0 (!%p3037_p1), %v3998_v2, %s3761_s22  ;;  %3504 = vset.pattern.permute.xlu1 (!%p3037_p1), %v3762_v49  ;;  %s3764_s29 = smov (!%p3037_p1), 96  }
0x1acf   : > { %3503 = vset.pattern.permute.xlu0 (!%p3037_p1), %v3762_v49  ;;  %1719 = vperm.xlu1 (!%p3037_p1), %3504, %v4203_v41   ;;  %v4267_v53 = vshrl.u32 (!%p3037_p1), %v1722_v51, 7  ;;  %s3765_s23 = smov (!%p3037_p1), 64  }
0x1ad1   : > { %v1724_v54 = vsub.s32 (!%p3037_p1), 2, %v4267_v53 }
0x1ad2   : > { %1715 = vperm.xlu0 (!%p3037_p1), %3503, %v4201_v34  }
0x1ad3   : > { %v1725_v55 = vrot.slane (!%p3037_p1), %v4208_v46, %v1724_v54  ;;  %v3505_v54 = vpack.i.bf16 (!%p3037_p1), %v4199_v40, %v4197_v39  ;;  %v1894_v39 = vsub.s32 (!%p3037_p1), 0, %v4267_v53 }
0x1b40   : > { %v1730_v50 = vpop.permute.xlu0 %1729 }
0x1b41   : > { %3285 = vpush %v1730_v50 }
0x1b4e   : > { %v1720_v56 = vpop.permute.xlu1 %1719 }
0x1b4f   : > { %v1727_v47 = vadd.f32 %v1725_v55, %v1720_v56 }
0x1b51   : > { %v1716_v57 = vpop.permute.xlu0 %1715 }
0x1b52   : > { %v1726_v58 = vadd.f32 %v1725_v55, %v1716_v57 }
0x1b72   : > { %s3286_s9 = spop %3285 }
0x1b73   : > { %v1732_v59 = vstv %s3286_s9 }
0x1b74   : > { %v1734_v60 = vadd.f32 %v1732_v59, %v1726_v58  ;;  %v1735_v43 = vadd.f32 %v1732_v59, %v1727_v47 }
0x1b76   : > { %v1738_v52 = vmul.f32 0.2, %v1734_v60  ;;  %vm1736_vm9 = vcmp.gt.f32.partialorder %v1734_v60, 0.0  ;;  %v1739_v37 = vmul.f32 0.2, %v1735_v43  ;;  %vm1737_vm10 = vcmp.gt.f32.partialorder %v1735_v43, 0.0 }
0x1b78   : > { %v1740_v38 = vsel %vm1736_vm9, %v1734_v60, %v1738_v52  ;;  %v1741_v35 = vsel %vm1737_vm10, %v1735_v43, %v1739_v37 }
0x1b79   : > { %1744 = vrot.lane.b32.xlu1 %v1740_v38, %s3763_s11 }
0x1b7d   : > { %1746 = vrot.lane.b32.xlu1 %v1741_v35, %s3763_s11 }
0x1beb   : > { %v1745_v46 = vpop.permute.xlu1 %1744 }
0x1bec   : > { %v1750_v36 = vsel %vm326_vm0, %v1745_v46, -1e+30 }
0x1bed   : > { %v1753_v61 = vsel %vm1752_vm11, %v1750_v36, -inf }
0x1bee   : > { %1754 = vmax.xlane.f32.xlu0 %v1753_v61 }
0x1bef   : > { %v1747_v62 = vpop.permute.xlu1 %1746 }
0x1bf0   : > { %v1751_v63 = vsel %vm327_vm1, %v1747_v62, -1e+30  ;;  %v1895_v62 = vrot.slane %v4008_v6, %v1894_v39 }
0x1bf1   : > { %v1756_v5 = vsel %vm1752_vm11, %v1751_v63, -inf }
0x1bf2   : > { %1757 = vmax.xlane.f32.xlu1 %v1756_v5 }
0x1c7b   : > { %v1755_v9 = vpop.xlane.xlu0 %1754 }
0x1c7f   : > { %v1758_v16 = vpop.xlane.xlu1 %1757 }
0x1c80   : > { %v1759_v48 = vmax.f32 %v1755_v9, %v1758_v16 }
0x1c82   : > { %v1760_v19 = vrot.slane %v1759_v48, 4 }
0x1c84   : > { %v1761_v21 = vmax.f32 %v1759_v48, %v1760_v19 }
0x1c86   : > { %v1762_v22 = vrot.slane %v1761_v21, 2 }
0x1c88   : > { %v1763_v23 = vmax.f32 %v1761_v21, %v1762_v22 }
0x1c8a   : > { %v1764_v24 = vrot.slane %v1763_v23, 1 }
0x1c8c   : > { %v1765_v25 = vmax.f32 %v1763_v23, %v1764_v24 }
0x1c8e   : > { %v1767_v26 = vsub.f32 %v1751_v63, %v1765_v25  ;;  %v1766_v27 = vsub.f32 %v1750_v36, %v1765_v25 }
0x1c90   : > { %v1770_v45 = vmul.f32 1.442695, %v1767_v26  ;;  %v1768_v42 = vmul.f32 1.442695, %v1766_v27 }
0x1c92   : > { %3510 = vpow2.f32 %v1770_v45 }
0x1c93   : > { %3512 = vpow2.f32 %v1768_v42 }
0x1c9c   : > { %v3511_v17 = vpop.eup %3510 }
0x1c9d   : > { %v3513_v18 = vpop.eup %3512  ;;  %v1773_v30 = vmul.f32 %v3511_v17, %v3996_v1 }
0x1c9e   : > { %v1772_v31 = vmul.f32 %v3513_v18, %v3994_v0 }
0x1c9f   : > { %1778 = vrot.lane.b32.xlu1 %v1773_v30, %s3764_s29 }
0x1ca0   : > { %1776 = vrot.lane.b32.xlu0 %v1772_v31, %s3764_s29 }
0x1d11   : > { %v1779_v44 = vpop.permute.xlu1 %1778 }
0x1d12   : > { %v1777_v49 = vpop.permute.xlu0 %1776  ;;  %v1786_v50 = vsel %vm1782_vm12, %v1779_v44, 0.0 }
0x1d13   : > { %1787 = vadd.xlane.f32.xlu1 %v1786_v50  ;;  %v1783_v51 = vsel %vm1782_vm12, %v1777_v49, 0.0 }
0x1d14   : > { %1784 = vadd.xlane.f32.xlu0 %v1783_v51 }
0x1d2a   : > { %3506 = vrot.lane.b32.xlu0 %v3505_v54, %s3765_s23 }
0x1da0   : > { %v1788_v55 = vpop.xlane.xlu1 %1787 }
0x1da1   : > { %v1785_v56 = vpop.xlane.xlu0 %1784 }
0x1da2   : > { %v1789_v57 = vadd.f32 %v1788_v55, %v1785_v56 }
0x1da4   : > { %v1790_v47 = vrot.slane %v1789_v57, 4 }
0x1da5   : > { %v3507_v58 = vpop.permute.xlu0 %3506 }
0x1da6   : > { %v1791_v59 = vadd.f32 %v1790_v47, %v1789_v57  ;;  %v3509_v60 = vunpack.i.h.bf16 %v3507_v58  ;;  %v3508_v43 = vunpack.i.l.bf16 %v3507_v58 }
0x1da8   : > { %v1792_v52 = vrot.slane %v1791_v59, 2  ;;  %v3231_v37 = vpack.c.bf16 %v3509_v60, %v3508_v43 }
0x1daa   : > { %v1793_v38 = vadd.f32 %v1792_v52, %v1791_v59  ;;  %3232 = vmatprep.subr.bf16.mxu0 %v3231_v37 }
0x1dab   : > { %3234 = vmatpush3.bf16.msra.mxu0 %v3231_v37 }
0x1dac   : > { %v1794_v35 = vrot.slane %v1793_v38, 1 }
0x1dae   : > { %v1795_v46 = vadd.f32 %v1794_v35, %v1793_v38 }
0x1db0   : > { %3514 = vrcp.f32 %v1795_v46 }
0x1dba   : > { %v3515_v40 = vpop.eup %3514 }
0x1dbb   : > { %v1798_v36 = vmul.f32 %v3515_v40, %v1773_v30  ;;  %v1797_v61 = vmul.f32 %v3515_v40, %v1772_v31 }
0x1dbd   : > { %1803 = vrot.lane.b32.xlu0 %v1798_v36, %s3764_s29  ;;  %1801 = vrot.lane.b32.xlu1 %v1797_v61, %s3764_s29 }
0x1dc1   : > { %1897 = vrot.lane.b32.xlu1 %v1895_v62, %s3763_s11 }
0x1e2f   : > { %v1802_v63 = vpop.permute.xlu1 %1801  ;;  %v1804_v5 = vpop.permute.xlu0 %1803 }
0x1e30   : > { %3160 = vmatprep.mubr.msk.f32.mxu0 %vm1782_vm12, %v1802_v63 }
0x1e31   : > { %3161 = vmatmul.mubr.msk.f32.vlgmr.msra.gmra.mrb[0].mxu0 %vm1782_vm12, %v1804_v5 }
0x1e33   : > { %v1898_v16 = vpop.permute.xlu1 %1897 }
0x1e34   : > { %v1901_v48 = vadd.f32 %v1898_v16, %v4203_v41  ;;  %v1900_v19 = vadd.f32 %v1898_v16, %v4201_v34  ;;  %v1915_v34 = vld [vmem:[#allocation3 + $0x8] sm:$0xff]  ;;  %v1914_v41 = vld [vmem:[#allocation3] sm:$0xff] }
0x1e36   : > { %v3041_v21 = vmul.f32 -1.442695, %v1901_v48  ;;  %v3040_v22 = vmul.f32 -1.442695, %v1900_v19 }
0x1e38   : > { %3516 = vpow2.f32 %v3041_v21 }
0x1e39   : > { %3518 = vpow2.f32 %v3040_v22 }
0x1e42   : > { %v3517_v23 = vpop.eup %3516 }
0x1e43   : > { %v3519_v24 = vpop.eup %3518  ;;  %v1909_v25 = vadd.f32 1.0, %v3517_v23 }
0x1e44   : > { %v1908_v26 = vadd.f32 1.0, %v3519_v24 }
0x1e45   : > { %3520 = vrcp.f32 %v1909_v25 }
0x1e46   : > { %3522 = vrcp.f32 %v1908_v26 }
0x1e4f   : > { %v3521_v27 = vpop.eup %3520 }
0x1e50   : > { %v3523_v45 = vpop.eup %3522 }
0x1f04   : > { %v3162_v9 = vpop.f32.mrb[0].mxu0 }
0x1f05   : > { %1920 = vrot.lane.b32.xlu1 %v3162_v9, %s3763_s11  ;;  %v1883_v53 = vpop.f32.mrb[1].mxu0 }
0x1f06   : > { %1918 = vrot.lane.b32.xlu0 %v1883_v53, %s3763_s11 }
0x1f77   : > { %v1921_v42 = vpop.permute.xlu1 %1920 }
0x1f78   : > { %v1925_v17 = vmul.f32 %v3521_v27, %v1921_v42  ;;  %v1919_v18 = vpop.permute.xlu0 %1918 }
0x1f79   : > { %v1924_v30 = vmul.f32 %v3523_v45, %v1919_v18 }
0x1f7a   : > { %1930 = vrot.lane.b32.xlu1 %v1925_v17, %s3764_s29 }
0x1f7b   : > { %1928 = vrot.lane.b32.xlu0 %v1924_v30, %s3764_s29 }
0x1fec   : > { %v1931_v31 = vpop.permute.xlu1 %1930 }
0x1fed   : > { %v1935_v44 = vadd.f32 %v1931_v31, %v1915_v34  ;;  %v1929_v49 = vpop.permute.xlu0 %1928 }
0x1fee   : > { %v1934_v50 = vadd.f32 %v1929_v49, %v1914_v41 }
0x1fef   : > { %1937 = vst.msk [vmem:[#allocation3 + $0x8] sm:$0xff] %vm321_vm3, %v1935_v44 }
0x1ff0   : > { %1936 = vst.msk [vmem:[#allocation3] sm:$0xff] %vm321_vm3, %v1934_v50 }
0x1ff1 PF:  {}
0x1ff6   : > { %v1939_v54 = vld [vmem:[#allocation3 + $0x8] sm:$0xff] }
0x1ff7   : > { %v1938_v51 = vld [vmem:[#allocation3] sm:$0xff]  ;;  %v1941_v56 = vmul.f32 %v4031_v20, %v1939_v54 }
0x1ff8   : > { %v1940_v55 = vmul.f32 %v4031_v20, %v1938_v51 }
0x1ff9   : > { %v1943_v47 = vadd.f32 %v1941_v56, %v4191_v33 }
0x1ffa   : > { %v1942_v57 = vadd.f32 %v1940_v55, %v4189_v32 }
0x1ffb   : > { %v1947_v59 = vsel %vm321_vm3, %v1943_v47, 0.0 }
0x1ffc   : > { %v1944_v58 = vsel %vm321_vm3, %v1942_v57, 0.0 }
0x1ffd   : > { %1945 = vadd.xlane.f32.xlu0 %v1944_v58 }
0x2001   : > { %1948 = vadd.xlane.f32.xlu0 %v1947_v59 }
0x208a   : > { %v1946_v60 = vpop.xlane.xlu0 %1945 }
0x208b   : > { %v1951_v43 = vmul.f32 0.03125, %v1946_v60 }
0x208d   : > { %v1953_v52 = vsub.f32 %v1942_v57, %v1951_v43 }
0x208e   : > { %v1949_v37 = vpop.xlane.xlu0 %1948 }
0x208f   : > { %v1952_v38 = vmul.f32 0.03125, %v1949_v37  ;;  %v1955_v35 = vmul.f32 %v1953_v52, %v1953_v52 }
0x2091   : > { %v1954_v46 = vsub.f32 %v1943_v47, %v1952_v38  ;;  %v1957_v39 = vsel %vm321_vm3, %v1955_v35, 0.0 }
0x2092   : > { %1958 = vadd.xlane.f32.xlu1 %v1957_v39 }
0x2093   : > { %v1956_v40 = vmul.f32 %v1954_v46, %v1954_v46 }
0x2095   : > { %v1960_v32 = vsel %vm321_vm3, %v1956_v40, 0.0 }
0x2096   : > { %1961 = vadd.xlane.f32.xlu1 %v1960_v32 }
0x211f   : > { %v1959_v33 = vpop.xlane.xlu1 %1958 }
0x2120   : > { %v1963_v36 = vmul.f32 0.03125, %v1959_v33 }
0x2122   : > { %v1965_v61 = vadd.f32 1e-05, %v1963_v36 }
0x2123   : > { %v1962_v62 = vpop.xlane.xlu1 %1961 }
0x2124   : > { %3524 = vrsqrt.f32 %v1965_v61  ;;  %v1964_v63 = vmul.f32 0.03125, %v1962_v62 }
0x2126   : > { %v1966_v5 = vadd.f32 1e-05, %v1964_v63 }
0x2128   : > { %3526 = vrsqrt.f32 %v1966_v5 }
0x212e   : > { %v3525_v9 = vpop.eup %3524 }
0x212f   : > { %v1969_v53 = vmul.f32 %v3525_v9, %v1953_v52 }
0x2131   : > { %v1975_v16 = vmul.f32 %v4173_v28, %v1969_v53 }
0x2132   : > { %v3527_v48 = vpop.eup %3526 }
0x2133   : > { %v1981_v19 = vadd.f32 %v4175_v29, %v1975_v16  ;;  %v1970_v21 = vmul.f32 %v3527_v48, %v1954_v46 }
0x2135   : > { %v1983_v22 = vmax.f32 %v1981_v19, 0.0  ;;  %v1976_v23 = vmul.f32 %v4173_v28, %v1970_v21 }
0x2137   : > { %1985 = vst.msk [vmem:[#allocation2] sm:$0xff] %vm321_vm3, %v1983_v22  ;;  %v1982_v24 = vadd.f32 %v4175_v29, %v1976_v23 }
0x2139   : > { %v1984_v25 = vmax.f32 %v1982_v24, 0.0 }
0x213b   : > { %1986 = vst.msk [vmem:[#allocation2 + $0x8] sm:$0xff] %vm321_vm3, %v1984_v25 }
0x213c PF: > { %v4314_v26 = vld [vmem:[#allocation10 + $0x8] ss:$0 sm:$0xff]  ;;  %v4316_v27 = vld [vmem:[#allocation10 + $0xb] ss:$0 sm:$0xff]  ;;  %1991 = sbr.rel (%p3004_p12) target bundleno = 12536 (0x30f8), region = 80  ;;  %v3235_v45 = vpack.c.bf16 (!%p3004_p12), %v4016_v11, %v4012_v8  ;;  %v3237_v28 = vpack.c.bf16 (!%p3004_p12), %v4014_v10, %v4010_v7  ;;  %v3239_v29 = vpack.c.bf16 (!%p3004_p12), %v4024_v15, %v4020_v13  ;;  %v3766_v42 = vmov (!%p3004_p12), 0.0  }
0x213d   : > { %2117 = vst.msk [vmem:[#allocation3] sm:$0xff] (!%p3004_p12), %vm321_vm3, %v3766_v42  ;;  %2118 = vst.msk [vmem:[#allocation3 + $0x8] sm:$0xff] (!%p3004_p12), %vm321_vm3, %v3766_v42  ;;  %v3241_v17 = vpack.c.bf16 (!%p3004_p12), %v4022_v14, %v4018_v12  ;;  %2064 = vmatprep.mubr.f32.mxu0 (!%p3004_p12), %v3766_v42  ;;  %2070 = vmatprep.mubr.f32.mxu1 (!%p3004_p12), %v3766_v42  ;;  %s3767_s12 = smov (!%p3004_p12), 64   ;;  %s2119_s24 = sld [smem:[#allocation5 + %s3982_s30]] (!%p3004_p12) }
0x213e   : > { %3236 = vmatprep.subr.bf16.mxu0 (!%p3004_p12), %v3235_v45  ;;  %3271 = vmatprep.subr.bf16.mxu1 (!%p3004_p12), %v3235_v45  ;;  %v4330_v7 = vld [vmem:[#allocation2] sm:$0xff] (!%p3004_p12) }
0x213f   : > { %3238 = vmatpush1.bf16.msra.mxu0 (!%p3004_p12), %v3237_v28  ;;  %3273 = vmatpush1.bf16.msra.mxu1 (!%p3004_p12), %v3237_v28 }
0x2140   : > { %3240 = vmatprep.subr.bf16.mxu0 (!%p3004_p12), %v3239_v29  ;;  %3272 = vmatprep.subr.bf16.mxu1 (!%p3004_p12), %v3239_v29 }
0x2142   : > { %v4332_v8 = vld [vmem:[#allocation2 + $0x8] sm:$0xff] (!%p3004_p12) }
0x2143   : > { %3242 = vmatpush1.bf16.msra.mxu0 %v3241_v17  ;;  %3274 = vmatpush1.bf16.msra.mxu1 %v3241_v17  ;;  %p3047_p3 = scmp.le.s32.totalorder %s2119_s24, 0 }
0x2144   : > { %3287 = vpush (!%p3047_p3), %v3998_v2  ;;  %v3768_v30 = vmov (!%p3047_p3), 67   ;;  %v2132_v34 = vlaneseq (!%p3047_p3)  ;;  %vm2152_vm14 = vcmask (!%p3047_p3), 130048   ;;  %s3769_s28 = smov (!%p3047_p3), 96   ;;  %s3770_s5 = smov (!%p3047_p3), 32  }
0x2145   : > { %3528 = vset.pattern.permute.xlu0 (!%p3047_p3), %v3768_v30 }
0x2146   : > { %3045 = vmatmul.mubr.msk.f32.vlgmr.msra.gmra.mrb[0].mxu0 %vm321_vm3, %v4330_v7  ;;  %3046 = vmatmul.mubr.msk.f32.vlgmr.msra.gmra.mrb[0].mxu1 %vm321_vm3, %v4332_v8  ;;  %v2133_v41 = vshrl.u32 (!%p3047_p3), %v2132_v34, 7 }
0x2148   : > { %v2134_v31 = vsub.s32 (!%p3047_p3), 0, %v2133_v41 }
0x214a   : > { %v2274_v25 = vrot.slane (!%p3047_p3), %v4002_v3, %v2134_v31 }
0x2175   : > { %s3288_s0 = spop (!%p3047_p3), %3287 }
0x2176   : > { %v2140_v50 = vstv (!%p3047_p3), %s3288_s0 }
0x2219   : > { %v4338_v10 = vpop.f32.mrb[0].mxu0  ;;  %v4340_v11 = vpop.f32.mrb[0].mxu1 }
0x221a   : > { %v4342_v12 = vpop.f32.mrb[1].mxu0  ;;  %v4344_v13 = vpop.f32.mrb[1].mxu1  ;;  %v3243_v24 = vpack.c.bf16 (!%p3047_p3), %v4340_v11, %v4338_v10 }
0x221b   : > { %2079 = vrot.lane.b32.xlu0 %v4342_v12, %s3767_s12 }
0x221c   : > { %3244 = vmatprep.subr.bf16.mxu0 (!%p3047_p3), %v3243_v24 }
0x221d   : > { %3246 = vmatpush3.bf16.msra.mxu0 (!%p3047_p3), %v3243_v24 }
0x221f   : > { %2081 = vrot.lane.b32.xlu0 %v4344_v13, %s3767_s12 }
0x2223   : > { %2125 = vperm.xlu0 (!%p3047_p3), %3528, %v4342_v12  }
0x2227   : > { %2129 = vperm.xlu0 (!%p3047_p3), %3528, %v4344_v13  }
0x228d   : > { %v2080_v14 = vpop.permute.xlu0 %2079 }
0x228e   : > { %2085 = vxpose.xlu1.b32.start [1/2] (short) (narrow) %v2080_v14, 8 }
0x2291   : > { %v2082_v15 = vpop.permute.xlu0 %2081 }
0x2292   : > { %2086 = vxpose.xlu1.b32.end [2/2] (short) (narrow) %v2082_v15, 8 }
0x22a2   : > { %v2126_v49 = vpop.permute.xlu0 (!%p3047_p3), %2125 }
0x22a6   : > { %v2130_v55 = vpop.permute.xlu0 (!%p3047_p3), %2129 }
0x2308   : > { %2123 = sbr.rel (%p3047_p3) target bundleno = 9787 (0x263b), region = 84 }
0x230e   : > { %v4349_v18 = vpop.trf.xlu1 }
0x230f   : > { %v2135_v44 = vrot.slane %v4349_v18, %v2134_v31 }
0x2311   : > { %v2136_v51 = vadd.f32 %v2135_v44, %v2126_v49  ;;  %v2137_v57 = vadd.f32 %v2135_v44, %v2130_v55 }
0x2313   : > { %v2142_v54 = vadd.f32 %v2140_v50, %v2136_v51  ;;  %v2143_v47 = vadd.f32 %v2140_v50, %v2137_v57 }
0x2315   : > { %v2146_v56 = vmul.f32 0.2, %v2142_v54  ;;  %vm2144_vm13 = vcmp.gt.f32.partialorder %v2142_v54, 0.0  ;;  %vm2145_vm15 = vcmp.gt.f32.partialorder %v2143_v47, 0.0  ;;  %v2147_v43 = vmul.f32 0.2, %v2143_v47 }
0x2317   : > { %v2148_v58 = vsel %vm2144_vm13, %v2142_v54, %v2146_v56  ;;  %v2149_v52 = vsel %vm2145_vm15, %v2143_v47, %v2147_v43 }
0x2318   : > { %v2150_v59 = vsel %vm326_vm0, %v2148_v58, -1e+30  ;;  %v2151_v37 = vsel %vm327_vm1, %v2149_v52, -1e+30 }
0x2319   : > { %v2153_v60 = vsel %vm2152_vm14, %v2150_v59, -inf  ;;  %v2156_v38 = vsel %vm2152_vm14, %v2151_v37, -inf }
0x231a   : > { %2154 = vmax.xlane.f32.xlu1 %v2153_v60 }
0x231e   : > { %2157 = vmax.xlane.f32.xlu1 %v2156_v38 }
0x23a7   : > { %v2155_v35 = vpop.xlane.xlu1 %2154 }
0x23ab   : > { %v2158_v46 = vpop.xlane.xlu1 %2157 }
0x23ac   : > { %v2159_v39 = vmax.f32 %v2155_v35, %v2158_v46  ;;  %v2293_v46 = vld [vmem:[#allocation3] sm:$0xff] }
0x23ae   : > { %v2160_v40 = vrot.slane %v2159_v39, 4 }
0x23b0   : > { %v2161_v32 = vmax.f32 %v2159_v39, %v2160_v40 }
0x23b2   : > { %v2162_v33 = vrot.slane %v2161_v32, 2 }
0x23b4   : > { %v2163_v36 = vmax.f32 %v2161_v32, %v2162_v33  ;;  %v2294_v32 = vld [vmem:[#allocation3 + $0x8] sm:$0xff] }
0x23b6   : > { %v2164_v61 = vrot.slane %v2163_v36, 1 }
0x23b8   : > { %v2165_v62 = vmax.f32 %v2163_v36, %v2164_v61 }
0x23ba   : > { %v2167_v63 = vsub.f32 %v2151_v37, %v2165_v62  ;;  %v2166_v5 = vsub.f32 %v2150_v59, %v2165_v62 }
0x23bc   : > { %v2170_v9 = vmul.f32 1.442695, %v2167_v63  ;;  %v2168_v53 = vmul.f32 1.442695, %v2166_v5 }
0x23be   : > { %3529 = vpow2.f32 %v2170_v9 }
0x23bf   : > { %3531 = vpow2.f32 %v2168_v53 }
0x23c8   : > { %v3530_v16 = vpop.eup %3529 }
0x23c9   : > { %v3532_v48 = vpop.eup %3531  ;;  %v2173_v19 = vmul.f32 %v3530_v16, %v3996_v1 }
0x23ca   : > { %v2172_v21 = vmul.f32 %v3532_v48, %v3994_v0 }
0x23cb   : > { %v2177_v22 = vsel %vm2152_vm14, %v2173_v19, 0.0 }
0x23cc   : > { %2178 = vadd.xlane.f32.xlu1 %v2177_v22  ;;  %v2174_v23 = vsel %vm2152_vm14, %v2172_v21, 0.0 }
0x23cd   : > { %2175 = vadd.xlane.f32.xlu0 %v2174_v23 }
0x23dd   : > { %2276 = vrot.lane.b32.xlu1 %v2274_v25, %s3769_s28 }
0x2459   : > { %v2179_v45 = vpop.xlane.xlu1 %2178 }
0x245a   : > { %v2176_v28 = vpop.xlane.xlu0 %2175 }
0x245b   : > { %v2180_v29 = vadd.f32 %v2179_v45, %v2176_v28 }
0x245d   : > { %v2181_v42 = vrot.slane %v2180_v29, 4  ;;  %v2277_v50 = vpop.permute.xlu1 %2276 }
0x245e   : > { %v2279_v51 = vadd.f32 %v2277_v50, %v4338_v10  ;;  %v2280_v54 = vadd.f32 %v2277_v50, %v4340_v11 }
0x245f   : > { %v2182_v17 = vadd.f32 %v2181_v42, %v2180_v29 }
0x2460   : > { %v3050_v55 = vmul.f32 -1.442695, %v2279_v51  ;;  %v3051_v56 = vmul.f32 -1.442695, %v2280_v54 }
0x2461   : > { %v2183_v14 = vrot.slane %v2182_v17, 2 }
0x2463   : > { %v2184_v15 = vadd.f32 %v2183_v14, %v2182_v17 }
0x2465   : > { %v2185_v30 = vrot.slane %v2184_v15, 1 }
0x2467   : > { %v2186_v34 = vadd.f32 %v2185_v30, %v2184_v15 }
0x2469   : > { %3533 = vrcp.f32 %v2186_v34 }
0x246a   : > { %3535 = vpow2.f32 %v3050_v55 }
0x246b   : > { %3537 = vpow2.f32 %v3051_v56 }
0x2473   : > { %v3534_v41 = vpop.eup %3533 }
0x2474   : > { %v2188_v44 = vmul.f32 %v3534_v41, %v2172_v21  ;;  %v2189_v49 = vmul.f32 %v3534_v41, %v2173_v19  ;;  %v3536_v57 = vpop.eup %3535 }
0x2475   : > { %v2287_v47 = vadd.f32 1.0, %v3536_v57  ;;  %v3538_v58 = vpop.eup %3537 }
0x2476   : > { %3167 = vmatprep.mubr.msk.f32.mxu0 %vm2152_vm14, %v2188_v44  ;;  %v2288_v59 = vadd.f32 1.0, %v3538_v58 }
0x2477   : > { %3168 = vmatmul.mubr.msk.f32.vlgmr.msra.gmra.mrb[0].mxu0 %vm2152_vm14, %v2189_v49  ;;  %3539 = vrcp.f32 %v2287_v47 }
0x2478   : > { %3541 = vrcp.f32 %v2288_v59 }
0x2481   : > { %v3540_v60 = vpop.eup %3539 }
0x2482   : > { %v3542_v37 = vpop.eup %3541 }
0x254a   : > { %v3169_v3 = vpop.f32.mrb[0].mxu0 }
0x254b   : > { %v2262_v31 = vpop.f32.mrb[1].mxu0 }
0x254c   : > { %2297 = vrot.lane.b32.xlu1 %v2262_v31, %s3769_s28 }
0x2550   : > { %2299 = vrot.lane.b32.xlu1 %v3169_v3, %s3769_s28 }
0x25be   : > { %v2298_v43 = vpop.permute.xlu1 %2297 }
0x25bf   : > { %v2303_v52 = vmul.f32 %v3540_v60, %v2298_v43 }
0x25c1   : > { %2307 = vrot.lane.b32.xlu1 %v2303_v52, %s3770_s5 }
0x25c2   : > { %v2300_v38 = vpop.permute.xlu1 %2299 }
0x25c3   : > { %v2304_v35 = vmul.f32 %v3542_v37, %v2300_v38 }
0x25c5   : > { %2309 = vrot.lane.b32.xlu0 %v2304_v35, %s3770_s5 }
0x2633   : > { %v2308_v39 = vpop.permute.xlu1 %2307 }
0x2634   : > { %v2313_v40 = vadd.f32 %v2308_v39, %v2293_v46 }
0x2636   : > { %2315 = vst.msk [vmem:[#allocation3] sm:$0xff] %vm321_vm3, %v2313_v40 }
0x2637   : > { %v2310_v33 = vpop.permute.xlu0 %2309 }
0x2638   : > { %v2314_v36 = vadd.f32 %v2310_v33, %v2294_v32 }
0x263a   : > { %2316 = vst.msk [vmem:[#allocation3 + $0x8] sm:$0xff] %vm321_vm3, %v2314_v36 }
0x263b PF: > { %s2317_s8 = sadd.s32 1, %s3982_s30 }
0x263c   : > { %s2318_s10 = sld [smem:[#allocation5 + %s2317_s8]] }
0x2642   : > { %p3052_p5 = scmp.le.s32.totalorder %s2318_s10, 0 }
0x2643   : > { %s3771_s6 = smov (!%p3052_p5), 127   ;;  %v3772_v61 = vmov (!%p3052_p5), 68   ;;  %v2331_v63 = vlaneseq (!%p3052_p5)  ;;  %s3773_s14 = smov (!%p3052_p5), 16   ;;  %vm2361_vm5 = vcmask (!%p3052_p5), 261248   ;;  %vm2391_vm6 = vcmask (!%p3052_p5), 130048  }
0x2644   : > { %2322 = sbr.rel (%p3052_p5) target bundleno = 10881 (0x2a81), region = 88  ;;  %2338 = vrot.lane.b32.xlu0 (!%p3052_p5), %v3998_v2, %s3771_s6  ;;  %3544 = vset.pattern.permute.xlu1 (!%p3052_p5), %v3772_v61  ;;  %s3774_s16 = smov (!%p3052_p5), 112   ;;  %v3545_v39 = vpack.i.bf16 (!%p3052_p5), %v4340_v11, %v4338_v10 }
0x2645   : > { %3543 = vset.pattern.permute.xlu0 (!%p3052_p5), %v3772_v61  ;;  %2328 = vperm.xlu1 (!%p3052_p5), %3544, %v4344_v13   ;;  %v4378_v5 = vshrl.u32 (!%p3052_p5), %v2331_v63, 7  ;;  %s3775_s17 = smov (!%p3052_p5), 96  }
0x2647   : > { %v2333_v9 = vsub.s32 (!%p3052_p5), 1, %v4378_v5 }
0x2648   : > { %2324 = vperm.xlu0 (!%p3052_p5), %3543, %v4342_v12  }
0x2649   : > { %v2334_v53 = vrot.slane (!%p3052_p5), %v4349_v18, %v2333_v9 }
0x26b6   : > { %v2339_v62 = vpop.permute.xlu0 %2338 }
0x26b7   : > { %3289 = vpush %v2339_v62 }
0x26c4   : > { %v2329_v16 = vpop.permute.xlu1 %2328 }
0x26c5   : > { %v2336_v19 = vadd.f32 %v2334_v53, %v2329_v16 }
0x26c7   : > { %v2325_v48 = vpop.permute.xlu0 %2324 }
0x26c8   : > { %v2335_v21 = vadd.f32 %v2334_v53, %v2325_v48 }
0x26e8   : > { %s3290_s13 = spop %3289 }
0x26e9   : > { %v2341_v22 = vstv %s3290_s13 }
0x26ea   : > { %v2343_v23 = vadd.f32 %v2341_v22, %v2335_v21  ;;  %v2344_v24 = vadd.f32 %v2341_v22, %v2336_v19 }
0x26ec   : > { %v2347_v25 = vmul.f32 0.2, %v2343_v23  ;;  %vm2345_vm2 = vcmp.gt.f32.partialorder %v2343_v23, 0.0  ;;  %v2348_v45 = vmul.f32 0.2, %v2344_v24  ;;  %vm2346_vm4 = vcmp.gt.f32.partialorder %v2344_v24, 0.0 }
0x26ee   : > { %v2349_v28 = vsel %vm2345_vm2, %v2343_v23, %v2347_v25  ;;  %v2350_v29 = vsel %vm2346_vm4, %v2344_v24, %v2348_v45 }
0x26ef   : > { %2353 = vrot.lane.b32.xlu1 %v2349_v28, %s3773_s14  ;;  %v2503_v28 = vsub.s32 0, %v4378_v5  ;;  %v2520_v5 = vld [vmem:[#allocation3 + $0x8] sm:$0xff] }
0x26f3   : > { %2355 = vrot.lane.b32.xlu1 %v2350_v29, %s3773_s14  ;;  %v2504_v29 = vrot.slane %v4004_v4, %v2503_v28 }
0x2761   : > { %v2354_v42 = vpop.permute.xlu1 %2353 }
0x2762   : > { %v2359_v17 = vsel %vm326_vm0, %v2354_v42, -1e+30  ;;  %v2506_v42 = vadd.f32 %v2504_v29, %v4344_v13 }
0x2763   : > { %v2362_v14 = vsel %vm2361_vm5, %v2359_v17, -inf }
0x2764   : > { %2363 = vmax.xlane.f32.xlu0 %v2362_v14  ;;  %v3056_v14 = vmul.f32 -1.442695, %v2506_v42 }
0x2765   : > { %v2356_v15 = vpop.permute.xlu1 %2355 }
0x2766   : > { %v2360_v30 = vsel %vm327_vm1, %v2356_v15, -1e+30 }
0x2767   : > { %v2365_v34 = vsel %vm2361_vm5, %v2360_v30, -inf }
0x2768   : > { %2366 = vmax.xlane.f32.xlu1 %v2365_v34 }
0x27f1   : > { %v2364_v41 = vpop.xlane.xlu0 %2363 }
0x27f5   : > { %v2367_v44 = vpop.xlane.xlu1 %2366 }
0x27f6   : > { %v2368_v49 = vmax.f32 %v2364_v41, %v2367_v44 }
0x27f8   : > { %v2369_v3 = vrot.slane %v2368_v49, 4 }
0x27fa   : > { %v2370_v31 = vmax.f32 %v2368_v49, %v2369_v3 }
0x27fc   : > { %v2371_v50 = vrot.slane %v2370_v31, 2 }
0x27fe   : > { %v2372_v51 = vmax.f32 %v2370_v31, %v2371_v50 }
0x2800   : > { %v2373_v54 = vrot.slane %v2372_v51, 1 }
0x2802   : > { %v2374_v55 = vmax.f32 %v2372_v51, %v2373_v54  ;;  %v2519_v51 = vld [vmem:[#allocation3] sm:$0xff] }
0x2804   : > { %v2376_v56 = vsub.f32 %v2360_v30, %v2374_v55  ;;  %v2375_v57 = vsub.f32 %v2359_v17, %v2374_v55  ;;  %v2505_v17 = vadd.f32 %v2504_v29, %v4342_v12 }
0x2806   : > { %v2379_v47 = vmul.f32 1.442695, %v2376_v56  ;;  %v2377_v58 = vmul.f32 1.442695, %v2375_v57  ;;  %v3055_v15 = vmul.f32 -1.442695, %v2505_v17 }
0x2808   : > { %3550 = vpow2.f32 %v2379_v47 }
0x2809   : > { %3552 = vpow2.f32 %v2377_v58 }
0x2812   : > { %v3551_v59 = vpop.eup %3550 }
0x2813   : > { %v3553_v60 = vpop.eup %3552  ;;  %v2382_v43 = vmul.f32 %v3551_v59, %v3996_v1 }
0x2814   : > { %v2381_v52 = vmul.f32 %v3553_v60, %v3994_v0 }
0x2815   : > { %2387 = vrot.lane.b32.xlu1 %v2382_v43, %s3774_s16 }
0x2816   : > { %2385 = vrot.lane.b32.xlu0 %v2381_v52, %s3774_s16 }
0x2887   : > { %v2388_v37 = vpop.permute.xlu1 %2387 }
0x2888   : > { %v2386_v38 = vpop.permute.xlu0 %2385  ;;  %v2395_v35 = vsel %vm2391_vm6, %v2388_v37, 0.0 }
0x2889   : > { %2396 = vadd.xlane.f32.xlu1 %v2395_v35  ;;  %v2392_v46 = vsel %vm2391_vm6, %v2386_v38, 0.0 }
0x288a   : > { %2393 = vadd.xlane.f32.xlu0 %v2392_v46 }
0x28a0   : > { %3546 = vrot.lane.b32.xlu0 %v3545_v39, %s3775_s17 }
0x2916   : > { %v2397_v40 = vpop.xlane.xlu1 %2396 }
0x2917   : > { %v2394_v32 = vpop.xlane.xlu0 %2393 }
0x2918   : > { %v2398_v33 = vadd.f32 %v2397_v40, %v2394_v32 }
0x291a   : > { %v2399_v36 = vrot.slane %v2398_v33, 4 }
0x291b   : > { %v3547_v61 = vpop.permute.xlu0 %3546 }
0x291c   : > { %v2400_v62 = vadd.f32 %v2399_v36, %v2398_v33  ;;  %v3549_v63 = vunpack.i.h.bf16 %v3547_v61  ;;  %v3548_v9 = vunpack.i.l.bf16 %v3547_v61 }
0x291e   : > { %v2401_v53 = vrot.slane %v2400_v62, 2  ;;  %v3247_v16 = vpack.c.bf16 %v3549_v63, %v3548_v9 }
0x2920   : > { %v2402_v48 = vadd.f32 %v2401_v53, %v2400_v62  ;;  %3248 = vmatprep.subr.bf16.mxu0 %v3247_v16 }
0x2921   : > { %3250 = vmatpush3.bf16.msra.mxu0 %v3247_v16 }
0x2922   : > { %v2403_v19 = vrot.slane %v2402_v48, 1 }
0x2924   : > { %v2404_v21 = vadd.f32 %v2403_v19, %v2402_v48 }
0x2926   : > { %3554 = vrcp.f32 %v2404_v21 }
0x2927   : > { %3556 = vpow2.f32 %v3056_v14 }
0x2928   : > { %3558 = vpow2.f32 %v3055_v15 }
0x2930   : > { %v3555_v22 = vpop.eup %3554 }
0x2931   : > { %v2407_v23 = vmul.f32 %v3555_v22, %v2382_v43  ;;  %v2406_v24 = vmul.f32 %v3555_v22, %v2381_v52  ;;  %v3557_v30 = vpop.eup %3556 }
0x2932   : > { %v3559_v34 = vpop.eup %3558  ;;  %v2514_v41 = vadd.f32 1.0, %v3557_v30 }
0x2933   : > { %2412 = vrot.lane.b32.xlu0 %v2407_v23, %s3774_s16  ;;  %2410 = vrot.lane.b32.xlu1 %v2406_v24, %s3774_s16  ;;  %v2513_v44 = vadd.f32 1.0, %v3559_v34 }
0x2934   : > { %3560 = vrcp.f32 %v2514_v41 }
0x2935   : > { %3562 = vrcp.f32 %v2513_v44 }
0x293e   : > { %v3561_v49 = vpop.eup %3560 }
0x293f   : > { %v3563_v3 = vpop.eup %3562 }
0x29a5   : > { %v2411_v25 = vpop.permute.xlu1 %2410  ;;  %v2413_v45 = vpop.permute.xlu0 %2412 }
0x29a6   : > { %3174 = vmatprep.mubr.msk.f32.mxu0 %vm2391_vm6, %v2411_v25 }
0x29a7   : > { %3175 = vmatmul.mubr.msk.f32.vlgmr.msra.gmra.mrb[0].mxu0 %vm2391_vm6, %v2413_v45 }
0x2a7a   : > { %v3176_v31 = vpop.f32.mrb[0].mxu0 }
0x2a7b   : > { %v2522_v50 = vmul.f32 %v3561_v49, %v3176_v31  ;;  %v2492_v4 = vpop.f32.mrb[1].mxu0 }
0x2a7c   : > { %v2521_v54 = vmul.f32 %v3563_v3, %v2492_v4 }
0x2a7d   : > { %v2524_v55 = vadd.f32 %v2522_v50, %v2520_v5 }
0x2a7e   : > { %v2523_v56 = vadd.f32 %v2521_v54, %v2519_v51 }
0x2a7f   : > { %2526 = vst.msk [vmem:[#allocation3 + $0x8] sm:$0xff] %vm321_vm3, %v2524_v55 }
0x2a80   : > { %2525 = vst.msk [vmem:[#allocation3] sm:$0xff] %vm321_vm3, %v2523_v56 }
0x2a81 PF: > { %s2527_s7 = sadd.s32 2, %s3982_s30 }
0x2a82   : > { %s2528_s19 = sld [smem:[#allocation5 + %s2527_s7]] }
0x2a88   : > { %p3057_p0 = scmp.le.s32.totalorder %s2528_s19, 0 }
0x2a89   : > { %s3776_s20 = smov (!%p3057_p0), 126   ;;  %v3777_v57 = vmov (!%p3057_p0), 69   ;;  %v2541_v58 = vlaneseq (!%p3057_p0)  ;;  %s3778_s21 = smov (!%p3057_p0), 32   ;;  %vm2571_vm9 = vcmask (!%p3057_p0), 392448   ;;  %v3566_v31 = vpack.i.bf16 (!%p3057_p0), %v4340_v11, %v4338_v10 }
0x2a8a   : > { %2532 = sbr.rel (%p3057_p0) target bundleno = 12205 (0x2fad), region = 92  ;;  %2548 = vrot.lane.b32.xlu0 (!%p3057_p0), %v3998_v2, %s3776_s20  ;;  %3565 = vset.pattern.permute.xlu1 (!%p3057_p0), %v3777_v57  ;;  %s3779_s22 = smov (!%p3057_p0), 96  }
0x2a8b   : > { %3564 = vset.pattern.permute.xlu0 (!%p3057_p0), %v3777_v57  ;;  %2538 = vperm.xlu1 (!%p3057_p0), %3565, %v4344_v13   ;;  %v4408_v59 = vshrl.u32 (!%p3057_p0), %v2541_v58, 7  ;;  %s3780_s9 = smov (!%p3057_p0), 64  }
0x2a8d   : > { %v2543_v60 = vsub.s32 (!%p3057_p0), 2, %v4408_v59  ;;  %v2713_v10 = vsub.s32 (!%p3057_p0), 0, %v4408_v59 }
0x2a8e   : > { %2534 = vperm.xlu0 (!%p3057_p0), %3564, %v4342_v12  }
0x2a8f   : > { %v2544_v43 = vrot.slane (!%p3057_p0), %v4349_v18, %v2543_v60 }
0x2afc   : > { %v2549_v47 = vpop.permute.xlu0 %2548 }
0x2afd   : > { %3291 = vpush %v2549_v47 }
0x2b0a   : > { %v2539_v52 = vpop.permute.xlu1 %2538 }
0x2b0b   : > { %v2546_v38 = vadd.f32 %v2544_v43, %v2539_v52 }
0x2b0d   : > { %v2535_v37 = vpop.permute.xlu0 %2534 }
0x2b0e   : > { %v2545_v2 = vadd.f32 %v2544_v43, %v2535_v37  ;;  %v2714_v37 = vrot.slane %v4008_v6, %v2713_v10 }
0x2b2e   : > { %s3292_s30 = spop %3291 }
0x2b2f   : > { %v2551_v35 = vstv %s3292_s30 }
0x2b30   : > { %v2553_v46 = vadd.f32 %v2551_v35, %v2545_v2  ;;  %v2554_v39 = vadd.f32 %v2551_v35, %v2546_v38 }
0x2b32   : > { %v2557_v40 = vmul.f32 0.2, %v2553_v46  ;;  %vm2555_vm7 = vcmp.gt.f32.partialorder %v2553_v46, 0.0  ;;  %v2558_v32 = vmul.f32 0.2, %v2554_v39  ;;  %vm2556_vm8 = vcmp.gt.f32.partialorder %v2554_v39, 0.0 }
0x2b34   : > { %v2559_v33 = vsel %vm2555_vm7, %v2553_v46, %v2557_v40  ;;  %v2560_v36 = vsel %vm2556_vm8, %v2554_v39, %v2558_v32 }
0x2b35   : > { %2563 = vrot.lane.b32.xlu1 %v2559_v33, %s3778_s21 }
0x2b39   : > { %2565 = vrot.lane.b32.xlu1 %v2560_v36, %s3778_s21 }
0x2ba7   : > { %v2564_v18 = vpop.permute.xlu1 %2563 }
0x2ba8   : > { %v2569_v61 = vsel %vm326_vm0, %v2564_v18, -1e+30  ;;  %vm2601_vm0 = vcmask 130048  }
0x2ba9   : > { %v2572_v62 = vsel %vm2571_vm9, %v2569_v61, -inf }
0x2baa   : > { %2573 = vmax.xlane.f32.xlu0 %v2572_v62 }
0x2bab   : > { %v2566_v63 = vpop.permute.xlu1 %2565 }
0x2bac   : > { %v2570_v9 = vsel %vm327_vm1, %v2566_v63, -1e+30 }
0x2bad   : > { %v2575_v53 = vsel %vm2571_vm9, %v2570_v9, -inf }
0x2bae   : > { %2576 = vmax.xlane.f32.xlu1 %v2575_v53 }
0x2c37   : > { %v2574_v16 = vpop.xlane.xlu0 %2573 }
0x2c3b   : > { %v2577_v48 = vpop.xlane.xlu1 %2576 }
0x2c3c   : > { %v2578_v19 = vmax.f32 %v2574_v16, %v2577_v48 }
0x2c3e   : > { %v2579_v21 = vrot.slane %v2578_v19, 4 }
0x2c40   : > { %v2580_v22 = vmax.f32 %v2578_v19, %v2579_v21 }
0x2c42   : > { %v2581_v23 = vrot.slane %v2580_v22, 2 }
0x2c44   : > { %v2582_v24 = vmax.f32 %v2580_v22, %v2581_v23 }
0x2c46   : > { %v2583_v25 = vrot.slane %v2582_v24, 1 }
0x2c48   : > { %v2584_v45 = vmax.f32 %v2582_v24, %v2583_v25 }
0x2c4a   : > { %v2586_v28 = vsub.f32 %v2570_v9, %v2584_v45  ;;  %v2585_v29 = vsub.f32 %v2569_v61, %v2584_v45 }
0x2c4c   : > { %v2589_v42 = vmul.f32 1.442695, %v2586_v28  ;;  %v2587_v17 = vmul.f32 1.442695, %v2585_v29 }
0x2c4e   : > { %3571 = vpow2.f32 %v2589_v42 }
0x2c4f   : > { %3573 = vpow2.f32 %v2587_v17 }
0x2c58   : > { %v3572_v14 = vpop.eup %3571 }
0x2c59   : > { %v3574_v15 = vpop.eup %3573  ;;  %v2592_v30 = vmul.f32 %v3572_v14, %v3996_v1 }
0x2c5a   : > { %v2591_v34 = vmul.f32 %v3574_v15, %v3994_v0 }
0x2c5b   : > { %2597 = vrot.lane.b32.xlu1 %v2592_v30, %s3779_s22 }
0x2c5c   : > { %2595 = vrot.lane.b32.xlu0 %v2591_v34, %s3779_s22 }
0x2ccd   : > { %v2598_v41 = vpop.permute.xlu1 %2597 }
0x2cce   : > { %v2596_v44 = vpop.permute.xlu0 %2595  ;;  %v2605_v49 = vsel %vm2601_vm0, %v2598_v41, 0.0 }
0x2ccf   : > { %2606 = vadd.xlane.f32.xlu1 %v2605_v49  ;;  %v2602_v3 = vsel %vm2601_vm0, %v2596_v44, 0.0 }
0x2cd0   : > { %2603 = vadd.xlane.f32.xlu0 %v2602_v3 }
0x2ce6   : > { %3567 = vrot.lane.b32.xlu0 %v3566_v31, %s3780_s9 }
0x2d5c   : > { %v2607_v0 = vpop.xlane.xlu1 %2606 }
0x2d5d   : > { %v2604_v1 = vpop.xlane.xlu0 %2603 }
0x2d5e   : > { %v2608_v5 = vadd.f32 %v2607_v0, %v2604_v1 }
0x2d60   : > { %v2609_v50 = vrot.slane %v2608_v5, 4 }
0x2d61   : > { %v3568_v4 = vpop.permute.xlu0 %3567 }
0x2d62   : > { %v2610_v51 = vadd.f32 %v2609_v50, %v2608_v5  ;;  %v3570_v54 = vunpack.i.h.bf16 %v3568_v4  ;;  %v3569_v55 = vunpack.i.l.bf16 %v3568_v4 }
0x2d64   : > { %v2611_v56 = vrot.slane %v2610_v51, 2  ;;  %v3251_v57 = vpack.c.bf16 %v3570_v54, %v3569_v55 }
0x2d66   : > { %v2612_v47 = vadd.f32 %v2611_v56, %v2610_v51  ;;  %3252 = vmatprep.subr.bf16.mxu0 %v3251_v57 }
0x2d67   : > { %3254 = vmatpush3.bf16.msra.mxu0 %v3251_v57 }
0x2d68   : > { %v2613_v58 = vrot.slane %v2612_v47, 1 }
0x2d6a   : > { %v2614_v60 = vadd.f32 %v2613_v58, %v2612_v47 }
0x2d6c   : > { %3575 = vrcp.f32 %v2614_v60 }
0x2d76   : > { %v3576_v11 = vpop.eup %3575 }
0x2d77   : > { %v2617_v43 = vmul.f32 %v3576_v11, %v2592_v30  ;;  %v2616_v52 = vmul.f32 %v3576_v11, %v2591_v34 }
0x2d79   : > { %2622 = vrot.lane.b32.xlu0 %v2617_v43, %s3779_s22  ;;  %2620 = vrot.lane.b32.xlu1 %v2616_v52, %s3779_s22 }
0x2d7d   : > { %2716 = vrot.lane.b32.xlu1 %v2714_v37, %s3778_s21 }
0x2deb   : > { %v2621_v38 = vpop.permute.xlu1 %2620  ;;  %v2623_v2 = vpop.permute.xlu0 %2622 }
0x2dec   : > { %3181 = vmatprep.mubr.msk.f32.mxu0 %vm2601_vm0, %v2621_v38 }
0x2ded   : > { %3182 = vmatmul.mubr.msk.f32.vlgmr.msra.gmra.mrb[0].mxu0 %vm2601_vm0, %v2623_v2 }
0x2def   : > { %v2717_v46 = vpop.permute.xlu1 %2716 }
0x2df0   : > { %v2720_v39 = vadd.f32 %v2717_v46, %v4344_v13  ;;  %v2719_v40 = vadd.f32 %v2717_v46, %v4342_v12  ;;  %v2734_v12 = vld [vmem:[#allocation3 + $0x8] sm:$0xff]  ;;  %v2733_v13 = vld [vmem:[#allocation3] sm:$0xff] }
0x2df2   : > { %v3061_v6 = vmul.f32 -1.442695, %v2720_v39  ;;  %v3060_v32 = vmul.f32 -1.442695, %v2719_v40 }
0x2df4   : > { %3577 = vpow2.f32 %v3061_v6 }
0x2df5   : > { %3579 = vpow2.f32 %v3060_v32 }
0x2dfe   : > { %v3578_v33 = vpop.eup %3577 }
0x2dff   : > { %v3580_v36 = vpop.eup %3579  ;;  %v2728_v18 = vadd.f32 1.0, %v3578_v33 }
0x2e00   : > { %v2727_v61 = vadd.f32 1.0, %v3580_v36 }
0x2e01   : > { %3581 = vrcp.f32 %v2728_v18 }
0x2e02   : > { %3583 = vrcp.f32 %v2727_v61 }
0x2e0b   : > { %v3582_v62 = vpop.eup %3581 }
0x2e0c   : > { %v3584_v63 = vpop.eup %3583 }
0x2ec0   : > { %v3183_v35 = vpop.f32.mrb[0].mxu0 }
0x2ec1   : > { %2739 = vrot.lane.b32.xlu1 %v3183_v35, %s3778_s21  ;;  %v2702_v59 = vpop.f32.mrb[1].mxu0 }
0x2ec2   : > { %2737 = vrot.lane.b32.xlu0 %v2702_v59, %s3778_s21 }
0x2f33   : > { %v2740_v9 = vpop.permute.xlu1 %2739 }
0x2f34   : > { %v2744_v53 = vmul.f32 %v3582_v62, %v2740_v9  ;;  %v2738_v16 = vpop.permute.xlu0 %2737 }
0x2f35   : > { %v2743_v48 = vmul.f32 %v3584_v63, %v2738_v16 }
0x2f36   : > { %2749 = vrot.lane.b32.xlu1 %v2744_v53, %s3779_s22 }
0x2f37   : > { %2747 = vrot.lane.b32.xlu0 %v2743_v48, %s3779_s22 }
0x2fa8   : > { %v2750_v19 = vpop.permute.xlu1 %2749 }
0x2fa9   : > { %v2754_v21 = vadd.f32 %v2750_v19, %v2734_v12  ;;  %v2748_v22 = vpop.permute.xlu0 %2747 }
0x2faa   : > { %v2753_v23 = vadd.f32 %v2748_v22, %v2733_v13 }
0x2fab   : > { %2756 = vst.msk [vmem:[#allocation3 + $0x8] sm:$0xff] %vm321_vm3, %v2754_v21 }
0x2fac   : > { %2755 = vst.msk [vmem:[#allocation3] sm:$0xff] %vm321_vm3, %v2753_v23 }
0x2fad PF:  {}
0x2fb2   : > { %v2758_v25 = vld [vmem:[#allocation3 + $0x8] sm:$0xff] }
0x2fb3   : > { %v2757_v24 = vld [vmem:[#allocation3] sm:$0xff]  ;;  %v2760_v28 = vmul.f32 %v4031_v20, %v2758_v25 }
0x2fb4   : > { %v2759_v45 = vmul.f32 %v4031_v20, %v2757_v24 }
0x2fb5   : > { %v2762_v42 = vadd.f32 %v2760_v28, %v4332_v8 }
0x2fb6   : > { %v2761_v29 = vadd.f32 %v2759_v45, %v4330_v7 }
0x2fb7   : > { %v2766_v14 = vsel %vm321_vm3, %v2762_v42, 0.0 }
0x2fb8   : > { %v2763_v17 = vsel %vm321_vm3, %v2761_v29, 0.0 }
0x2fb9   : > { %2764 = vadd.xlane.f32.xlu0 %v2763_v17 }
0x2fbd   : > { %2767 = vadd.xlane.f32.xlu0 %v2766_v14 }
0x3046   : > { %v2765_v15 = vpop.xlane.xlu0 %2764 }
0x3047   : > { %v2770_v30 = vmul.f32 0.03125, %v2765_v15 }
0x3049   : > { %v2772_v34 = vsub.f32 %v2761_v29, %v2770_v30 }
0x304a   : > { %v2768_v41 = vpop.xlane.xlu0 %2767 }
0x304b   : > { %v2771_v44 = vmul.f32 0.03125, %v2768_v41  ;;  %v2774_v49 = vmul.f32 %v2772_v34, %v2772_v34 }
0x304d   : > { %v2773_v3 = vsub.f32 %v2762_v42, %v2771_v44  ;;  %v2776_v31 = vsel %vm321_vm3, %v2774_v49, 0.0 }
0x304e   : > { %2777 = vadd.xlane.f32.xlu1 %v2776_v31 }
0x304f   : > { %v2775_v20 = vmul.f32 %v2773_v3, %v2773_v3 }
0x3051   : > { %v2779_v7 = vsel %vm321_vm3, %v2775_v20, 0.0 }
0x3052   : > { %2780 = vadd.xlane.f32.xlu1 %v2779_v7 }
0x30db   : > { %v2778_v8 = vpop.xlane.xlu1 %2777 }
0x30dc   : > { %v2782_v0 = vmul.f32 0.03125, %v2778_v8 }
0x30de   : > { %v2784_v1 = vadd.f32 1e-05, %v2782_v0 }
0x30df   : > { %v2781_v5 = vpop.xlane.xlu1 %2780 }
0x30e0   : > { %3585 = vrsqrt.f32 %v2784_v1  ;;  %v2783_v50 = vmul.f32 0.03125, %v2781_v5 }
0x30e2   : > { %v2785_v4 = vadd.f32 1e-05, %v2783_v50 }
0x30e4   : > { %3587 = vrsqrt.f32 %v2785_v4 }
0x30ea   : > { %v3586_v51 = vpop.eup %3585 }
0x30eb   : > { %v2788_v54 = vmul.f32 %v3586_v51, %v2772_v34 }
0x30ed   : > { %v2794_v55 = vmul.f32 %v4314_v26, %v2788_v54 }
0x30ee   : > { %v3588_v56 = vpop.eup %3587 }
0x30ef   : > { %v2800_v57 = vadd.f32 %v4316_v27, %v2794_v55  ;;  %v2789_v47 = vmul.f32 %v3588_v56, %v2773_v3 }
0x30f1   : > { %v2802_v58 = vmax.f32 %v2800_v57, 0.0  ;;  %v2795_v60 = vmul.f32 %v4314_v26, %v2789_v47 }
0x30f3   : > { %2804 = vst.msk [vmem:[#allocation2] sm:$0xff] %vm321_vm3, %v2802_v58  ;;  %v2801_v10 = vadd.f32 %v4316_v27, %v2795_v60 }
0x30f5   : > { %v2803_v11 = vmax.f32 %v2801_v10, 0.0 }
0x30f7   : > { %2805 = vst.msk [vmem:[#allocation2 + $0x8] sm:$0xff] %vm321_vm3, %v2803_v11 }
0x30f8 PF: > { %v2806_v43 = vld [vmem:[#allocation8 + $0x50] sm:$0xff]  ;;  %v2807_v52 = vld [vmem:[#allocation8 + $0x60] sm:$0xff] }
0x30f9   : > { %v2808_v37 = vld [vmem:[#allocation8 + $0x70] sm:$0xff]  ;;  %v3255_v38 = vpack.c.bf16 %v2807_v52, %v2806_v43  ;;  %v2809_v2 = vld [vmem:[#allocation8 + $0x80] sm:$0xff] }
0x30fa   : > { %v2811_v35 = vld [vmem:[#allocation2] sm:$0xff]  ;;  %v3259_v59 = vpack.c.bf16 %v2809_v2, %v2808_v37  ;;  %v3064_v27 = vld [vmem:[#allocation10 + $0x5] ss:$0 sm:$0xff] }
0x30fb   : > { %3192 = vmatprep.mubr.msk.f32.mxu0 %vm321_vm3, %v2811_v35  ;;  %3256 = vmatprep.subr.bf16.mxu0 %v3255_v38 }
0x30fc   : > { %3258 = vmatpush3.bf16.msra.mxu0 %v3255_v38 }
0x30fd   : > { %3260 = vmatprep.subr.bf16.mxu0 %v3259_v59 }
0x30fe   : > { %v2812_v26 = vld [vmem:[#allocation2 + $0x8] sm:$0xff] }
0x3100   : > { %3262 = vmatpush3.bf16.msra.mxu0 %v3259_v59 }
0x3103   : > { %3193 = vmatmul.mubr.msk.f32.vlgmr.msra.gmra.mrb[0].mxu0 %vm321_vm3, %v2812_v26 }
0x31d6   : > { %v3194_v46 = vpop.f32.mrb[0].mxu0 }
0x31d7   : > { %v2895_v39 = vadd.f32 %v3194_v46, %v3064_v27  ;;  %v2889_v40 = vpop.f32.mrb[1].mxu0 }
0x31d8   : > { %v2890_v6 = vadd.f32 %v3064_v27, %v2889_v40 }
0x31d9   : > { %2899 = vst [vmem:[%s3992_s25 + $0x8] sm:$0xff] %v2895_v39 }
0x31da   : > { %2898 = vst [vmem:[%s3992_s25] sm:$0xff] %v2890_v6 }
0x31db PF: > { %p19_p2 = scmp.ge.s32.totalorder %s3914_s15, 6   ;;  %s4488_s25 = smov %s3717_s26 }
0x31dc   : > { %s4489_s26 = smov %s3721_s27  ;;  %s4490_s27 = smov %s3923_s18 }
0x31dd   : > { %s4491_s28 = smov %s3914_s15  ;;  %21 = sbr.rel (!%p19_p2) target bundleno = 16 (0x10), region = 128 }
0x31e4   :  { %2921 = vsyncpa [#allocation7], 1 }
0x31e5   :  { %2923 = vsyncpa [#allocation7 + $0x1], 1 }
0x31e6   :  { %2924 = vsyncpa [#allocation9], 1 }

</bundles_post_ra>
